<compile_context>
chip_gen: v7x
topology: tpu7x:2x2x1
jax: 0.10.0
libtpu: 0.0.40
codegen_flags: <defaults>
</compile_context>

<pallas_src>
import jax
import jax.numpy as jnp
from jax.experimental import pallas as pl
from jax.experimental.pallas import tpu as pltpu


def _round_up(x, m):
    return (x + m - 1) // m * m


def _cdiv(a, b):
    return (a + b - 1) // b


def _vmem_limit_bytes():
    """Generation-aware VMEM limit (v5e/v6e: 128 MiB, v7x: 64 MiB per core)."""
    cap = 64 << 20
    try:
        cap = int(getattr(pltpu.get_tpu_info(), "vmem_capacity_bytes", cap))
    except Exception:
        pass
    return int(max(32 << 20, min(cap * 3 // 4, 96 << 20)))


def _plan_tiles(H, N, ks, wc, wp, cin_p, cout_p, budget):
    """Pick (sub-tile rows th, sub-tiles per grid step, row grid steps)."""
    th_cap = min(_round_up(H, 8), 32)           # 32 rows already gives M>=512
    if N == 1 and H > 8:
        # v7x has 2 TensorCores: keep the (parallel) grid at >= 2 steps.
        th_cap = min(th_cap, _round_up(_cdiv(H, 2), 8))
    th_cap = max(th_cap, 8)
    th = 8
    for cand in range(8, th_cap + 1, 8):
        th_in = cand + ks - 1
        use = (2 * th_in * wp * cin_p * 2            # double-buffered halo xbuf
               + 2 * ks * ks * cin_p * cout_p * 2    # (pipelined) weights
               + cand * wc * ks * cin_p * 2          # im2col LHS transient
               + cand * wc * cout_p * 4              # f32 accumulator
               + 2 * 4 * cand * wc * cout_p * 2)     # double-buffered bf16 out
        if use <= budget:
            th = cand
        else:
            break
    n_sub = _cdiv(H, th)
    min_outer = 2 if (N == 1 and n_sub >= 2) else 1
    n_inner = max(1, min(4, n_sub // min_outer))
    n_outer = _cdiv(n_sub, n_inner)
    return th, n_inner, n_outer


def _plan_1x1(H, N, wc, cin_p, cout_p, budget):
    th_cap = min(_round_up(H, 8), 256)
    if N == 1 and H > 8:
        th_cap = min(th_cap, _round_up(_cdiv(H, 2), 8))
    th_cap = max(th_cap, 8)
    th = 8
    for cand in range(8, th_cap + 1, 8):
        use = (2 * cand * wc * cin_p * 2             # double-buffered input blk
               + 2 * cand * wc * cout_p * 2          # double-buffered output blk
               + cand * wc * cout_p * 4              # f32 result transient
               + 2 * cin_p * cout_p * 2)             # weights
        if use <= budget:
            th = cand
        else:
            break
    return th, _cdiv(H, th)


def _make_kernel(*, ks, pad, th, n_inner, wc, cin_p, cout_p, norm, res):
    """General ks>=3 conv kernel: one (batch, row-block) tile per grid step."""
    th_in = th + ks - 1
    th_out = th * n_inner

    def kernel(x_hbm, w_ref, scale_ref, bias_ref, o_ref, xbuf, sem):
        n = pl.program_id(0)
        t = pl.program_id(1)
        base = t * th_out                     # first padded input row of tile

        def start_fetch(i, slot):
            r0 = pl.multiple_of(base + i * th, 8)
            pltpu.make_async_copy(x_hbm.at[n, pl.ds(r0, th_in)],
                                  xbuf.at[slot], sem.at[slot]).start()

        def wait_fetch(slot):
            pltpu.make_async_copy(x_hbm.at[n, pl.ds(0, th_in)],
                                  xbuf.at[slot], sem.at[slot]).wait()

        start_fetch(0, 0)
        for i in range(n_inner):              # static, small unrolled loop
            slot = i % 2
            wait_fetch(slot)
            if i + 1 < n_inner:
                start_fetch(i + 1, 1 - slot)  # overlap next DMA with compute
            xs = xbuf.at[slot]

            # Direct conv with kx folded into the MXU K dim: per ky one matmul
            # of (th*wc, ks*Cin_p) x (ks*Cin_p, Cout_p), f32 accumulation at a
            # fixed aligned offset (no sublane-misaligned RMW).
            acc = None
            for ky in range(ks):
                parts = [xs[ky:ky + th, kx:kx + wc, :] for kx in range(ks)]
                lhs = jnp.concatenate(parts, axis=-1)
                lhs = lhs.reshape(th * wc, ks * cin_p)
                p = jnp.dot(lhs, w_ref[ky],
                            preferred_element_type=jnp.float32)
                acc = p if acc is None else acc + p

            out = acc.reshape(th, wc, cout_p)
            if norm:
                out = jnp.maximum(out * scale_ref[...] + bias_ref[...], 0.0)
            if res:
                # Residual read from the interior of the already-fetched halo
                # window (no second HBM copy of x).
                out = out + xs[pad:pad + th, pad:pad + wc, :].astype(jnp.float32)
            o_ref[0, i * th:(i + 1) * th] = out.astype(o_ref.dtype)

    return kernel


def _make_1x1_kernel(*, norm, res):
    """1x1 conv fast path: pure BlockSpec-pipelined matmul + epilogue."""

    def kernel(x_ref, w_ref, scale_ref, bias_ref, o_ref):
        _, th, wc, cin = x_ref.shape
        cout = w_ref.shape[-1]
        xin = x_ref[0]
        out = jnp.dot(xin.reshape(th * wc, cin), w_ref[...],
                      preferred_element_type=jnp.float32)
        out = out.reshape(th, wc, cout)
        if norm:
            out = jnp.maximum(out * scale_ref[...] + bias_ref[...], 0.0)
        if res:
            out = out + xin.astype(jnp.float32)
        o_ref[0] = out.astype(o_ref.dtype)

    return kernel


def conv_bn_relu(x_nchw, weight_oihw, gamma, beta, running_mean, running_var,
                 *, stride=1, norm=True, res=False, eps=1e-5):
    """Pallas implementation of ConvBNReLU.forward (NCHW in / NCHW out, bf16)."""
    N, Cin, H, W = x_nchw.shape
    Cout, Cin_w, ks, ks2 = weight_oihw.shape
    assert Cin_w == Cin and ks == ks2
    assert ks % 2 == 1, "ConvBNReLU uses padding=ks//2; odd kernels only"
    if res:
        assert Cin == Cout and stride == 1, "residual needs matching shapes"
    pad = ks // 2

    cin_p = _round_up(Cin, 128)            # lane-dense contraction channels
    cout_p = _round_up(Cout, 128)          # lane-dense output channels
    wc = _round_up(W, 16)                  # output cols computed (lane-dense)
    wp = _round_up(wc + ks - 1, 8)         # halo'd input width held in VMEM

    vmem_limit = _vmem_limit_bytes()
    budget = int(vmem_limit * 0.85)

    # Folded (inference-mode) BatchNorm -> per-channel scale/bias in f32.
    if norm:
        scale = (gamma / jnp.sqrt(running_var + eps)).astype(jnp.float32)
        bias = (beta - running_mean * scale).astype(jnp.float32)
    else:
        scale = jnp.ones((Cout,), jnp.float32)
        bias = jnp.zeros((Cout,), jnp.float32)
    scale = jnp.pad(scale, (0, cout_p - Cout)).reshape(1, cout_p)
    bias = jnp.pad(bias, (0, cout_p - Cout)).reshape(1, cout_p)

    # NCHW -> NHWC, bf16.
    # TODO(synk): the transpose+pad is an extra XLA pass over the activation;
    #             an NHWC-native caller could feed the kernel directly.
    x = jnp.transpose(x_nchw, (0, 2, 3, 1)).astype(jnp.bfloat16)

    cparams = pltpu.CompilerParams(
        dimension_semantics=("parallel", "parallel"),
        vmem_limit_bytes=vmem_limit)

    if ks == 1:
        th, n_th = _plan_1x1(H, N, wc, cin_p, cout_p, budget)
        h_pad = n_th * th
        x = jnp.pad(x, ((0, 0), (0, h_pad - H), (0, wc - W), (0, cin_p - Cin)))
        w = weight_oihw.reshape(Cout, Cin).T.astype(jnp.bfloat16)
        w = jnp.pad(w, ((0, cin_p - Cin), (0, cout_p - Cout)))
        out = pl.pallas_call(
            _make_1x1_kernel(norm=norm, res=res),
            out_shape=jax.ShapeDtypeStruct((N, h_pad, wc, cout_p), jnp.bfloat16),
            grid=(N, n_th),
            in_specs=[
                pl.BlockSpec((1, th, wc, cin_p), lambda n, t: (n, t, 0, 0)),
                pl.BlockSpec((cin_p, cout_p), lambda n, t: (0, 0)),
                pl.BlockSpec((1, cout_p), lambda n, t: (0, 0)),
                pl.BlockSpec((1, cout_p), lambda n, t: (0, 0)),
            ],
            out_specs=pl.BlockSpec((1, th, wc, cout_p),
                                   lambda n, t: (n, t, 0, 0)),
            compiler_params=cparams,
        )(x, w, scale, bias)
    else:
        th, n_inner, n_outer = _plan_tiles(H, N, ks, wc, wp, cin_p, cout_p,
                                           budget)
        th_out = th * n_inner
        h_out_pad = n_outer * th_out
        h_in_pad = h_out_pad + ks - 1
        x = jnp.pad(x, ((0, 0),
                        (pad, h_in_pad - H - pad),
                        (pad, wp - W - pad),
                        (0, cin_p - Cin)))
        # OIHW -> (ky, kx*Cin_p, Cout_p): kx folded into the MXU K dim.
        w = jnp.transpose(weight_oihw, (2, 3, 1, 0)).astype(jnp.bfloat16)
        w = jnp.pad(w, ((0, 0), (0, 0), (0, cin_p - Cin), (0, cout_p - Cout)))
        w = w.reshape(ks, ks * cin_p, cout_p)
        out = pl.pallas_call(
            _make_kernel(ks=ks, pad=pad, th=th, n_inner=n_inner, wc=wc,
                         cin_p=cin_p, cout_p=cout_p, norm=norm, res=res),
            out_shape=jax.ShapeDtypeStruct((N, h_out_pad, wc, cout_p),
                                           jnp.bfloat16),
            grid=(N, n_outer),
            in_specs=[
                pl.BlockSpec(memory_space=pl.ANY),                # x stays in HBM
                pl.BlockSpec((ks, ks * cin_p, cout_p), lambda n, t: (0, 0, 0)),
                pl.BlockSpec((1, cout_p), lambda n, t: (0, 0)),
                pl.BlockSpec((1, cout_p), lambda n, t: (0, 0)),
            ],
            out_specs=pl.BlockSpec((1, th_out, wc, cout_p),
                                   lambda n, t: (n, t, 0, 0)),
            scratch_shapes=[
                pltpu.VMEM((2, th + ks - 1, wp, cin_p), jnp.bfloat16),
                pltpu.SemaphoreType.DMA((2,)),
            ],
            compiler_params=cparams,
        )(x, w, scale, bias)

    out = out[:, :H, :W, :Cout]
    if stride > 1:
        # TODO(synk): stride>1 computes the stride-1 output and subsamples here
        #             (~stride^2 extra MXU work vs an in-kernel strided gather).
        out = out[:, ::stride, ::stride, :]
    return jnp.transpose(out, (0, 3, 1, 2))        # NHWC -> NCHW (bf16)


def _reference(x_nchw, weight_oihw, gamma, beta, running_mean, running_var,
               *, stride=1, norm=True, res=False, eps=1e-5):
    """Plain-JAX reference matching PyTorch semantics (eval-mode BN)."""
    ks = weight_oihw.shape[-1]
    pad = ks // 2
    out = jax.lax.conv_general_dilated(
        x_nchw, weight_oihw, window_strides=(stride, stride),
        padding=((pad, pad), (pad, pad)),
        dimension_numbers=("NCHW", "OIHW", "NCHW"),
        precision=jax.lax.Precision.HIGHEST)
    if norm:
        s = (gamma / jnp.sqrt(running_var + eps)).reshape(1, -1, 1, 1)
        b = (beta - running_mean * gamma /
             jnp.sqrt(running_var + eps)).reshape(1, -1, 1, 1)
        out = jnp.maximum(out * s + b, 0.0)
    if res:
        out = x_nchw + out
    return out


def _check(name, x, w, gamma, beta, rmean, rvar, *, stride, norm, res,
           atol=2e-2, rtol=2e-2):
    out = conv_bn_relu(x, w, gamma, beta, rmean, rvar,
                       stride=stride, norm=norm, res=res)
    out = jax.block_until_ready(out).astype(jnp.float32)
    # Reference sees the same bf16-rounded operands the kernel's MXU sees; the
    # kernel additionally rounds its output to bf16, covered by rtol.
    xr = x.astype(jnp.bfloat16).astype(jnp.float32)
    wr = w.astype(jnp.bfloat16).astype(jnp.float32)
    ref = _reference(xr, wr, gamma, beta, rmean, rvar,
                     stride=stride, norm=norm, res=res)
    assert out.shape == ref.shape, (name, out.shape, ref.shape)
    err = float(jnp.max(jnp.abs(out - ref) - rtol * jnp.abs(ref)))
    assert err < atol, (name, err)


if __name__ == "__main__":
    key = jax.random.PRNGKey(0)
    keys = jax.random.split(key, 12)

    def bn_params(k, cout):
        kg, kb, km, kv = jax.random.split(k, 4)
        gamma = jax.random.uniform(kg, (cout,), jnp.float32, 0.5, 1.5)
        beta = jax.random.normal(kb, (cout,), jnp.float32) * 0.1
        rmean = jax.random.normal(km, (cout,), jnp.float32) * 0.1
        rvar = jax.random.uniform(kv, (cout,), jnp.float32, 0.5, 1.5)
        return gamma, beta, rmean, rvar

    N, H, W = 2, 16, 16
    Cin, Cout = 4, 8

    x = jax.random.normal(keys[0], (N, Cin, H, W), jnp.float32)
    w = jax.random.normal(keys[1], (Cout, Cin, 3, 3), jnp.float32) * 0.1
    g, b, m, v = bn_params(keys[2], Cout)

    # Case 1: 3x3 Conv + BN + ReLU.
    _check("conv_bn_relu", x, w, g, b, m, v, stride=1, norm=True, res=False)

    # Case 2: residual branch (requires in_c == out_c, stride 1).
    w2 = jax.random.normal(keys[3], (Cin, Cin, 3, 3), jnp.float32) * 0.1
    g2, b2, m2, v2 = bn_params(keys[4], Cin)
    _check("residual", x, w2, g2, b2, m2, v2, stride=1, norm=True, res=True)

    # Case 3: stride 2.
    _check("stride2", x, w, g, b, m, v, stride=2, norm=True, res=False)

    # Case 4: 1x1 conv, norm=False (plain Conv2d fast path).
    w4 = jax.random.normal(keys[5], (Cout, Cin, 1, 1), jnp.float32) * 0.1
    _check("conv1x1_nonorm", x, w4, g, b, m, v, stride=1, norm=False, res=False)

    # Case 5: channel-aligned case (Cin = Cout = 128), N=1 (v7x 2-step grid).
    C = 128
    x5 = jax.random.normal(keys[6], (1, C, H, W), jnp.float32)
    w5 = jax.random.normal(keys[7], (C, C, 3, 3), jnp.float32) * 0.1
    g5, b5, m5, v5 = bn_params(keys[8], C)
    _check("c128", x5, w5, g5, b5, m5, v5, stride=1, norm=True, res=False)

    # Case 6: taller image (N=1, H=128) - exercises the double-buffered inner
    # DMA pipeline (n_inner >= 2) together with the >=2-grid-step split.
    H6 = 128
    x6 = jax.random.normal(keys[9], (1, C, H6, W), jnp.float32)
    _check("tall_c128", x6, w5, g5, b5, m5, v5, stride=1, norm=True, res=False)

    print("KERNEL_OK")
</pallas_src>

<mosaic_0001>
module attributes {stable_mosaic.version = 11 : i64} {
  func.func @kernel(%arg0: i32, %arg1: i32, %arg2: memref<2x18x24x128xbf16, #tpu.memory_space<any>>, %arg3: memref<3x384x128xbf16, #tpu.memory_space<vmem>>, %arg4: memref<1x128xf32, #tpu.memory_space<vmem>>, %arg5: memref<1x128xf32, #tpu.memory_space<vmem>>, %arg6: memref<1x16x16x128xbf16, #tpu.memory_space<vmem>>, %arg7: memref<2x18x24x128xbf16, #tpu.memory_space<vmem>>, %arg8: memref<2x!tpu.dma_semaphore, #tpu.memory_space<semaphore_mem>>) attributes {dimension_semantics = [#tpu.dimension_semantics<parallel>, #tpu.dimension_semantics<parallel>], iteration_bounds = array<i64: 2, 1>, scalar_prefetch = 0 : i64, scratch_operands = 2 : i64, tpu.core_type = #tpu.core_type<tc>, window_params = [{}, {pipeline_mode = #tpu.pipeline_mode<synchronous>, transform_indices = @transform_1, window_bounds = array<i64: 3, 384, 128>}, {pipeline_mode = #tpu.pipeline_mode<synchronous>, transform_indices = @transform_2, window_bounds = array<i64: 1, 128>}, {pipeline_mode = #tpu.pipeline_mode<synchronous>, transform_indices = @transform_3, window_bounds = array<i64: 1, 128>}, {transform_indices = @transform_4, window_bounds = array<i64: 1, 16, 16, 128>}]} {
    %c16_i32 = arith.constant 16 : i32
    %0 = arith.muli %arg1, %c16_i32 : i32
    %c0_i32 = arith.constant 0 : i32
    %1 = arith.addi %0, %c0_i32 : i32
    %2 = tpu.assume_multiple %1, 8 : i32
    %c0_i32_0 = arith.constant 0 : i32
    %c0_i32_1 = arith.constant 0 : i32
    %c0_i32_2 = arith.constant 0 : i32
    %c0_i32_3 = arith.constant 0 : i32
    %3 = tpu.memref_slice %arg2[%arg0, %2, %c0_i32_2, %c0_i32_3] : memref<2x18x24x128xbf16, #tpu.memory_space<any>> -> memref<1x18x24x128xbf16, #tpu.memory_space<any>>
    %4 = tpu.memref_squeeze %3 : memref<1x18x24x128xbf16, #tpu.memory_space<any>> -> memref<18x24x128xbf16, #tpu.memory_space<any>>
    %c0_i32_4 = arith.constant 0 : i32
    %c0_i32_5 = arith.constant 0 : i32
    %c0_i32_6 = arith.constant 0 : i32
    %5 = tpu.memref_slice %arg7[%c0_i32_0, %c0_i32_4, %c0_i32_5, %c0_i32_6] : memref<2x18x24x128xbf16, #tpu.memory_space<vmem>> -> memref<1x18x24x128xbf16, #tpu.memory_space<vmem>>
    %6 = tpu.memref_squeeze %5 : memref<1x18x24x128xbf16, #tpu.memory_space<vmem>> -> memref<18x24x128xbf16, #tpu.memory_space<vmem>>
    %7 = tpu.memref_slice %arg8[%c0_i32_1] : memref<2x!tpu.dma_semaphore, #tpu.memory_space<semaphore_mem>> -> memref<1x!tpu.dma_semaphore, #tpu.memory_space<semaphore_mem>>
    %8 = tpu.memref_squeeze %7 : memref<1x!tpu.dma_semaphore, #tpu.memory_space<semaphore_mem>> -> memref<!tpu.dma_semaphore, #tpu.memory_space<semaphore_mem>>
    tpu.enqueue_dma source(%4 : memref<18x24x128xbf16, #tpu.memory_space<any>>) target(%6 : memref<18x24x128xbf16, #tpu.memory_space<vmem>>) target_semaphore(%8 : memref<!tpu.dma_semaphore, #tpu.memory_space<semaphore_mem>>)
    %c0_i32_7 = arith.constant 0 : i32
    %c0_i32_8 = arith.constant 0 : i32
    %c0_i32_9 = arith.constant 0 : i32
    %c0_i32_10 = arith.constant 0 : i32
    %c0_i32_11 = arith.constant 0 : i32
    %9 = tpu.memref_slice %arg2[%arg0, %c0_i32_9, %c0_i32_10, %c0_i32_11] : memref<2x18x24x128xbf16, #tpu.memory_space<any>> -> memref<1x18x24x128xbf16, #tpu.memory_space<any>>
    %10 = tpu.memref_squeeze %9 : memref<1x18x24x128xbf16, #tpu.memory_space<any>> -> memref<18x24x128xbf16, #tpu.memory_space<any>>
    %c0_i32_12 = arith.constant 0 : i32
    %c0_i32_13 = arith.constant 0 : i32
    %c0_i32_14 = arith.constant 0 : i32
    %11 = tpu.memref_slice %arg7[%c0_i32_7, %c0_i32_12, %c0_i32_13, %c0_i32_14] : memref<2x18x24x128xbf16, #tpu.memory_space<vmem>> -> memref<1x18x24x128xbf16, #tpu.memory_space<vmem>>
    %12 = tpu.memref_squeeze %11 : memref<1x18x24x128xbf16, #tpu.memory_space<vmem>> -> memref<18x24x128xbf16, #tpu.memory_space<vmem>>
    %13 = tpu.memref_slice %arg8[%c0_i32_8] : memref<2x!tpu.dma_semaphore, #tpu.memory_space<semaphore_mem>> -> memref<1x!tpu.dma_semaphore, #tpu.memory_space<semaphore_mem>>
    %14 = tpu.memref_squeeze %13 : memref<1x!tpu.dma_semaphore, #tpu.memory_space<semaphore_mem>> -> memref<!tpu.dma_semaphore, #tpu.memory_space<semaphore_mem>>
    tpu.wait_dma2 semaphore(%14 : memref<!tpu.dma_semaphore, #tpu.memory_space<semaphore_mem>>) src(%10 : memref<18x24x128xbf16, #tpu.memory_space<any>>) dst(%12 : memref<18x24x128xbf16, #tpu.memory_space<vmem>>)
    %c0_i32_15 = arith.constant 0 : i32
    %c0_i32_16 = arith.constant 0 : i32
    %c0_i32_17 = arith.constant 0 : i32
    %c0_i32_18 = arith.constant 0 : i32
    %15 = tpu.memref_slice %arg7[%c0_i32_15, %c0_i32_16, %c0_i32_17, %c0_i32_18] : memref<2x18x24x128xbf16, #tpu.memory_space<vmem>> -> memref<1x18x24x128xbf16, #tpu.memory_space<vmem>>
    %16 = tpu.memref_squeeze %15 : memref<1x18x24x128xbf16, #tpu.memory_space<vmem>> -> memref<18x24x128xbf16, #tpu.memory_space<vmem>>
    %c0 = arith.constant 0 : index
    %c0_19 = arith.constant 0 : index
    %c0_20 = arith.constant 0 : index
    %17 = vector.load %16[%c0, %c0_19, %c0_20] : memref<18x24x128xbf16, #tpu.memory_space<vmem>>, vector<16x16x128xbf16>
    %c0_i32_21 = arith.constant 0 : i32
    %c0_i32_22 = arith.constant 0 : i32
    %c0_i32_23 = arith.constant 0 : i32
    %c0_i32_24 = arith.constant 0 : i32
    %18 = tpu.memref_slice %arg7[%c0_i32_21, %c0_i32_22, %c0_i32_23, %c0_i32_24] : memref<2x18x24x128xbf16, #tpu.memory_space<vmem>> -> memref<1x18x24x128xbf16, #tpu.memory_space<vmem>>
    %19 = tpu.memref_squeeze %18 : memref<1x18x24x128xbf16, #tpu.memory_space<vmem>> -> memref<18x24x128xbf16, #tpu.memory_space<vmem>>
    %c0_25 = arith.constant 0 : index
    %c1 = arith.constant 1 : index
    %c0_26 = arith.constant 0 : index
    %20 = vector.load %19[%c0_25, %c1, %c0_26] : memref<18x24x128xbf16, #tpu.memory_space<vmem>>, vector<16x16x128xbf16>
    %c0_i32_27 = arith.constant 0 : i32
    %c0_i32_28 = arith.constant 0 : i32
    %c0_i32_29 = arith.constant 0 : i32
    %c0_i32_30 = arith.constant 0 : i32
    %21 = tpu.memref_slice %arg7[%c0_i32_27, %c0_i32_28, %c0_i32_29, %c0_i32_30] : memref<2x18x24x128xbf16, #tpu.memory_space<vmem>> -> memref<1x18x24x128xbf16, #tpu.memory_space<vmem>>
    %22 = tpu.memref_squeeze %21 : memref<1x18x24x128xbf16, #tpu.memory_space<vmem>> -> memref<18x24x128xbf16, #tpu.memory_space<vmem>>
    %c0_31 = arith.constant 0 : index
    %c2 = arith.constant 2 : index
    %c0_32 = arith.constant 0 : index
    %23 = vector.load %22[%c0_31, %c2, %c0_32] : memref<18x24x128xbf16, #tpu.memory_space<vmem>>, vector<16x16x128xbf16>
    %24 = tpu.concatenate %17, %20, %23 in 2 : vector<16x16x128xbf16>, vector<16x16x128xbf16>, vector<16x16x128xbf16> -> vector<16x16x384xbf16>
    %25 = vector.shape_cast %24 : vector<16x16x384xbf16> to vector<256x384xbf16>
    %c0_33 = arith.constant 0 : index
    %c0_34 = arith.constant 0 : index
    %c0_35 = arith.constant 0 : index
    %26 = vector.load %arg3[%c0_33, %c0_34, %c0_35] : memref<3x384x128xbf16, #tpu.memory_space<vmem>>, vector<1x384x128xbf16>
    %27 = vector.shape_cast %26 : vector<1x384x128xbf16> to vector<384x128xbf16>
    %cst = arith.constant dense<0.000000e+00> : vector<256x128xf32>
    %28 = tpu.matmul %25, %27, %cst {dimension_numbers = #tpu.dot_dimension_numbers<[1], [0], [0], [1], [0, 0, 1, 1], [], []>} : vector<256x384xbf16>, vector<384x128xbf16>, vector<256x128xf32> -> vector<256x128xf32>
    %c0_i32_36 = arith.constant 0 : i32
    %c0_i32_37 = arith.constant 0 : i32
    %c0_i32_38 = arith.constant 0 : i32
    %c0_i32_39 = arith.constant 0 : i32
    %29 = tpu.memref_slice %arg7[%c0_i32_36, %c0_i32_37, %c0_i32_38, %c0_i32_39] : memref<2x18x24x128xbf16, #tpu.memory_space<vmem>> -> memref<1x18x24x128xbf16, #tpu.memory_space<vmem>>
    %30 = tpu.memref_squeeze %29 : memref<1x18x24x128xbf16, #tpu.memory_space<vmem>> -> memref<18x24x128xbf16, #tpu.memory_space<vmem>>
    %c1_40 = arith.constant 1 : index
    %c0_41 = arith.constant 0 : index
    %c0_42 = arith.constant 0 : index
    %31 = vector.load %30[%c1_40, %c0_41, %c0_42] : memref<18x24x128xbf16, #tpu.memory_space<vmem>>, vector<16x16x128xbf16>
    %c0_i32_43 = arith.constant 0 : i32
    %c0_i32_44 = arith.constant 0 : i32
    %c0_i32_45 = arith.constant 0 : i32
    %c0_i32_46 = arith.constant 0 : i32
    %32 = tpu.memref_slice %arg7[%c0_i32_43, %c0_i32_44, %c0_i32_45, %c0_i32_46] : memref<2x18x24x128xbf16, #tpu.memory_space<vmem>> -> memref<1x18x24x128xbf16, #tpu.memory_space<vmem>>
    %33 = tpu.memref_squeeze %32 : memref<1x18x24x128xbf16, #tpu.memory_space<vmem>> -> memref<18x24x128xbf16, #tpu.memory_space<vmem>>
    %c1_47 = arith.constant 1 : index
    %c1_48 = arith.constant 1 : index
    %c0_49 = arith.constant 0 : index
    %34 = vector.load %33[%c1_47, %c1_48, %c0_49] : memref<18x24x128xbf16, #tpu.memory_space<vmem>>, vector<16x16x128xbf16>
    %c0_i32_50 = arith.constant 0 : i32
    %c0_i32_51 = arith.constant 0 : i32
    %c0_i32_52 = arith.constant 0 : i32
    %c0_i32_53 = arith.constant 0 : i32
    %35 = tpu.memref_slice %arg7[%c0_i32_50, %c0_i32_51, %c0_i32_52, %c0_i32_53] : memref<2x18x24x128xbf16, #tpu.memory_space<vmem>> -> memref<1x18x24x128xbf16, #tpu.memory_space<vmem>>
    %36 = tpu.memref_squeeze %35 : memref<1x18x24x128xbf16, #tpu.memory_space<vmem>> -> memref<18x24x128xbf16, #tpu.memory_space<vmem>>
    %c1_54 = arith.constant 1 : index
    %c2_55 = arith.constant 2 : index
    %c0_56 = arith.constant 0 : index
    %37 = vector.load %36[%c1_54, %c2_55, %c0_56] : memref<18x24x128xbf16, #tpu.memory_space<vmem>>, vector<16x16x128xbf16>
    %38 = tpu.concatenate %31, %34, %37 in 2 : vector<16x16x128xbf16>, vector<16x16x128xbf16>, vector<16x16x128xbf16> -> vector<16x16x384xbf16>
    %39 = vector.shape_cast %38 : vector<16x16x384xbf16> to vector<256x384xbf16>
    %c1_57 = arith.constant 1 : index
    %c0_58 = arith.constant 0 : index
    %c0_59 = arith.constant 0 : index
    %40 = vector.load %arg3[%c1_57, %c0_58, %c0_59] : memref<3x384x128xbf16, #tpu.memory_space<vmem>>, vector<1x384x128xbf16>
    %41 = vector.shape_cast %40 : vector<1x384x128xbf16> to vector<384x128xbf16>
    %cst_60 = arith.constant dense<0.000000e+00> : vector<256x128xf32>
    %42 = tpu.matmul %39, %41, %cst_60 {dimension_numbers = #tpu.dot_dimension_numbers<[1], [0], [0], [1], [0, 0, 1, 1], [], []>} : vector<256x384xbf16>, vector<384x128xbf16>, vector<256x128xf32> -> vector<256x128xf32>
    %43 = arith.addf %28, %42 : vector<256x128xf32>
    %c0_i32_61 = arith.constant 0 : i32
    %c0_i32_62 = arith.constant 0 : i32
    %c0_i32_63 = arith.constant 0 : i32
    %c0_i32_64 = arith.constant 0 : i32
    %44 = tpu.memref_slice %arg7[%c0_i32_61, %c0_i32_62, %c0_i32_63, %c0_i32_64] : memref<2x18x24x128xbf16, #tpu.memory_space<vmem>> -> memref<1x18x24x128xbf16, #tpu.memory_space<vmem>>
    %45 = tpu.memref_squeeze %44 : memref<1x18x24x128xbf16, #tpu.memory_space<vmem>> -> memref<18x24x128xbf16, #tpu.memory_space<vmem>>
    %c2_65 = arith.constant 2 : index
    %c0_66 = arith.constant 0 : index
    %c0_67 = arith.constant 0 : index
    %46 = vector.load %45[%c2_65, %c0_66, %c0_67] : memref<18x24x128xbf16, #tpu.memory_space<vmem>>, vector<16x16x128xbf16>
    %c0_i32_68 = arith.constant 0 : i32
    %c0_i32_69 = arith.constant 0 : i32
    %c0_i32_70 = arith.constant 0 : i32
    %c0_i32_71 = arith.constant 0 : i32
    %47 = tpu.memref_slice %arg7[%c0_i32_68, %c0_i32_69, %c0_i32_70, %c0_i32_71] : memref<2x18x24x128xbf16, #tpu.memory_space<vmem>> -> memref<1x18x24x128xbf16, #tpu.memory_space<vmem>>
    %48 = tpu.memref_squeeze %47 : memref<1x18x24x128xbf16, #tpu.memory_space<vmem>> -> memref<18x24x128xbf16, #tpu.memory_space<vmem>>
    %c2_72 = arith.constant 2 : index
    %c1_73 = arith.constant 1 : index
    %c0_74 = arith.constant 0 : index
    %49 = vector.load %48[%c2_72, %c1_73, %c0_74] : memref<18x24x128xbf16, #tpu.memory_space<vmem>>, vector<16x16x128xbf16>
    %c0_i32_75 = arith.constant 0 : i32
    %c0_i32_76 = arith.constant 0 : i32
    %c0_i32_77 = arith.constant 0 : i32
    %c0_i32_78 = arith.constant 0 : i32
    %50 = tpu.memref_slice %arg7[%c0_i32_75, %c0_i32_76, %c0_i32_77, %c0_i32_78] : memref<2x18x24x128xbf16, #tpu.memory_space<vmem>> -> memref<1x18x24x128xbf16, #tpu.memory_space<vmem>>
    %51 = tpu.memref_squeeze %50 : memref<1x18x24x128xbf16, #tpu.memory_space<vmem>> -> memref<18x24x128xbf16, #tpu.memory_space<vmem>>
    %c2_79 = arith.constant 2 : index
    %c2_80 = arith.constant 2 : index
    %c0_81 = arith.constant 0 : index
    %52 = vector.load %51[%c2_79, %c2_80, %c0_81] : memref<18x24x128xbf16, #tpu.memory_space<vmem>>, vector<16x16x128xbf16>
    %53 = tpu.concatenate %46, %49, %52 in 2 : vector<16x16x128xbf16>, vector<16x16x128xbf16>, vector<16x16x128xbf16> -> vector<16x16x384xbf16>
    %54 = vector.shape_cast %53 : vector<16x16x384xbf16> to vector<256x384xbf16>
    %c2_82 = arith.constant 2 : index
    %c0_83 = arith.constant 0 : index
    %c0_84 = arith.constant 0 : index
    %55 = vector.load %arg3[%c2_82, %c0_83, %c0_84] : memref<3x384x128xbf16, #tpu.memory_space<vmem>>, vector<1x384x128xbf16>
    %56 = vector.shape_cast %55 : vector<1x384x128xbf16> to vector<384x128xbf16>
    %cst_85 = arith.constant dense<0.000000e+00> : vector<256x128xf32>
    %57 = tpu.matmul %54, %56, %cst_85 {dimension_numbers = #tpu.dot_dimension_numbers<[1], [0], [0], [1], [0, 0, 1, 1], [], []>} : vector<256x384xbf16>, vector<384x128xbf16>, vector<256x128xf32> -> vector<256x128xf32>
    %58 = arith.addf %43, %57 : vector<256x128xf32>
    %59 = vector.shape_cast %58 : vector<256x128xf32> to vector<16x16x128xf32>
    %c0_86 = arith.constant 0 : index
    %c0_87 = arith.constant 0 : index
    %60 = vector.load %arg4[%c0_86, %c0_87] : memref<1x128xf32, #tpu.memory_space<vmem>>, vector<1x128xf32>
    %61 = vector.shape_cast %60 : vector<1x128xf32> to vector<1x1x128xf32>
    %62 = vector.broadcast %61 : vector<1x1x128xf32> to vector<16x16x128xf32>
    %63 = arith.mulf %59, %62 : vector<16x16x128xf32>
    %c0_88 = arith.constant 0 : index
    %c0_89 = arith.constant 0 : index
    %64 = vector.load %arg5[%c0_88, %c0_89] : memref<1x128xf32, #tpu.memory_space<vmem>>, vector<1x128xf32>
    %65 = vector.shape_cast %64 : vector<1x128xf32> to vector<1x1x128xf32>
    %66 = vector.broadcast %65 : vector<1x1x128xf32> to vector<16x16x128xf32>
    %67 = arith.addf %63, %66 : vector<16x16x128xf32>
    %cst_90 = arith.constant 0.000000e+00 : f32
    %68 = vector.broadcast %cst_90 : f32 to vector<16x16x128xf32>
    %69 = arith.maximumf %67, %68 : vector<16x16x128xf32>
    %70 = arith.truncf %69 : vector<16x16x128xf32> to vector<16x16x128xbf16>
    %c0_91 = arith.constant 0 : index
    %c0_92 = arith.constant 0 : index
    %c0_93 = arith.constant 0 : index
    %c0_94 = arith.constant 0 : index
    %71 = vector.load %arg6[%c0_91, %c0_92, %c0_93, %c0_94] : memref<1x16x16x128xbf16, #tpu.memory_space<vmem>>, vector<1x16x16x128xbf16>
    %72 = vector.shape_cast %71 : vector<1x16x16x128xbf16> to vector<16x16x128xbf16>
    %73 = vector.shape_cast %70 : vector<16x16x128xbf16> to vector<1x16x16x128xbf16>
    tpu.vector_store %arg6[%c0_91, %c0_92, %c0_93, %c0_94], %73 {strides = array<i32>} : memref<1x16x16x128xbf16, #tpu.memory_space<vmem>>, vector<1x16x16x128xbf16>,
    return
  }
  func.func @transform_1(%arg0: i32, %arg1: i32) -> (i32, i32, i32) {
    %c0_i32 = arith.constant 0 : i32
    %c0_i32_0 = arith.constant 0 : i32
    %c0_i32_1 = arith.constant 0 : i32
    %c0_i32_2 = arith.constant 0 : i32
    return %c0_i32, %c0_i32_0, %c0_i32_1 : i32, i32, i32
  }
  func.func @transform_2(%arg0: i32, %arg1: i32) -> (i32, i32) {
    %c0_i32 = arith.constant 0 : i32
    %c0_i32_0 = arith.constant 0 : i32
    %c0_i32_1 = arith.constant 0 : i32
    return %c0_i32, %c0_i32_0 : i32, i32
  }
  func.func @transform_3(%arg0: i32, %arg1: i32) -> (i32, i32) {
    %c0_i32 = arith.constant 0 : i32
    %c0_i32_0 = arith.constant 0 : i32
    %c0_i32_1 = arith.constant 0 : i32
    return %c0_i32, %c0_i32_0 : i32, i32
  }
  func.func @transform_4(%arg0: i32, %arg1: i32) -> (i32, i32, i32, i32) {
    %c0_i32 = arith.constant 0 : i32
    %c0_i32_0 = arith.constant 0 : i32
    %c0_i32_1 = arith.constant 0 : i32
    return %arg0, %arg1, %c0_i32, %c0_i32_0 : i32, i32, i32, i32
  }
}

</mosaic_0001>

<bundles_post_ra>
// kernel: tpu_custom_call.1
= control target key start
LH: loop header
LB: loop body
LE: loop exit
PB: predicated region body
PF: predicated region fallthrough
CT: control target
= control target key end

     0   :  { %9 = vsyncpa [#allocation5], 0  ;;  %s6589_s0 = inlined_call_operand.hbm [shape: bf16[2,18,24,128], index: 0, kind: input, shape index: {}]   ;;  %s6590_s1 = inlined_call_operand.hbm [shape: bf16[3,384,128], index: 1, kind: input, shape index: {}]   ;;  %s6591_s2 = inlined_call_operand.vmem [shape: f32[1,128], index: 2, kind: input, shape index: {}]   ;;  %s6592_s3 = inlined_call_operand.vmem [shape: f32[1,128], index: 3, kind: input, shape index: {}]   ;;  %s6593_s4 = inlined_call_operand.hbm [shape: bf16[2,16,16,128], index: 4, kind: output, shape index: {}]  }
   0x1   :  { %10 = vsyncpa [#allocation6], 0 }
   0x2   :  { %12 = vsyncpa [#allocation6 + $0x1], 0  ;;  %s5342_s15 = smov 0   ;;  %s5344_s16 = smov 0  }
   0x3   :  { %s5346_s17 = smov 0   ;;  %s5348_s18 = smov 0  }
   0x4   :  { %s5350_s19 = smov 0   ;;  %s5352_s20 = smov 0  }
   0x5 LB: > { %s3745_s21 = sadd.s32 4294967295, %s5308_s20   ;;  %s3746_s22 = sadd.s32 4294967294, %s5308_s20   ;;  %s5308_s20 = sphi %s5352_s20, %s18_s20   ;;  %s5304_s19 = sphi %s5350_s19, %s6613_s19   ;;  %s5300_s18 = sphi %s5348_s18, %s6612_s18   ;;  %s5296_s17 = sphi %s5346_s17, %s6611_s17   ;;  %s5292_s16 = sphi %s5344_s16, %s6610_s16   ;;  %s5288_s15 = sphi %s5342_s15, %s6609_s15  }
   0x6   : > { %s30_s23 = sadd.s32 1, %s5304_s19  ;;  %s102_s24 = sadd.s32 1, %s5296_s17 }
   0x7   : > { %p32_p0 = scmp.ge.s32.totalorder %s30_s23, 2  ;;  %p112_p1 = scmp.ne.s32.totalorder %s5296_s17, %s5292_s16 }
   0x8   : > { %p113_p2 = scmp.eq.s32.totalorder %s3745_s21, 1  ;;  %p118_p3 = scmp.ne.s32.totalorder %s5292_s16, %s5288_s15 }
   0x9   : > { %s6615_s23 = smov (%p32_p0, %s30_s23), 0  ;;  %p119_p5 = scmp.eq.s32.totalorder %s3746_s22, 1 }
   0xa   : > { %p5382_p4 = por %p113_p2, %p112_p1  ;;  %s97_s26 = ssub.s32 %s5304_s19, %s6615_s23 }
   0xb   : > { %p3747_p6 = scmp.ge.s32.totalorder %s5308_s20, 1  ;;  %p100_p7 = scmp.eq.s32.totalorder %s97_s26, 0 }
   0xc   : > { %s6598_s25 = scalar_select %p5382_p4, 1, 0 }
   0xd   : > { %p5389_p8 = por %p119_p5, %p118_p3  ;;  %p126_p9 = scmp.lt.s32.totalorder %s5308_s20, 3 }
   0xe   : > { %s5395_s28 = scalar_select %p100_p7, %s5296_s17, %s102_s24  }
   0xf   : > { %s6599_s27 = scalar_select %p5389_p8, 1, 0 }
  0x10   : > { %p5397_p10 = pnand %p3747_p6, %p126_p9  ;;  %p5401_p11 = scmp.eq.s32.totalorder %s3745_s21, 0 }
  0x11   : > { %s5310_s5 = smov [#allocation4]   ;;  %s5172_s10 = scalar_lea.hbm %s6590_s1, 9216 }
  0x12   : > { %s6600_s29 = scalar_select %p5397_p10, 1, 0 }
  0x13   : > { %s6601_s30 = scalar_select %p5401_p11, 1, 0 }
  0x14   : > { %p4873_p12 = pneg %p5397_p10  ;;  %s138_s6 = sshll.u32 %s5310_s5, 4  ;;  %s139_s6 = int_to_ptr.vmem [resolvable:$true] %s138_s6 }
  0x15   : > { %p5173_p0 = scmp.ne.s32.totalorder %s6590_s1, %s5172_s10  ;;  %p5179_p5 = scmp.lt.u32.totalorder %s5172_s10, %s6590_s1 }
  0x16   : > { %p5409_p13 = pnand %p5401_p11, %p4873_p12 }
  0x18   : > { %p5174_p1 = pneg %p5409_p13 }
  0x1a   : > { %p5175_p2 = pnand %p5174_p1, %p5173_p0 }
  0x1c   : > { %p5176_p3 = pneg %p5175_p2 }
  0x1e   : > { %p5181_p6 = pnand %p5179_p5, %p5176_p3 }
  0x20   : > { %5184 = shalt.err (!%p5181_p6)
}
  0x21   : > { %s5185_s21 = scalar_lea.vmem %s139_s6, 9216  ;;  %p5193_p8 = scmp.lt.s32.totalorder %s139_s6, %s139_s6 }
  0x22   : > { %p5186_p7 = scmp.ne.s32.totalorder %s139_s6, %s5185_s21  ;;  %p5194_p4 = scmp.lt.s32.totalorder %s5185_s21, %s5185_s21 }
  0x24   : > { %p5188_p9 = pnand %p5186_p7, %p5174_p1  ;;  %p5195_p11 = por %p5194_p4, %p5193_p8 }
  0x26   : > { %p5189_p12 = pneg %p5188_p9 }
  0x28   : > { %p5196_p10 = pnand %p5195_p11, %p5189_p12 }
  0x2a   : > { %5199 = shalt.err (!%p5196_p10)
}
  0x2b   : > { %s5311_s22 = smov 64   ;;  %s5312_s24 = smov 4  }
  0x2c   : > { %4876 = dma.hbm_to_vmem [thread:$0]  (!%p5409_p13), %s6590_s1, 9216, %s139_s6, [#allocation5], %s5311_s22, %s5311_s22, %s5312_s24  }
  0x2d   : > { %p6603_p0 = scmp.ne.s32.totalorder %s6600_s29, 0 }
  0x2f   : > { %160 = sbr.rel (%p6603_p0) target bundleno = 642 (0x282), region = 32 }
  0x36   : > { %p6604_p2 = scmp.ne.s32.totalorder %s6601_s30, 0 }
  0x38   : > { %5277 = dma.done.wait (%p6604_p2), [#allocation5], 9216  }
  0x39   : > { %5279 = vsyncadd (%p6604_p2), [#allocation5], 4294958080  ;;  %s176_s8 = sand.u32 1, %s5292_s16   ;;  %s4010_s9 = smul.u32 3456, %s5300_s18 }
  0x3a   : > { %s3751_s7 = sshll.u32 %s176_s8, 7  ;;  %s5313_s12 = smov [#allocation2]  }
  0x3b   : > { %s186_s6 = scalar_lea.hbm %s6589_s0, %s4010_s9  ;;  %s194_s29 = sshll.u32 %s5313_s12, 4  ;;  %s195_s29 = int_to_ptr.vmem [resolvable:$true] %s194_s29 }
  0x3c   : > { %s5200_s13 = scalar_lea.hbm %s186_s6, 3456  ;;  %s5202_s30 = scalar_lea.hbm %s6589_s0, 6912 }
  0x3d   : > { %p5201_p4 = scmp.ne.s32.totalorder %s186_s6, %s5200_s13  ;;  %p5203_p8 = scmp.lt.u32.totalorder %s186_s6, %s6589_s0 }
  0x3e   : > { %p5204_p10 = scmp.lt.u32.totalorder %s5202_s30, %s5200_s13  ;;  %p5206_p13 = scmp.lt.u32.totalorder %s5200_s13, %s186_s6 }
  0x40   : > { %p5205_p11 = por %p5204_p10, %p5203_p8 }
  0x42   : > { %p5207_p1 = por %p5206_p13, %p5205_p11 }
  0x44   : > { %p5208_p3 = pnand %p5207_p1, %p5201_p4 }
  0x46   : > { %5211 = shalt.err (!%p5208_p3)  }
  0x47   : > { %s5212_s26 = scalar_lea.vmem %s195_s29, 3456  ;;  %s5216_s5 = scalar_lea.vmem %s195_s29, 6912 }
  0x48   : > { %p5213_p5 = scmp.ne.s32.totalorder %s195_s29, %s5212_s26  ;;  %p5217_p6 = scmp.lt.s32.totalorder %s195_s29, %s195_s29 }
  0x49   : > { %p5218_p7 = scmp.lt.s32.totalorder %s5216_s5, %s5212_s26 }
  0x4b   : > { %p5219_p9 = por %p5218_p7, %p5217_p6 }
  0x4d   : > { %p5220_p12 = pnand %p5219_p9, %p5213_p5 }
  0x4f   : > { %5223 = shalt.err (!%p5220_p12)  }
  0x50   : > { %197 = dma.hbm_to_vmem [thread:$0]  %s186_s6, 3456, %s195_s29, [#allocation3] }
  0x51   : > { %s5448_s9 = scalar_lea.vmem [#allocation7], %s3751_s7 }
  0x52   : > { %5280 = dma.done.wait [#allocation3], 3456 }
  0x53   : > { %5281 = vsyncadd [#allocation3], 4294963840  ;;  %v4938_v0 = vld [vmem:[#allocation4 + $0x100] sm:$0xff]   ;;  %v4941_v3 = vld [vmem:[#allocation4 + $0x108] sm:$0xff]   ;;  %vm411_vm0 = vsmask.f32 7424 }
  0x54   : > { %v5450_v1 = vld [vmem:[#allocation4 + $0x140] sm:$0xff]   ;;  %4139 = vmatprep.subr.bf16.mxu0 %v4938_v0  ;;  %v5454_v4 = vld [vmem:[#allocation4 + $0x148] sm:$0xff]   ;;  %v4944_v6 = vld [vmem:[#allocation4 + $0x110] sm:$0xff]   ;;  %vm668_vm1 = vcmask 1046528   ;;  %s4043_s12 = sshll.u32 %s5300_s18, 11  ;;  %s3654_s29 = sshll.u32 %s5448_s9, 4  ;;  %s6537_s29 = int_to_ptr.vmem [resolvable:$true] %s3654_s29 }
  0x55   : > { %v4940_v2 = vld [vmem:[#allocation4 + $0xc0] sm:$0xff]   ;;  %4691 = vmatprep.subr.bf16.mxu1 %v5450_v1  ;;  %v4943_v5 = vld [vmem:[#allocation4 + $0xc8] sm:$0xff]   ;;  %v5457_v7 = vld [vmem:[#allocation4 + $0x150] sm:$0xff]   ;;  %s6535_s21 = scalar_lea.hbm %s6593_s4, %s4043_s12  ;;  %s6543_s18 = scalar_lea.sflag [#allocation6], %s176_s8 }
  0x56   : > { %4140 = vmatpush3.bf16.msra.mxu0 %v4940_v2  ;;  %4699 = vmatpush3.bf16.msra.mxu1 %v5450_v1  ;;  %v4946_v8 = vld [vmem:[#allocation4 + $0xd0] sm:$0xff]   ;;  %v4947_v9 = vld [vmem:[#allocation4 + $0x118] sm:$0xff]   ;;  %v4950_v12 = vld [vmem:[#allocation4 + $0x120] sm:$0xff]   ;;  %s5224_s30 = scalar_lea.vmem %s6537_s29, 2048  ;;  %p6607_p2 = scmp.ne.s32.totalorder %s6598_s25, 0 }
  0x57   : > { %4141 = vmatprep.subr.bf16.mxu0 %v4941_v3  ;;  %4692 = vmatprep.subr.bf16.mxu1 %v5454_v4  ;;  %v5461_v10 = vld [vmem:[#allocation4 + $0x158] sm:$0xff]   ;;  %v5465_v13 = vld [vmem:[#allocation4 + $0x160] sm:$0xff]   ;;  %v4953_v15 = vld [vmem:[#allocation4 + $0x128] sm:$0xff]   ;;  %p5225_p0 = scmp.ne.s32.totalorder %s6537_s29, %s5224_s30  ;;  %s5314_s22 = smov [#allocation7]  }
  0x58   : > { %v4949_v11 = vld [vmem:[#allocation4 + $0xd8] sm:$0xff]   ;;  %v4952_v14 = vld [vmem:[#allocation4 + $0xe0] sm:$0xff]   ;;  %v5469_v16 = vld [vmem:[#allocation4 + $0x168] sm:$0xff]   ;;  %s5228_s24 = sshll.u32 %s5314_s22, 4  ;;  %s5229_s24 = int_to_ptr.vmem [resolvable:$false] %s5228_s24 }
  0x59   : > { %v4955_v17 = vld [vmem:[#allocation4 + $0xe8] sm:$0xff]   ;;  %v4956_v18 = vld [vmem:[#allocation4 + $0x130] sm:$0xff]   ;;  %v782_v21 = vld [vmem:[#allocation2 + $0xc] sm:$0xf]  ;;  %p5226_p4 = pnand %p5225_p0, %p6607_p2  ;;  %s5230_s26 = scalar_lea.vmem %s5229_s24, 4096 }
  0x5a   : > { %4142 = vmatpush3.bf16.msra.mxu0 %v4943_v5  ;;  %4700 = vmatpush3.bf16.msra.mxu1 %v5454_v4  ;;  %v5473_v19 = vld [vmem:[#allocation4 + $0x170] sm:$0xff]   ;;  %v783_v22 = vld [vmem:[#allocation2 + $0x10] sm:$0xf]  ;;  %v4959_v23 = vld [vmem:[#allocation4 + $0x138] sm:$0xff]   ;;  %p5231_p10 = scmp.lt.s32.totalorder %s6537_s29, %s5229_s24  ;;  %p5232_p11 = scmp.lt.s32.totalorder %s5230_s26, %s5224_s30 }
  0x5b   : > { %4143 = vmatprep.subr.bf16.mxu0 %v4944_v6  ;;  %4693 = vmatprep.subr.bf16.mxu1 %v5457_v7  ;;  %v4958_v20 = vld [vmem:[#allocation4 + $0xf0] sm:$0xff]   ;;  %v5477_v24 = vld [vmem:[#allocation4 + $0x178] sm:$0xff]   ;;  %v3801_v25 = vcombine.low %v782_v21, %v783_v22  ;;  %v4963_v26 = vld [vmem:[#allocation2 + $0x14] ss:$0 sps:$4 sm:$0x11]   ;;  %p5227_p8 = pneg %p5226_p4 }
  0x5c   : > { %v5479_v27 = vld [vmem:[#allocation2 + $0x70] sm:$0xf]  ;;  %v838_v28 = vld [vmem:[#allocation2 + $0x6c] sm:$0xe]  ;;  %v998_v31 = vshll.u32 %v4963_v26, 16  ;;  %v4972_v50 = vld [vmem:[#allocation4 + $0x48] sm:$0xff]   ;;  %p5233_p13 = por %p5232_p11, %p5231_p10 }
  0x5d   : > { %v991_v29 = vshrl.u32 %v3801_v25, 16  ;;  %v993_v30 = vshll.u32 %v3801_v25, 16  ;;  %v5481_v32 = vld [vmem:[#allocation2 + $0x74] ss:$0 sps:$4 sm:$0x11]   ;;  %v4961_v33 = vld [vmem:[#allocation4 + $0xf8] sm:$0xff]   ;;  %v3841_v34 = vcombine.low %v838_v28, %v5479_v27 }
  0x5e   : > { %4144 = vmatpush3.bf16.msra.mxu0 %v4946_v8  ;;  %4701 = vmatpush3.bf16.msra.mxu1 %v5457_v7  ;;  %v5485_v35 = vld [vmem:[#allocation2 + $0x7c] sm:$0xf]  ;;  %v1000_v37 = vrot.slane %v998_v31, 1  ;;  %v1271_v38 = vrot.slane %v5481_v32, 1  ;;  %v839_v39 = vld [vmem:[#allocation2 + $0x78] sm:$0xe]  ;;  %p5234_p1 = pnand %p5233_p13, %p5227_p8 }
  0x5f   : > { %4145 = vmatprep.subr.bf16.mxu0 %v4947_v9  ;;  %4694 = vmatprep.subr.bf16.mxu1 %v5461_v10  ;;  %v995_v36 = vrot.slane %v993_v30, 1  ;;  %v4970_v40 = vld [vmem:[#allocation4 + $0x40] sm:$0xff]   ;;  %v1270_v41 = vrot.slane %v3841_v34, 1  ;;  %v5489_v42 = vld [vmem:[#allocation2 + $0x80] ss:$0 sps:$4 sm:$0x11]   ;;  %v3842_v43 = vcombine.low %v839_v39, %v5485_v35 }
  0x60   : > { %v4971_v44 = vld [vmem:[#allocation4] sm:$0xff]   ;;  %v1274_v48 = vrot.slane %v5489_v42, 1  ;;  %v784_v52 = vld [vmem:[#allocation2 + $0x18] sm:$0xf]  ;;  %v785_v53 = vld [vmem:[#allocation2 + $0x1c] sm:$0xf] }
  0x61   : > { %v996_v45 = vor.u32 %v995_v36, %v991_v29  ;;  %v1272_v46 = vsel %vm668_vm1, %v1270_v41, %v1271_v38  ;;  %v1273_v47 = vrot.slane %v3842_v43, 1  ;;  %v3802_v54 = vcombine.low %v784_v52, %v785_v53  ;;  %v4975_v55 = vld [vmem:[#allocation2 + $0x20] ss:$0 sps:$4 sm:$0x11]   ;;  %v4973_v56 = vld [vmem:[#allocation4 + $0x8] sm:$0xff]   ;;  %v4994_v29 = vld [vmem:[#allocation4 + $0x60] sm:$0xff]  }
  0x62   : > { %4146 = vmatpush3.bf16.msra.mxu0 %v4949_v11  ;;  %4702 = vmatpush3.bf16.msra.mxu1 %v5461_v10  ;;  %v5499_v57 = vld [vmem:[#allocation2 + $0x88] sm:$0xf]  ;;  %v1010_v60 = vshll.u32 %v4975_v55, 16  ;;  %v840_v61 = vld [vmem:[#allocation2 + $0x84] sm:$0xe]  ;;  %v4995_v39 = vld [vmem:[#allocation4 + $0x20] sm:$0xff]  }
  0x63   : > { %4147 = vmatprep.subr.bf16.mxu0 %v4950_v12  ;;  %4695 = vmatprep.subr.bf16.mxu1 %v5465_v13  ;;  %v1001_v49 = vsel %vm411_vm0, %v996_v45, %v1000_v37  ;;  %v1275_v51 = vsel %vm668_vm1, %v1273_v47, %v1274_v48  ;;  %v1003_v58 = vshrl.u32 %v3802_v54, 16  ;;  %v1005_v59 = vshll.u32 %v3802_v54, 16  ;;  %v4982_v62 = vld [vmem:[#allocation4 + $0x50] sm:$0xff]   ;;  %v5502_v63 = vld [vmem:[#allocation2 + $0x8c] ss:$0 sps:$4 sm:$0x11]  }
  0x64   : > { %4579 = vmatprep.mubr.bf16.mxu1 %v1272_v46  ;;  %1535 = vmatprep.mubr.bf16.mxu0 %v1001_v49  ;;  %v3843_v0 = vcombine.low %v840_v61, %v5499_v57  ;;  %v4983_v2 = vld [vmem:[#allocation4 + $0x10] sm:$0xff]   ;;  %v1012_v5 = vrot.slane %v1010_v60, 1  ;;  %v1277_v8 = vrot.slane %v5502_v63, 1  ;;  %v841_v9 = vld [vmem:[#allocation2 + $0x90] sm:$0xe] }
  0x65   : > { %v1007_v3 = vrot.slane %v1005_v59, 1  ;;  %v5509_v12 = vld [vmem:[#allocation2 + $0x98] ss:$0 sps:$4 sm:$0x11]   ;;  %v5517_v30 = vld [vmem:[#allocation2 + $0xa0] sm:$0xf] }
  0x66   : > { %4148 = vmatpush3.bf16.msra.mxu0 %v4952_v14  ;;  %4703 = vmatpush3.bf16.msra.mxu1 %v5465_v13  ;;  %v1276_v6 = vrot.slane %v3843_v0, 1  ;;  %v1280_v22 = vrot.slane %v5509_v12, 1  ;;  %v4987_v28 = vld [vmem:[#allocation2 + $0x2c] ss:$0 sps:$4 sm:$0x11]   ;;  %v5006_v60 = vld [vmem:[#allocation4 + $0x70] sm:$0xff]  }
  0x67   : > { %4149 = vmatprep.subr.bf16.mxu0 %v4953_v15  ;;  %4696 = vmatprep.subr.bf16.mxu1 %v5469_v16  ;;  %v1008_v11 = vor.u32 %v1007_v3, %v1003_v58  ;;  %v4984_v15 = vld [vmem:[#allocation4 + $0x58] sm:$0xff]   ;;  %v1022_v34 = vshll.u32 %v4987_v28, 16  ;;  %v842_v36 = vld [vmem:[#allocation2 + $0x9c] sm:$0xe]  ;;  %v789_v55 = vld [vmem:[#allocation2 + $0x34] sm:$0xf] }
  0x68   : > { %v5521_v37 = vld [vmem:[#allocation2 + $0xa4] ss:$0 sps:$4 sm:$0x11]   ;;  %v3845_v38 = vcombine.low %v842_v36, %v5517_v30  ;;  %v843_v46 = vld [vmem:[#allocation2 + $0xa8] sm:$0xe] }
  0x69   : > { %v1024_v43 = vrot.slane %v1022_v34, 1  ;;  %v5528_v48 = vld [vmem:[#allocation2 + $0xb0] ss:$0 sps:$4 sm:$0x11]   ;;  %v5538_v61 = vld [vmem:[#allocation2 + $0xb8] sm:$0xf] }
  0x6a   : > { %4150 = vmatpush3.bf16.msra.mxu0 %v4955_v17  ;;  %4704 = vmatpush3.bf16.msra.mxu1 %v5469_v16  ;;  %v1278_v17 = vsel %vm668_vm1, %v1276_v6, %v1277_v8  ;;  %v1282_v45 = vrot.slane %v3845_v38, 1  ;;  %v4999_v59 = vld [vmem:[#allocation2 + $0x38] ss:$0 sps:$4 sm:$0x11]   ;;  %v844_v3 = vld [vmem:[#allocation2 + $0xb4] sm:$0xe] }
  0x6b   : > { %4151 = vmatprep.subr.bf16.mxu0 %v4956_v18  ;;  %4697 = vmatprep.subr.bf16.mxu1 %v5473_v19  ;;  %v4985_v18 = vld [vmem:[#allocation4 + $0x18] sm:$0xff]   ;;  %v5540_v6 = vld [vmem:[#allocation2 + $0xbc] ss:$0 sps:$4 sm:$0x11]  }
  0x6c   : > { %v5008_v8 = vld [vmem:[#allocation4 + $0x78] sm:$0xff]   ;;  %v5560_v36 = vld [vmem:[#allocation2 + $0x44] ss:$0 sps:$4 sm:$0x11]  }
  0x6e   : > { %4152 = vmatpush3.bf16.msra.mxu0 %v4958_v20  ;;  %4705 = vmatpush3.bf16.msra.mxu1 %v5473_v19  ;;  %v1013_v20 = vsel %vm411_vm0, %v1008_v11, %v1012_v5  ;;  %v5007_v5 = vld [vmem:[#allocation4 + $0x30] sm:$0xff]  }
  0x6f   : > { %4153 = vmatprep.subr.bf16.mxu0 %v4959_v23  ;;  %4698 = vmatprep.subr.bf16.mxu1 %v5477_v24  ;;  %v787_v23 = vld [vmem:[#allocation2 + $0x28] sm:$0xf] }
  0x72   : > { %4154 = vmatpush3.bf16.msra.mxu0 %v4961_v33  ;;  %4706 = vmatpush3.bf16.msra.mxu1 %v5477_v24 }
  0x73   : > { %4547 = vmatprep.subr.bf16.mxu0 %v5450_v1  ;;  %4275 = vmatprep.subr.bf16.mxu1 %v4970_v40  ;;  %v4996_v40 = vld [vmem:[#allocation4 + $0x68] sm:$0xff]  }
  0x75   : > { %1536 = vmatmul.mubr.bf16.vlgmr.msra.gmra.mrb[0].mxu0 %v3801_v25  ;;  %4580 = vmatmul.mubr.bf16.vlgmr.msra.gmra.mrb[0].mxu1 %v1275_v51 }
  0x76   : > { %4548 = vmatpush3.bf16.msra.mxu0 %v5450_v1  ;;  %4276 = vmatpush3.bf16.msra.mxu1 %v4971_v44  ;;  %v5505_v1 = vld [vmem:[#allocation2 + $0x94] sm:$0xf]  ;;  %v5524_v44 = vld [vmem:[#allocation2 + $0xac] sm:$0xf] }
  0x77   : > { %4277 = vmatprep.subr.bf16.mxu1 %v4972_v50  ;;  %4549 = vmatprep.subr.bf16.mxu0 %v5454_v4  ;;  %v3844_v14 = vcombine.low %v841_v9, %v5505_v1  ;;  %v3846_v49 = vcombine.low %v843_v46, %v5524_v44  ;;  %v4997_v50 = vld [vmem:[#allocation4 + $0x28] sm:$0xff]   ;;  %v5013_v46 = vld [vmem:[#allocation2 + $0x8] ss:$0 sps:$4 sm:$0x11]  }
  0x78   : > { %4583 = vmatprep.mubr.bf16.mxu1 %v1278_v17  ;;  %1543 = vmatprep.mubr.bf16.mxu0 %v1013_v20  ;;  %v1289_v17 = vrot.slane %v5540_v6, 1  ;;  %v798_v20 = vld [vmem:[#allocation2 + $0x6c] sm:$0xf] }
  0x79   : > { %v1279_v21 = vrot.slane %v3844_v14, 1  ;;  %v1285_v53 = vrot.slane %v3846_v49, 1  ;;  %v5544_v14 = vld [vmem:[#allocation2 + $0xc4] sm:$0xf]  ;;  %v5563_v38 = vcombine.low %v798_v20, %v5479_v27  ;;  %v420_v27 = vshll.u32 %v5013_v46, 16 }
  0x7a   : > { %4278 = vmatpush3.bf16.msra.mxu1 %v4973_v56  ;;  %4550 = vmatpush3.bf16.msra.mxu0 %v5454_v4  ;;  %v786_v4 = vld [vmem:[#allocation2 + $0x24] sm:$0xf] }
  0x7b   : > { %4279 = vmatprep.subr.bf16.mxu1 %v4982_v62  ;;  %4551 = vmatprep.subr.bf16.mxu0 %v5457_v7  ;;  %v1281_v25 = vsel %vm668_vm1, %v1279_v21, %v1280_v22  ;;  %v3803_v26 = vcombine.low %v786_v4, %v787_v23  ;;  %v5548_v22 = vld [vmem:[#allocation2 + $0xc8] ss:$0 sps:$4 sm:$0x11]  }
  0x7c   : > { %v5009_v23 = vld [vmem:[#allocation4 + $0x38] sm:$0xff]   ;;  %v1292_v28 = vrot.slane %v5548_v22, 1 }
  0x7d   : > { %1544 = vmatmul.mubr.bf16.gmra.mrb[4].mxu0 %v3802_v54  ;;  %4584 = vmatmul.mubr.bf16.gmra.mrb[4].mxu1 %v1281_v25  ;;  %v1015_v31 = vshrl.u32 %v3803_v26, 16  ;;  %v1017_v33 = vshll.u32 %v3803_v26, 16  ;;  %v1286_v54 = vrot.slane %v5528_v48, 1 }
  0x7e   : > { %4280 = vmatpush3.bf16.msra.mxu1 %v4983_v2  ;;  %4552 = vmatpush3.bf16.msra.mxu0 %v5457_v7  ;;  %v1283_v7 = vrot.slane %v5521_v37, 1  ;;  %v1034_v2 = vshll.u32 %v4999_v59, 16  ;;  %v1089_v59 = vshll.u32 %v5563_v38, 16 }
  0x7f   : > { %4281 = vmatprep.subr.bf16.mxu1 %v4984_v15  ;;  %4553 = vmatprep.subr.bf16.mxu0 %v5461_v10  ;;  %v1019_v41 = vrot.slane %v1017_v33, 1  ;;  %v1287_v56 = vsel %vm668_vm1, %v1285_v53, %v1286_v54  ;;  %v5567_v53 = vld [vmem:[#allocation2 + $0x4c] sm:$0xf] }
  0x80   : > { %v1284_v51 = vsel %vm668_vm1, %v1282_v45, %v1283_v7  ;;  %v1036_v11 = vrot.slane %v1034_v2, 1  ;;  %v1046_v45 = vshll.u32 %v5560_v36, 16 }
  0x81   : > { %v1020_v47 = vor.u32 %v1019_v41, %v1015_v31  ;;  %4587 = vmatprep.mubr.bf16.mxu1 %v1284_v51  ;;  %v5556_v31 = vld [vmem:[#allocation2 + $0x40] sm:$0xf] }
  0x82   : > { %4282 = vmatpush3.bf16.msra.mxu1 %v4985_v18  ;;  %4554 = vmatpush3.bf16.msra.mxu0 %v5461_v10  ;;  %v788_v10 = vld [vmem:[#allocation2 + $0x30] sm:$0xf]  ;;  %v845_v18 = vld [vmem:[#allocation2 + $0xc0] sm:$0xe] }
  0x83   : > { %4283 = vmatprep.subr.bf16.mxu1 %v4994_v29  ;;  %4555 = vmatprep.subr.bf16.mxu0 %v5465_v13  ;;  %v1025_v52 = vsel %vm411_vm0, %v1020_v47, %v1024_v43  ;;  %v3804_v58 = vcombine.low %v788_v10, %v789_v55  ;;  %v3848_v4 = vcombine.low %v845_v18, %v5544_v14  ;;  %v790_v29 = vld [vmem:[#allocation2 + $0x3c] sm:$0xf]  ;;  %v792_v47 = vld [vmem:[#allocation2 + $0x48] sm:$0xf]  ;;  %v5581_v18 = vld [vmem:[#allocation2 + $0x58] sm:$0xf] }
  0x84   : > { %1551 = vmatprep.mubr.bf16.mxu0 %v1025_v52  ;;  %v3805_v34 = vcombine.low %v790_v29, %v5556_v31  ;;  %v5570_v54 = vcombine.low %v792_v47, %v5567_v53  ;;  %v5572_v10 = vld [vmem:[#allocation2 + $0x50] ss:$0 sps:$4 sm:$0x11]   ;;  %v208_v29 = vld [vmem:[#allocation2 + $0x1c] sm:$0xf] }
  0x85   : > { %1552 = vmatmul.mubr.bf16.gmra.mrb[8].mxu0 %v3803_v26  ;;  %4588 = vmatmul.mubr.bf16.gmra.mrb[8].mxu1 %v1287_v56  ;;  %v1027_v62 = vshrl.u32 %v3804_v58, 16  ;;  %v1029_v0 = vshll.u32 %v3804_v58, 16  ;;  %v1291_v26 = vrot.slane %v3848_v4, 1  ;;  %v205_v56 = vld [vmem:[#allocation2 + $0xc] sm:$0xf]  ;;  %v1058_v2 = vshll.u32 %v5572_v10, 16 }
  0x86   : > { %4284 = vmatpush3.bf16.msra.mxu1 %v4995_v39  ;;  %4556 = vmatpush3.bf16.msra.mxu0 %v5465_v13  ;;  %v3847_v13 = vcombine.low %v844_v3, %v5538_v61  ;;  %v203_v39 = vld [vmem:[#allocation2] sm:$0xf]  ;;  %v1039_v41 = vshrl.u32 %v3805_v34, 16  ;;  %v1041_v43 = vshll.u32 %v3805_v34, 16 }
  0x87   : > { %4285 = vmatprep.subr.bf16.mxu1 %v4996_v40  ;;  %4557 = vmatprep.subr.bf16.mxu0 %v5469_v16  ;;  %v1031_v9 = vrot.slane %v1029_v0, 1  ;;  %v1293_v33 = vsel %vm668_vm1, %v1291_v26, %v1292_v28  ;;  %v204_v40 = vld [vmem:[#allocation2 + $0x4] sm:$0xf]  ;;  %v1053_v0 = vshll.u32 %v5570_v54, 16  ;;  %v207_v28 = vld [vmem:[#allocation2 + $0x18] sm:$0xf] }
  0x88   : > { %v1288_v15 = vrot.slane %v3847_v13, 1  ;;  %v3753_v7 = vcombine.low %v203_v39, %v204_v40  ;;  %v1043_v49 = vrot.slane %v1041_v43, 1  ;;  %v5022_v43 = vld [vmem:[#allocation2 + $0x20] ss:$0 sps:$4 sm:$0x11]  }
  0x89   : > { %v1032_v21 = vor.u32 %v1031_v9, %v1027_v62  ;;  %v1051_v62 = vshrl.u32 %v5570_v54, 16  ;;  %v794_v9 = vld [vmem:[#allocation2 + $0x54] sm:$0xf] }
  0x8a   : > { %4286 = vmatpush3.bf16.msra.mxu1 %v4997_v50  ;;  %4558 = vmatpush3.bf16.msra.mxu0 %v5469_v16  ;;  %v1290_v16 = vsel %vm668_vm1, %v1288_v15, %v1289_v17  ;;  %v1048_v50 = vrot.slane %v1046_v45, 1  ;;  %v413_v51 = vshrl.u32 %v3753_v7, 16  ;;  %v415_v52 = vshll.u32 %v3753_v7, 16 }
  0x8b   : > { %4287 = vmatprep.subr.bf16.mxu1 %v5006_v60  ;;  %4559 = vmatprep.subr.bf16.mxu0 %v5473_v19  ;;  %v1037_v25 = vsel %vm411_vm0, %v1032_v21, %v1036_v11  ;;  %v422_v60 = vrot.slane %v420_v27, 1  ;;  %v5023_v11 = vld [vmem:[#allocation4 + $0x88] sm:$0xff]   ;;  %v1055_v15 = vrot.slane %v1053_v0, 1  ;;  %v1060_v17 = vrot.slane %v1058_v2, 1  ;;  %v5030_v27 = vld [vmem:[#allocation4 + $0x90] sm:$0xff]  }
  0x8c   : > { %4591 = vmatprep.mubr.bf16.mxu1 %v1290_v16  ;;  %1559 = vmatprep.mubr.bf16.mxu0 %v1037_v25  ;;  %v417_v55 = vrot.slane %v415_v52, 1  ;;  %v5586_v16 = vld [vmem:[#allocation2 + $0x5c] ss:$0 sps:$4 sm:$0x11]   ;;  %v5589_v26 = vcombine.low %v794_v9, %v5581_v18  ;;  %v796_v52 = vld [vmem:[#allocation2 + $0x60] sm:$0xf] }
  0x8d   : > { %1560 = vmatmul.mubr.bf16.gmra.mrb[12].mxu0 %v3804_v58  ;;  %4592 = vmatmul.mubr.bf16.gmra.mrb[12].mxu1 %v1293_v33  ;;  %v206_v58 = vld [vmem:[#allocation2 + $0x10] sm:$0xf]  ;;  %v1056_v25 = vor.u32 %v1055_v15, %v1051_v62  ;;  %v800_v33 = vld [vmem:[#allocation2 + $0x78] sm:$0xf]  ;;  %v209_v0 = vld [vmem:[#allocation2 + $0x24] sm:$0xf] }
  0x8e   : > { %4288 = vmatpush3.bf16.msra.mxu1 %v5007_v5  ;;  %4560 = vmatpush3.bf16.msra.mxu0 %v5473_v19  ;;  %v5014_v19 = vld [vmem:[#allocation4 + $0x80] sm:$0xff]   ;;  %v418_v5 = vor.u32 %v417_v55, %v413_v51  ;;  %v5579_v13 = vcombine.low %v205_v56, %v206_v58  ;;  %v1063_v46 = vshrl.u32 %v5589_v26, 16  ;;  %v1065_v47 = vshll.u32 %v5589_v26, 16  ;;  %v5599_v56 = vld [vmem:[#allocation2 + $0x64] sm:$0xf] }
  0x8f   : > { %4289 = vmatprep.subr.bf16.mxu1 %v5008_v8  ;;  %4561 = vmatprep.subr.bf16.mxu0 %v5477_v24  ;;  %v5018_v8 = vld [vmem:[#allocation2 + $0x14] ss:$0 sps:$4 sm:$0x11]   ;;  %v1061_v45 = vsel %vm411_vm0, %v1056_v25, %v1060_v17  ;;  %v444_v55 = vshll.u32 %v5022_v43, 16  ;;  %v5608_v2 = vcombine.low %v800_v33, %v5485_v35  ;;  %v210_v9 = vld [vmem:[#allocation2 + $0x28] sm:$0xf] }
  0x90   : > { %v423_v20 = vsel %vm411_vm0, %v418_v5, %v422_v60  ;;  %v425_v21 = vshrl.u32 %v5579_v13, 16  ;;  %v427_v4 = vshll.u32 %v5579_v13, 16  ;;  %v5603_v60 = vcombine.low %v796_v52, %v5599_v56  ;;  %v5605_v62 = vld [vmem:[#allocation2 + $0x68] ss:$0 sps:$4 sm:$0x11]  }
  0x91   : > { %2001 = vmatprep.mubr.bf16.mxu1 %v423_v20  ;;  %v1087_v15 = vshrl.u32 %v5563_v38, 16  ;;  %v5616_v25 = vcombine.low %v209_v0, %v210_v9  ;;  %v5035_v43 = vld [vmem:[#allocation4 + $0x98] sm:$0xff]  }
  0x92   : > { %4290 = vmatpush3.bf16.msra.mxu1 %v5009_v23  ;;  %4562 = vmatpush3.bf16.msra.mxu0 %v5477_v24  ;;  %v1044_v24 = vor.u32 %v1043_v49, %v1039_v41  ;;  %v432_v23 = vshll.u32 %v5018_v8, 16  ;;  %v429_v39 = vrot.slane %v427_v4, 1  ;;  %v5592_v41 = vcombine.low %v207_v28, %v208_v29  ;;  %v211_v29 = vld [vmem:[#allocation2 + $0x30] sm:$0xf] }
  0x93   : > { %4595 = vmatprep.subr.bf16.mxu1 %v5014_v19  ;;  %v446_v8 = vrot.slane %v444_v55, 1  ;;  %v1075_v20 = vshrl.u32 %v5603_v60, 16  ;;  %v1082_v4 = vshll.u32 %v5605_v62, 16  ;;  %v1094_v28 = vshll.u32 %v5481_v32, 16 }
  0x94   : > { %v1049_v3 = vsel %vm411_vm0, %v1044_v24, %v1048_v50  ;;  %v434_v40 = vrot.slane %v432_v23, 1  ;;  %v430_v49 = vor.u32 %v429_v39, %v425_v21  ;;  %v437_v51 = vshrl.u32 %v5592_v41, 16  ;;  %v5027_v23 = vld [vmem:[#allocation2 + $0x2c] ss:$0 sps:$4 sm:$0x11]  }
  0x95   : > { %1567 = vmatprep.mubr.bf16.mxu0 %v1049_v3  ;;  %2002 = vmatmul.mubr.bf16.vlgmr.msra.gmra.mrb[16].mxu1 %v3753_v7  ;;  %v439_v7 = vshll.u32 %v5592_v41, 16  ;;  %v1067_v24 = vrot.slane %v1065_v47, 1  ;;  %v802_v3 = vld [vmem:[#allocation2 + $0x84] sm:$0xf]  ;;  %v1077_v21 = vshll.u32 %v5603_v60, 16  ;;  %v1099_v32 = vshrl.u32 %v5608_v2, 16 }
  0x96   : > { %1568 = vmatmul.mubr.bf16.gmra.mrb[16].mxu0 %v3805_v34  ;;  %v1070_v34 = vshll.u32 %v5586_v16, 16  ;;  %4596 = vmatpush3.bf16.msra.mxu1 %v5014_v19  ;;  %v435_v19 = vsel %vm411_vm0, %v430_v49, %v434_v40  ;;  %v1084_v40 = vrot.slane %v1082_v4, 1  ;;  %v804_v49 = vld [vmem:[#allocation2 + $0x90] sm:$0xf] }
  0x97   : > { %1575 = vmatprep.mubr.bf16.mxu0 %v1061_v45  ;;  %4597 = vmatprep.subr.bf16.mxu1 %v5023_v11  ;;  %v441_v58 = vrot.slane %v439_v7, 1  ;;  %v1068_v5 = vor.u32 %v1067_v24, %v1063_v46  ;;  %v1079_v39 = vrot.slane %v1077_v21, 1  ;;  %v449_v45 = vshrl.u32 %v5616_v25, 16  ;;  %v5040_v7 = vld [vmem:[#allocation4 + $0xa0] sm:$0xff]  }
  0x98   : > { %v1072_v50 = vrot.slane %v1070_v34, 1  ;;  %2009 = vmatprep.mubr.bf16.mxu1 %v435_v19  ;;  %v456_v34 = vshll.u32 %v5027_v23, 16  ;;  %v451_v46 = vshll.u32 %v5616_v25, 16 }
  0x99   : > { %v442_v17 = vor.u32 %v441_v58, %v437_v51  ;;  %v1101_v51 = vshll.u32 %v5608_v2, 16  ;;  %v213_v58 = vld [vmem:[#allocation2 + $0x3c] sm:$0xf] }
  0x9a   : > { %4598 = vmatpush3.bf16.msra.mxu1 %v5023_v11  ;;  %v1073_v35 = vsel %vm411_vm0, %v1068_v5, %v1072_v50  ;;  %v1091_v11 = vrot.slane %v1089_v59, 1  ;;  %v5029_v59 = vld [vmem:[#allocation2 + $0x38] ss:$0 sps:$4 sm:$0x11]   ;;  %v1080_v50 = vor.u32 %v1079_v39, %v1075_v20  ;;  %v453_v52 = vrot.slane %v451_v46, 1 }
  0x9b   : > { %4599 = vmatprep.subr.bf16.mxu1 %v5030_v27  ;;  %v447_v33 = vsel %vm411_vm0, %v442_v17, %v446_v8  ;;  %v458_v24 = vrot.slane %v456_v34, 1  ;;  %v1103_v0 = vrot.slane %v1101_v51, 1  ;;  %v1106_v5 = vshll.u32 %v5489_v42, 16  ;;  %v5052_v42 = vld [vmem:[#allocation4 + $0x1c0] sm:$0xff]   ;;  %v808_v51 = vld [vmem:[#allocation2 + $0xa8] sm:$0xf] }
  0x9c   : > { %v468_v9 = vshll.u32 %v5029_v59, 16  ;;  %v1092_v39 = vor.u32 %v1091_v11, %v1087_v15  ;;  %v5652_v34 = vld [vmem:[#allocation2 + $0x44] ss:$0 sps:$4 sm:$0x11]   ;;  %4411 = vmatprep.subr.bf16.mxu0 %v5052_v42 }
  0x9d   : > { %2010 = vmatmul.mubr.bf16.gmra.mrb[20].mxu1 %v5579_v13  ;;  %v5629_v13 = vcombine.low %v802_v3, %v5499_v57  ;;  %v5636_v57 = vld [vmem:[#allocation2 + $0x40] sm:$0xf]  ;;  %v454_v3 = vor.u32 %v453_v52, %v449_v45  ;;  %v1104_v20 = vor.u32 %v1103_v0, %v1099_v32  ;;  %v1108_v21 = vrot.slane %v1106_v5, 1  ;;  %v5659_v32 = vld [vmem:[#allocation2 + $0x4c] sm:$0xf] }
  0x9e   : > { %1576 = vmatmul.mubr.bf16.gmra.mrb[20].mxu0 %v5570_v54  ;;  %v212_v54 = vld [vmem:[#allocation2 + $0x34] sm:$0xf]  ;;  %2017 = vmatprep.mubr.bf16.mxu1 %v447_v33  ;;  %v5639_v17 = vcombine.low %v213_v58, %v5636_v57  ;;  %v1118_v45 = vshll.u32 %v5502_v63, 16  ;;  %v470_v46 = vrot.slane %v468_v9, 1  ;;  %v480_v58 = vshll.u32 %v5652_v34, 16 }
  0x9f   : > { %1583 = vmatprep.mubr.bf16.mxu0 %v1073_v35  ;;  %v5625_v47 = vcombine.low %v211_v29, %v212_v54  ;;  %4600 = vmatpush3.bf16.msra.mxu1 %v5030_v27  ;;  %v1085_v27 = vsel %vm411_vm0, %v1080_v50, %v1084_v40  ;;  %v1111_v4 = vshrl.u32 %v5629_v13, 16  ;;  %v1113_v23 = vshll.u32 %v5629_v13, 16  ;;  %v5045_v35 = vld [vmem:[#allocation4 + $0xa8] sm:$0xff]   ;;  %v5054_v50 = vld [vmem:[#allocation4 + $0xb0] sm:$0xff]   ;;  %v810_v0 = vld [vmem:[#allocation2 + $0xb4] sm:$0xf] }
  0xa0   : > { %4601 = vmatprep.subr.bf16.mxu1 %v5035_v43  ;;  %v5645_v29 = vcombine.low %v804_v49, %v5505_v1  ;;  %v806_v54 = vld [vmem:[#allocation2 + $0x9c] sm:$0xf]  ;;  %v459_v33 = vsel %vm411_vm0, %v454_v3, %v458_v24  ;;  %v5650_v40 = vsel %vm411_vm0, %v1104_v20, %v1108_v21  ;;  %v475_v59 = vshll.u32 %v5639_v17, 16 }
  0xa1   : > { %v461_v55 = vshrl.u32 %v5625_v47, 16  ;;  %v463_v19 = vshll.u32 %v5625_v47, 16  ;;  %v5657_v15 = vcombine.low %v806_v54, %v5517_v30  ;;  %v1120_v11 = vrot.slane %v1118_v45, 1  ;;  %v217_v54 = vld [vmem:[#allocation2 + $0x54] sm:$0xf] }
  0xa2   : > { %v1123_v49 = vshrl.u32 %v5645_v29, 16  ;;  %v1125_v63 = vshll.u32 %v5645_v29, 16  ;;  %v473_v24 = vshrl.u32 %v5639_v17, 16  ;;  %v1130_v30 = vshll.u32 %v5509_v12, 16 }
  0xa3   : > { %v465_v8 = vrot.slane %v463_v19, 1  ;;  %4602 = vmatpush3.bf16.msra.mxu1 %v5035_v43  ;;  %v1115_v43 = vrot.slane %v1113_v23, 1  ;;  %v477_v19 = vrot.slane %v475_v59, 1  ;;  %v1137_v9 = vshll.u32 %v5657_v15, 16 }
  0xa4   : > { %4603 = vmatprep.subr.bf16.mxu1 %v5040_v7  ;;  %v1132_v3 = vrot.slane %v1130_v30, 1  ;;  %v5678_v12 = vcombine.low %v808_v51, %v5524_v44  ;;  %v1142_v21 = vshll.u32 %v5521_v37, 16 }
  0xa5   : > { %2018 = vmatmul.mubr.bf16.gmra.mrb[24].mxu1 %v5592_v41  ;;  %v466_v1 = vor.u32 %v465_v8, %v461_v55  ;;  %v1116_v41 = vor.u32 %v1115_v43, %v1111_v4  ;;  %v1135_v8 = vshrl.u32 %v5657_v15, 16  ;;  %v812_v4 = vld [vmem:[#allocation2 + $0xc0] sm:$0xf]  ;;  %v1139_v23 = vrot.slane %v1137_v9, 1 }
  0xa6   : > { %1584 = vmatmul.mubr.bf16.gmra.mrb[24].mxu0 %v5589_v26  ;;  %v1096_v26 = vrot.slane %v1094_v28, 1  ;;  %2025 = vmatprep.mubr.bf16.mxu1 %v459_v33  ;;  %v215_v28 = vld [vmem:[#allocation2 + $0x48] sm:$0xf]  ;;  %v1144_v44 = vrot.slane %v1142_v21, 1  ;;  %v478_v33 = vor.u32 %v477_v19, %v473_v24  ;;  %v1147_v43 = vshrl.u32 %v5678_v12, 16 }
  0xa7   : > { %1591 = vmatprep.mubr.bf16.mxu0 %v1085_v27  ;;  %4604 = vmatpush3.bf16.msra.mxu1 %v5040_v7  ;;  %v5666_v7 = vsel %vm411_vm0, %v1116_v41, %v1120_v11  ;;  %v471_v55 = vsel %vm411_vm0, %v466_v1, %v470_v46  ;;  %v1127_v27 = vrot.slane %v1125_v63, 1  ;;  %v5673_v5 = vcombine.low %v215_v28, %v5659_v32 }
  0xa8   : > { %4605 = vmatprep.subr.bf16.mxu1 %v5045_v35  ;;  %v1097_v52 = vsel %vm411_vm0, %v1092_v39, %v1096_v26  ;;  %v482_v39 = vrot.slane %v480_v58, 1  ;;  %v5691_v26 = vld [vmem:[#allocation2 + $0x58] sm:$0xf]  ;;  %v1149_v45 = vshll.u32 %v5678_v12, 16  ;;  %v5697_v1 = vcombine.low %v812_v4, %v5544_v14 }
  0xa9   : > { %v1128_v20 = vor.u32 %v1127_v27, %v1123_v49  ;;  %v487_v37 = vshll.u32 %v5673_v5, 16  ;;  %v485_v41 = vshrl.u32 %v5673_v5, 16  ;;  %v5705_v11 = vcombine.low %v217_v54, %v5691_v26 }
  0xaa   : > { %v1151_v28 = vrot.slane %v1149_v45, 1  ;;  %v483_v63 = vsel %vm411_vm0, %v478_v33, %v482_v39 }
  0xab   : > { %4606 = vmatpush3.bf16.msra.mxu1 %v5045_v35  ;;  %v5685_v35 = vcombine.low %v810_v0, %v5538_v61  ;;  %v5688_v42 = vsel %vm411_vm0, %v1128_v20, %v1132_v3  ;;  %v1154_v61 = vshll.u32 %v5528_v48, 16  ;;  %v489_v48 = vrot.slane %v487_v37, 1 }
  0xac   : > { %4607 = vmatprep.subr.bf16.mxu1 %v5054_v50  ;;  %v1152_v51 = vor.u32 %v1151_v28, %v1147_v43  ;;  %v1173_v3 = vshll.u32 %v5697_v1, 16  ;;  %v497_v21 = vshrl.u32 %v5705_v11, 16 }
  0xad   : > { %2026 = vmatmul.mubr.bf16.gmra.mrb[28].mxu1 %v5616_v25  ;;  %v1140_v25 = vor.u32 %v1139_v23, %v1135_v8  ;;  %v1156_v49 = vrot.slane %v1154_v61, 1  ;;  %v1159_v14 = vshrl.u32 %v5685_v35, 16  ;;  %v490_v27 = vor.u32 %v489_v48, %v485_v41  ;;  %v5722_v8 = vld [vmem:[#allocation2 + $0x64] sm:$0xf]  ;;  %v5743_v61 = vld [vmem:[#allocation2 + $0x70] sm:$0xf] }
  0xae   : > { %1592 = vmatmul.mubr.bf16.gmra.mrb[28].mxu0 %v5603_v60  ;;  %v5682_v60 = vld [vmem:[#allocation2 + $0x50] ss:$0 sps:$4 sm:$0x11]   ;;  %2033 = vmatprep.mubr.bf16.mxu1 %v471_v55  ;;  %v5714_v55 = vld [vmem:[#allocation2 + $0x5c] ss:$0 sps:$4 sm:$0x11]  }
  0xaf   : > { %1599 = vmatprep.mubr.bf16.mxu0 %v1097_v52  ;;  %4608 = vmatpush3.bf16.msra.mxu1 %v5054_v50  ;;  %v492_v46 = vshll.u32 %v5682_v60, 16  ;;  %v5701_v59 = vsel %vm411_vm0, %v1140_v25, %v1144_v44  ;;  %v1161_v50 = vshll.u32 %v5685_v35, 16  ;;  %v1166_v52 = vshll.u32 %v5540_v6, 16  ;;  %v219_v6 = vld [vmem:[#allocation2 + $0x60] sm:$0xf] }
  0xb0   : > { %v5718_v19 = vsel %vm411_vm0, %v1152_v51, %v1156_v49  ;;  %v1175_v20 = vrot.slane %v1173_v3, 1  ;;  %v504_v4 = vshll.u32 %v5714_v55, 16  ;;  %v5733_v33 = vcombine.low %v219_v6, %v5722_v8  ;;  %v221_v25 = vld [vmem:[#allocation2 + $0x6c] sm:$0xf]  ;;  %v5757_v51 = vld [vmem:[#allocation2 + $0x7c] sm:$0xf] }
  0xb1   : > { %v1163_v24 = vrot.slane %v1161_v50, 1  ;;  %v494_v30 = vrot.slane %v492_v46, 1  ;;  %v1168_v58 = vrot.slane %v1166_v52, 1  ;;  %v5750_v28 = vcombine.low %v221_v25, %v5743_v61  ;;  %v5752_v49 = vld [vmem:[#allocation2 + $0x74] ss:$0 sps:$4 sm:$0x11]  }
  0xb2   : > { %v511_v45 = vshll.u32 %v5733_v33, 16  ;;  %v509_v46 = vshrl.u32 %v5733_v33, 16  ;;  %v528_v52 = vshll.u32 %v5752_v49, 16 }
  0xb3   : > { %v1164_v0 = vor.u32 %v1163_v24, %v1159_v14  ;;  %v495_v54 = vsel %vm411_vm0, %v490_v27, %v494_v30  ;;  %v523_v50 = vshll.u32 %v5750_v28, 16  ;;  %v1259_v30 = vrot.slane %v5560_v36, 1 }
  0xb4   : > { %v1262_v36 = vrot.slane %v5572_v10, 1  ;;  %v530_v6 = vrot.slane %v528_v52, 1  ;;  %v830_v52 = vld [vmem:[#allocation2 + $0xc] sm:$0xe] }
  0xb5   : > { %2034 = vmatmul.mubr.bf16.gmra.mrb[32].mxu1 %v5625_v47  ;;  %v1178_v47 = vshll.u32 %v5548_v22, 16  ;;  %v5726_v9 = vsel %vm411_vm0, %v1164_v0, %v1168_v58  ;;  %v5736_v22 = vld [vmem:[#allocation2 + $0x68] ss:$0 sps:$4 sm:$0x11]   ;;  %v521_v58 = vshrl.u32 %v5750_v28, 16  ;;  %v525_v27 = vrot.slane %v523_v50, 1 }
  0xb6   : > { %1600 = vmatmul.mubr.bf16.gmra.mrb[32].mxu0 %v5563_v38  ;;  %2041 = vmatprep.mubr.bf16.mxu1 %v483_v63  ;;  %v499_v38 = vshll.u32 %v5705_v11, 16  ;;  %v516_v41 = vshll.u32 %v5736_v22, 16  ;;  %v223_v63 = vld [vmem:[#allocation2 + $0x78] sm:$0xf] }
  0xb7   : > { %1607 = vmatprep.mubr.bf16.mxu0 %v5650_v40  ;;  %v1171_v40 = vshrl.u32 %v5697_v1, 16  ;;  %v1180_v23 = vrot.slane %v1178_v47, 1  ;;  %v5768_v0 = vld [vmem:[#allocation2 + $0x80] ss:$0 sps:$4 sm:$0x11]  }
  0xb8   : > { %v501_v44 = vrot.slane %v499_v38, 1  ;;  %v518_v14 = vrot.slane %v516_v41, 1  ;;  %v5763_v38 = vcombine.low %v223_v63, %v5757_v51 }
  0xb9   : > { %v1176_v39 = vor.u32 %v1175_v20, %v1171_v40 }
  0xba   : > { %v502_v43 = vor.u32 %v501_v44, %v497_v21  ;;  %v535_v47 = vshll.u32 %v5763_v38, 16  ;;  %v526_v21 = vor.u32 %v525_v27, %v521_v58  ;;  %v540_v44 = vshll.u32 %v5768_v0, 16 }
  0xbb   : > { %v5740_v37 = vsel %vm411_vm0, %v1176_v39, %v1180_v23  ;;  %v225_v23 = vld [vmem:[#allocation2 + $0x84] sm:$0xf] }
  0xbc   : > { %v537_v39 = vrot.slane %v535_v47, 1 }
  0xbd   : > { %2042 = vmatmul.mubr.bf16.gmra.mrb[36].mxu1 %v5639_v17  ;;  %v513_v17 = vrot.slane %v511_v45, 1 }
  0xbe   : > { %1608 = vmatmul.mubr.bf16.gmra.mrb[36].mxu0 %v5608_v2  ;;  %2049 = vmatprep.mubr.bf16.mxu1 %v495_v54  ;;  %v506_v2 = vrot.slane %v504_v4, 1  ;;  %v836_v4 = vld [vmem:[#allocation2 + $0x54] sm:$0xe]  ;;  %v533_v54 = vshrl.u32 %v5763_v38, 16 }
  0xbf   : > { %1615 = vmatprep.mubr.bf16.mxu0 %v5666_v7  ;;  %v514_v48 = vor.u32 %v513_v17, %v509_v46  ;;  %v3839_v10 = vcombine.low %v836_v4, %v5581_v18  ;;  %v1268_v18 = vrot.slane %v5605_v62, 1  ;;  %v5799_v17 = vld [vmem:[#allocation2 + $0x8c] ss:$0 sps:$4 sm:$0x11]   ;;  %v227_v62 = vld [vmem:[#allocation2 + $0x90] sm:$0xf] }
  0xc0   : > { %v507_v7 = vsel %vm411_vm0, %v502_v43, %v506_v2  ;;  %v837_v43 = vld [vmem:[#allocation2 + $0x60] sm:$0xe]  ;;  %v531_v2 = vsel %vm411_vm0, %v526_v21, %v530_v6 }
  0xc1   : > { %v1264_v25 = vrot.slane %v3839_v10, 1  ;;  %v3840_v46 = vcombine.low %v837_v43, %v5599_v56  ;;  %v5805_v56 = vld [vmem:[#allocation4 + $0x200] sm:$0xff]   ;;  %v231_v43 = vld [vmem:[#allocation2 + $0xa8] sm:$0xf] }
  0xc2   : > { %v5155_v10 = vld [vmem:[#allocation2 + $0x14] ss:$0 sps:$4 sm:$0x11]  }
  0xc3   : > { %v1267_v41 = vrot.slane %v3840_v46, 1 }
  0xc5   : > { %2050 = vmatmul.mubr.bf16.gmra.mrb[40].mxu1 %v5673_v5  ;;  %v519_v5 = vsel %vm411_vm0, %v514_v48, %v518_v14  ;;  %v5803_v48 = vsel %vm668_vm1, %v1267_v41, %v1268_v18  ;;  %v5156_v18 = vld [vmem:[#allocation2 + $0x1c] sm:$0xf] }
  0xc6   : > { %1616 = vmatmul.mubr.bf16.gmra.mrb[40].mxu0 %v5629_v13  ;;  %2057 = vmatprep.mubr.bf16.mxu1 %v507_v7  ;;  %v834_v13 = vld [vmem:[#allocation2 + $0x3c] sm:$0xe]  ;;  %v538_v7 = vor.u32 %v537_v39, %v533_v54  ;;  %v832_v54 = vld [vmem:[#allocation2 + $0x24] sm:$0xe]  ;;  %v257_v39 = vld [vmem:[#allocation2 + $0x48] sm:$0xe] }
  0xc7   : > { %1623 = vmatprep.mubr.bf16.mxu0 %v5688_v42  ;;  %v3837_v24 = vcombine.low %v834_v13, %v5556_v31  ;;  %v835_v42 = vld [vmem:[#allocation2 + $0x48] sm:$0xe]  ;;  %v552_v13 = vshll.u32 %v5799_v17, 16 }
  0xc8   : > { %v3838_v31 = vcombine.low %v835_v42, %v5567_v53  ;;  %v229_v42 = vld [vmem:[#allocation2 + $0x9c] sm:$0xf] }
  0xc9   : > { %v1258_v40 = vrot.slane %v3837_v24, 1 }
  0xca   : > { %v1261_v20 = vrot.slane %v3838_v31, 1 }
  0xcb   : > { %v5775_v3 = vsel %vm668_vm1, %v1258_v40, %v1259_v30  ;;  %v5819_v30 = vld [vmem:[#allocation2 + $0x98] ss:$0 sps:$4 sm:$0x11]   ;;  %v554_v40 = vrot.slane %v552_v13, 1 }
  0xcc   : > { %v5781_v53 = vsel %vm668_vm1, %v1261_v20, %v1262_v36  ;;  %v685_v20 = vrot.slane %v5652_v34, 1  ;;  %v3791_v34 = vcombine.low %v257_v39, %v5659_v32 }
  0xcd   : > { %2058 = vmatmul.mubr.bf16.gmra.mrb[44].mxu1 %v5705_v11  ;;  %v1265_v11 = vrot.slane %v5586_v16, 1 }
  0xce   : > { %1624 = vmatmul.mubr.bf16.gmra.mrb[44].mxu0 %v5645_v29  ;;  %v5071_v29 = vld [vmem:[#allocation4 + $0xb8] sm:$0xff]   ;;  %2065 = vmatprep.mubr.bf16.mxu1 %v519_v5  ;;  %v5154_v5 = vld [vmem:[#allocation2 + $0x10] sm:$0xf] }
  0xcf   : > { %1631 = vmatprep.mubr.bf16.mxu0 %v5701_v59  ;;  %4609 = vmatprep.subr.bf16.mxu1 %v5071_v29  ;;  %v5778_v59 = vld [vmem:[#allocation2 + $0x88] sm:$0xf]  ;;  %v5796_v16 = vsel %vm668_vm1, %v1264_v25, %v1265_v11  ;;  %v3833_v58 = vcombine.low %v830_v52, %v5154_v5  ;;  %v1247_v11 = vrot.slane %v5155_v10, 1  ;;  %v5835_v25 = vld [vmem:[#allocation2 + $0xa4] ss:$0 sps:$4 sm:$0x11]  }
  0xd0   : > { %4610 = vmatpush3.bf16.msra.mxu1 %v5071_v29  ;;  %v5790_v45 = vcombine.low %v225_v23, %v5778_v59  ;;  %v256_v29 = vld [vmem:[#allocation2 + $0x3c] sm:$0xe]  ;;  %v576_v13 = vshll.u32 %v5835_v25, 16  ;;  %v261_v10 = vld [vmem:[#allocation2 + $0x78] sm:$0xe] }
  0xd1   : > { %4643 = vmatprep.subr.bf16.mxu1 %v5805_v56  ;;  %v1246_v6 = vrot.slane %v3833_v58, 1  ;;  %v3790_v47 = vcombine.low %v256_v29, %v5636_v57  ;;  %v833_v29 = vld [vmem:[#allocation2 + $0x30] sm:$0xe]  ;;  %v3795_v39 = vcombine.low %v261_v10, %v5757_v51  ;;  %v703_v51 = vrot.slane %v5799_v17, 1 }
  0xd2   : > { %v547_v63 = vshll.u32 %v5790_v45, 16 }
  0xd4   : > { %v549_v50 = vrot.slane %v547_v63, 1  ;;  %v5157_v63 = vld [vmem:[#allocation2 + $0x28] sm:$0xf] }
  0xd5   : > { %2066 = vmatmul.mubr.bf16.gmra.mrb[48].mxu1 %v5733_v33  ;;  %v545_v33 = vshrl.u32 %v5790_v45, 16 }
  0xd6   : > { %1632 = vmatmul.mubr.bf16.gmra.mrb[48].mxu0 %v5657_v15  ;;  %2073 = vmatprep.mubr.bf16.mxu1 %v531_v2  ;;  %v542_v15 = vrot.slane %v540_v44, 1  ;;  %v684_v44 = vrot.slane %v3790_v47, 1 }
  0xd7   : > { %1639 = vmatprep.mubr.bf16.mxu0 %v5718_v19  ;;  %v5807_v19 = vld [vmem:[#allocation2 + $0x94] sm:$0xf]  ;;  %v550_v27 = vor.u32 %v549_v50, %v545_v33  ;;  %v5844_v33 = vld [vmem:[#allocation2 + $0xac] sm:$0xf] }
  0xd8   : > { %v543_v14 = vsel %vm411_vm0, %v538_v7, %v542_v15  ;;  %v5815_v24 = vcombine.low %v227_v62, %v5807_v19  ;;  %v5841_v2 = vsel %vm668_vm1, %v684_v44, %v685_v20  ;;  %v687_v7 = vrot.slane %v3791_v34, 1  ;;  %v258_v15 = vld [vmem:[#allocation2 + $0x54] sm:$0xe]  ;;  %v5159_v20 = vld [vmem:[#allocation2 + $0x2c] ss:$0 sps:$4 sm:$0x11]  }
  0xd9   : > { %v555_v21 = vsel %vm411_vm0, %v550_v27, %v554_v40  ;;  %v3835_v62 = vcombine.low %v832_v54, %v5157_v63  ;;  %v3792_v32 = vcombine.low %v258_v15, %v5691_v26  ;;  %v694_v27 = vrot.slane %v5736_v22, 1 }
  0xda   : > { %v559_v31 = vshll.u32 %v5815_v24, 16  ;;  %v557_v4 = vshrl.u32 %v5815_v24, 16  ;;  %v697_v22 = vrot.slane %v5752_v49, 1 }
  0xdb   : > { %v690_v5 = vrot.slane %v3792_v32, 1 }
  0xdc   : > { %v561_v23 = vrot.slane %v559_v31, 1 }
  0xdd   : > { %2074 = vmatmul.mubr.bf16.gmra.mrb[52].mxu1 %v5750_v28  ;;  %v831_v28 = vld [vmem:[#allocation2 + $0x18] sm:$0xe] }
  0xde   : > { %1640 = vmatmul.mubr.bf16.gmra.mrb[52].mxu0 %v5678_v12  ;;  %2081 = vmatprep.mubr.bf16.mxu1 %v543_v14  ;;  %v5821_v12 = vld [vmem:[#allocation2 + $0xa0] sm:$0xf]  ;;  %v3834_v41 = vcombine.low %v831_v28, %v5156_v18 }
  0xdf   : > { %1647 = vmatprep.mubr.bf16.mxu0 %v5726_v9  ;;  %v5825_v36 = vcombine.low %v229_v42, %v5821_v12  ;;  %v564_v9 = vshll.u32 %v5819_v30, 16  ;;  %v259_v42 = vld [vmem:[#allocation2 + $0x60] sm:$0xe] }
  0xe0   : > { %v3793_v58 = vcombine.low %v259_v42, %v5722_v8  ;;  %v1249_v40 = vrot.slane %v3834_v41, 1  ;;  %v699_v41 = vrot.slane %v3795_v39, 1  ;;  %v706_v42 = vrot.slane %v5819_v30, 1  ;;  %v266_v39 = vld [vmem:[#allocation2 + $0xb4] sm:$0xe] }
  0xe1   : > { %v571_v57 = vshll.u32 %v5825_v36, 16  ;;  %v566_v46 = vrot.slane %v564_v9, 1  ;;  %v569_v14 = vshrl.u32 %v5825_v36, 16  ;;  %v260_v9 = vld [vmem:[#allocation2 + $0x6c] sm:$0xe] }
  0xe2   : > { %v693_v47 = vrot.slane %v3793_v58, 1  ;;  %v3794_v8 = vcombine.low %v260_v9, %v5743_v61  ;;  %v700_v61 = vrot.slane %v5768_v0, 1  ;;  %v5055_v0 = vld [vmem:[#allocation4 + $0x1c8] sm:$0xff]  }
  0xe3   : > { %v573_v50 = vrot.slane %v571_v57, 1  ;;  %v5160_v57 = vld [vmem:[#allocation2 + $0x34] sm:$0xf]  ;;  %v5161_v58 = vld [vmem:[#allocation2 + $0x38] ss:$0 sps:$4 sm:$0x11]  }
  0xe4   : > { %v5869_v54 = vsel %vm668_vm1, %v693_v47, %v694_v27  ;;  %v696_v44 = vrot.slane %v3794_v8, 1  ;;  %v3836_v34 = vcombine.low %v833_v29, %v5160_v57  ;;  %v5887_v32 = vsel %vm668_vm1, %v699_v41, %v700_v61  ;;  %v264_v29 = vld [vmem:[#allocation2 + $0x9c] sm:$0xe]  ;;  %v5084_v41 = vld [vmem:[#allocation2 + $0x20] ss:$0 sps:$4 sm:$0x11]  }
  0xe5   : > { %2082 = vmatmul.mubr.bf16.gmra.mrb[56].mxu1 %v5763_v38  ;;  %v1248_v38 = vsel %vm668_vm1, %v1246_v6, %v1247_v11  ;;  %v5858_v6 = vcombine.low %v231_v43, %v5844_v33  ;;  %v5866_v11 = vld [vmem:[#allocation2 + $0xb0] ss:$0 sps:$4 sm:$0x11]   ;;  %v262_v43 = vld [vmem:[#allocation2 + $0x84] sm:$0xe]  ;;  %v1256_v27 = vrot.slane %v5161_v58, 1  ;;  %v3798_v30 = vcombine.low %v264_v29, %v5821_v12 }
  0xe6   : > { %1648 = vmatmul.mubr.bf16.gmra.mrb[56].mxu0 %v5685_v35  ;;  %v688_v35 = vrot.slane %v5682_v60, 1  ;;  %2089 = vmatprep.mubr.bf16.mxu1 %v555_v21  ;;  %v691_v60 = vrot.slane %v5714_v55, 1  ;;  %v5158_v55 = vld [vmem:[#allocation2 + $0x20] ss:$0 sps:$4 sm:$0x11]   ;;  %v1253_v21 = vrot.slane %v5159_v20, 1  ;;  %v5878_v18 = vsel %vm668_vm1, %v696_v44, %v697_v22 }
  0xe7   : > { %1655 = vmatprep.mubr.bf16.mxu0 %v5740_v37  ;;  %v562_v37 = vor.u32 %v561_v23, %v557_v4  ;;  %v1250_v31 = vrot.slane %v5158_v55, 1  ;;  %v574_v4 = vor.u32 %v573_v50, %v569_v14  ;;  %v578_v23 = vrot.slane %v576_v13, 1  ;;  %v263_v14 = vld [vmem:[#allocation2 + $0x90] sm:$0xe]  ;;  %v5056_v50 = vld [vmem:[#allocation4 + $0x188] sm:$0xff]   ;;  %v5061_v55 = vld [vmem:[#allocation4 + $0x1d0] sm:$0xff]  }
  0xe8   : > { %v5851_v52 = vsel %vm668_vm1, %v687_v7, %v688_v35  ;;  %v5861_v28 = vsel %vm668_vm1, %v690_v5, %v691_v60  ;;  %v583_v35 = vshll.u32 %v5858_v6, 16  ;;  %v3796_v7 = vcombine.low %v262_v43, %v5778_v59  ;;  %v5076_v22 = vld [vmem:[#allocation2 + $0xbc] ss:$0 sps:$4 sm:$0x11]   ;;  %v5063_v12 = vld [vmem:[#allocation4 + $0x1d8] sm:$0xff]   ;;  %v5069_v43 = vld [vmem:[#allocation4 + $0x1e0] sm:$0xff]  }
  0xe9   : > { %v567_v26 = vsel %vm411_vm0, %v562_v37, %v566_v46  ;;  %v1251_v49 = vsel %vm668_vm1, %v1249_v40, %v1250_v31  ;;  %v233_v37 = vld [vmem:[#allocation2 + $0xb4] sm:$0xf]  ;;  %v5875_v46 = vld [vmem:[#allocation2 + $0xb8] sm:$0xf]  ;;  %v581_v63 = vshrl.u32 %v5858_v6, 16  ;;  %v3797_v17 = vcombine.low %v263_v14, %v5807_v19 }
  0xea   : > { %v702_v60 = vrot.slane %v3796_v7, 1  ;;  %v585_v13 = vrot.slane %v583_v35, 1  ;;  %v5890_v59 = vcombine.low %v233_v37, %v5875_v46  ;;  %v1255_v5 = vrot.slane %v3836_v34, 1  ;;  %v2293_v19 = vld [vmem:[#allocation2 + $0x1c] sm:$0xf]  ;;  %v5064_v34 = vld [vmem:[#allocation4 + $0x198] sm:$0xff]  }
  0xeb   : > { %v705_v31 = vrot.slane %v3797_v17, 1  ;;  %v709_v47 = vrot.slane %v5835_v25, 1  ;;  %v712_v44 = vrot.slane %v5866_v11, 1  ;;  %v715_v57 = vrot.slane %v5076_v22, 1  ;;  %v5072_v58 = vld [vmem:[#allocation4 + $0x1e8] sm:$0xff]  }
  0xec   : > { %v5895_v40 = vsel %vm668_vm1, %v702_v60, %v703_v51  ;;  %v586_v8 = vor.u32 %v585_v13, %v581_v63  ;;  %v600_v37 = vshll.u32 %v5076_v22, 16  ;;  %v5070_v60 = vld [vmem:[#allocation4 + $0x1a0] sm:$0xff]   ;;  %v251_v13 = vld [vmem:[#allocation2] sm:$0xe] }
  0xed   : > { %2090 = vmatmul.mubr.bf16.gmra.mrb[60].mxu1 %v5790_v45  ;;  %v5053_v45 = vld [vmem:[#allocation4 + $0x180] sm:$0xff]   ;;  %v5902_v20 = vsel %vm668_vm1, %v705_v31, %v706_v42 }
  0xee   : > { %1656 = vmatmul.mubr.bf16.gmra.mrb[60].mxu0 %v5697_v1  ;;  %v1252_v1 = vrot.slane %v3835_v62, 1  ;;  %2097 = vmatprep.mubr.bf16.mxu1 %v567_v26  ;;  %v588_v62 = vshll.u32 %v5866_v11, 16  ;;  %v2292_v26 = vld [vmem:[#allocation2 + $0x18] sm:$0xf] }
  0xef   : > { %4563 = vmatprep.mubr.bf16.mxu0 %v1248_v38  ;;  %v579_v38 = vsel %vm411_vm0, %v574_v4, %v578_v23  ;;  %v5062_v4 = vld [vmem:[#allocation4 + $0x190] sm:$0xff]   ;;  %v708_v23 = vrot.slane %v3798_v30, 1  ;;  %v5907_v25 = vcombine.low %v2292_v26, %v2293_v19 }
  0xf0   : > { %v1254_v15 = vsel %vm668_vm1, %v1252_v1, %v1253_v21  ;;  %v590_v9 = vrot.slane %v588_v62, 1  ;;  %v595_v1 = vshll.u32 %v5890_v59, 16  ;;  %v265_v21 = vld [vmem:[#allocation2 + $0xa8] sm:$0xe]  ;;  %v2340_v62 = vld [vmem:[#allocation2 + $0x18] sm:$0xe] }
  0xf1   : > { %v3799_v10 = vcombine.low %v265_v21, %v5844_v33  ;;  %v5910_v61 = vsel %vm668_vm1, %v708_v23, %v709_v47  ;;  %v593_v33 = vshrl.u32 %v5890_v59, 16  ;;  %v3929_v17 = vcombine.low %v2340_v62, %v2293_v19  ;;  %v5162_v47 = vld [vmem:[#allocation2 + $0x4] sm:$0xf]  ;;  %v2296_v23 = vld [vmem:[#allocation2 + $0x30] sm:$0xf] }
  0xf2   : > { %v591_v35 = vsel %vm411_vm0, %v586_v8, %v590_v9  ;;  %v597_v11 = vrot.slane %v595_v1, 1  ;;  %v3785_v19 = vcombine.low %v251_v13, %v5162_v47  ;;  %v5073_v8 = vld [vmem:[#allocation4 + $0x1a8] sm:$0xff]   ;;  %v5078_v21 = vld [vmem:[#allocation4 + $0x1f0] sm:$0xff]  }
  0xf3   : > { %v2756_v29 = vrot.slane %v3929_v17, 1  ;;  %v2298_v13 = vld [vmem:[#allocation2 + $0x3c] sm:$0xf]  ;;  %v5955_v17 = vld [vmem:[#allocation2 + $0x40] sm:$0xf] }
  0xf4   : > { %v598_v14 = vor.u32 %v597_v11, %v593_v33  ;;  %v5164_v11 = vld [vmem:[#allocation2 + $0x10] sm:$0xf] }
  0xf5   : > { %2098 = vmatmul.mubr.bf16.gmra.mrb[64].mxu1 %v5815_v24  ;;  %v1257_v24 = vsel %vm668_vm1, %v1255_v5, %v1256_v27  ;;  %v2501_v27 = vshrl.u32 %v5907_v25, 16 }
  0xf6   : > { %4564 = vmatmul.mubr.bf16.vlgmr.msra.gmra.mrb[64].mxu0 %v1251_v49  ;;  %2105 = vmatprep.mubr.bf16.mxu1 %v579_v38  ;;  %v711_v49 = vrot.slane %v3799_v10, 1  ;;  %v2295_v38 = vld [vmem:[#allocation2 + $0x28] sm:$0xf]  ;;  %v5941_v10 = vld [vmem:[#allocation2 + $0x34] sm:$0xf] }
  0xf7   : > { %4412 = vmatpush3.bf16.msra.mxu0 %v5053_v45  ;;  %4567 = vmatprep.mubr.bf16.mxu0 %v1254_v15  ;;  %v3800_v45 = vcombine.low %v266_v39, %v5875_v46  ;;  %v2503_v46 = vshll.u32 %v5907_v25, 16  ;;  %v5921_v15 = vld [vmem:[#allocation2 + $0x2c] ss:$0 sps:$4 sm:$0x11]   ;;  %v252_v39 = vld [vmem:[#allocation2 + $0xc] sm:$0xe]  ;;  %v5947_v33 = vcombine.low %v2296_v23, %v5941_v10 }
  0xf8   : > { %4413 = vmatprep.subr.bf16.mxu0 %v5055_v0  ;;  %v5917_v7 = vsel %vm668_vm1, %v711_v49, %v712_v44  ;;  %v2294_v0 = vld [vmem:[#allocation2 + $0x24] sm:$0xf]  ;;  %v2760_v5 = vrot.slane %v5921_v15, 1  ;;  %v669_v44 = vrot.slane %v3785_v19, 1 }
  0xf9   : > { %v714_v51 = vrot.slane %v3800_v45, 1  ;;  %v2505_v26 = vrot.slane %v2503_v46, 1  ;;  %v5928_v31 = vcombine.low %v2294_v0, %v2295_v38  ;;  %v5079_v49 = vld [vmem:[#allocation4 + $0x1b0] sm:$0xff]   ;;  %v253_v45 = vld [vmem:[#allocation2 + $0x18] sm:$0xe]  ;;  %v5081_v0 = vld [vmem:[#allocation4 + $0x1b8] sm:$0xff]  }
  0xfb   : > { %4414 = vmatpush3.bf16.msra.mxu0 %v5056_v50  ;;  %v5924_v63 = vsel %vm668_vm1, %v714_v51, %v715_v57  ;;  %v602_v50 = vrot.slane %v600_v37, 1  ;;  %v2513_v57 = vshrl.u32 %v5928_v31, 16  ;;  %v3786_v37 = vcombine.low %v252_v39, %v5164_v11  ;;  %v5165_v51 = vld [vmem:[#allocation2 + $0x1c] sm:$0xf] }
  0xfc   : > { %4415 = vmatprep.subr.bf16.mxu0 %v5061_v55  ;;  %v2508_v55 = vshll.u32 %v5084_v41, 16  ;;  %v3787_v46 = vcombine.low %v253_v45, %v5165_v51 }
  0xfd   : > { %2106 = vmatmul.mubr.bf16.gmra.mrb[68].mxu1 %v5825_v36  ;;  %v2757_v36 = vrot.slane %v5084_v41, 1  ;;  %v603_v30 = vsel %vm411_vm0, %v598_v14, %v602_v50  ;;  %v672_v14 = vrot.slane %v3786_v37, 1 }
  0xfe   : > { %4568 = vmatmul.mubr.bf16.gmra.mrb[68].mxu0 %v1257_v24  ;;  %2113 = vmatprep.mubr.bf16.mxu1 %v591_v35  ;;  %v2506_v24 = vor.u32 %v2505_v26, %v2501_v27  ;;  %v255_v27 = vld [vmem:[#allocation2 + $0x30] sm:$0xe]  ;;  %v2525_v26 = vshrl.u32 %v5947_v33, 16 }
  0xff   : > { %4416 = vmatpush3.bf16.msra.mxu0 %v5062_v4  ;;  %4571 = vmatprep.mubr.bf16.mxu0 %v5775_v3  ;;  %v2341_v3 = vld [vmem:[#allocation2 + $0x24] sm:$0xe]  ;;  %v5934_v22 = vsel %vm668_vm1, %v2756_v29, %v2757_v36  ;;  %v2515_v4 = vshll.u32 %v5928_v31, 16  ;;  %v675_v36 = vrot.slane %v3787_v46, 1  ;;  %v5101_v46 = vld [vmem:[#allocation4 + $0x218] sm:$0xff]  }
 0x100   : > { %4417 = vmatprep.subr.bf16.mxu0 %v5063_v12  ;;  %v3930_v42 = vcombine.low %v2341_v3, %v2295_v38  ;;  %v254_v38 = vld [vmem:[#allocation2 + $0x24] sm:$0xe]  ;;  %v5952_v3 = vld [vmem:[#allocation2 + $0x38] ss:$0 sps:$4 sm:$0x11]  }
 0x101   : > { %v2517_v35 = vrot.slane %v2515_v4, 1 }
 0x102   : > { %v2759_v9 = vrot.slane %v3930_v42, 1  ;;  %v5167_v42 = vld [vmem:[#allocation2 + $0x20] ss:$0 sps:$4 sm:$0x11]  }
 0x103   : > { %4418 = vmatpush3.bf16.msra.mxu0 %v5064_v34  ;;  %v2518_v62 = vor.u32 %v2517_v35, %v2513_v57  ;;  %v5171_v57 = vld [vmem:[#allocation2 + $0x38] ss:$0 sps:$4 sm:$0x11]  }
 0x104   : > { %4419 = vmatprep.subr.bf16.mxu0 %v5069_v43  ;;  %v5937_v1 = vsel %vm668_vm1, %v2759_v9, %v2760_v5  ;;  %v2520_v43 = vshll.u32 %v5921_v15, 16  ;;  %v676_v5 = vrot.slane %v5167_v42, 1  ;;  %v2532_v9 = vshll.u32 %v5952_v3, 16 }
 0x105   : > { %2114 = vmatmul.mubr.bf16.gmra.mrb[72].mxu1 %v5858_v6  ;;  %v5080_v6 = vld [vmem:[#allocation4 + $0x1f8] sm:$0xff]  }
 0x106   : > { %4572 = vmatmul.mubr.bf16.gmra.mrb[72].mxu0 %v5781_v53  ;;  %v2510_v53 = vrot.slane %v2508_v55, 1  ;;  %2121 = vmatprep.mubr.bf16.mxu1 %v603_v30  ;;  %v2522_v15 = vrot.slane %v2520_v43, 1  ;;  %v5961_v30 = vcombine.low %v2298_v13, %v5955_v17  ;;  %v677_v19 = vsel %vm668_vm1, %v675_v36, %v676_v5  ;;  %v5111_v5 = vld [vmem:[#allocation4 + $0x228] sm:$0xff]  }
 0x107   : > { %4420 = vmatpush3.bf16.msra.mxu0 %v5070_v60  ;;  %4575 = vmatprep.mubr.bf16.mxu0 %v5796_v16  ;;  %v5163_v16 = vld [vmem:[#allocation2 + $0x8] ss:$0 sps:$4 sm:$0x11]   ;;  %v2527_v60 = vshll.u32 %v5947_v33, 16 }
 0x108   : > { %4421 = vmatprep.subr.bf16.mxu0 %v5072_v58  ;;  %v670_v12 = vrot.slane %v5163_v16, 1  ;;  %v2511_v34 = vsel %vm411_vm0, %v2506_v24, %v2510_v53  ;;  %v5168_v58 = vld [vmem:[#allocation2 + $0x28] sm:$0xf]  ;;  %v2523_v55 = vsel %vm411_vm0, %v2518_v62, %v2522_v15  ;;  %v5170_v53 = vld [vmem:[#allocation2 + $0x2c] ss:$0 sps:$4 sm:$0x11]  }
 0x109   : > { %v2529_v29 = vrot.slane %v2527_v60, 1  ;;  %v679_v4 = vrot.slane %v5170_v53, 1  ;;  %v2534_v16 = vrot.slane %v2532_v9, 1  ;;  %v2539_v39 = vshll.u32 %v5961_v30, 16  ;;  %v2302_v60 = vld [vmem:[#allocation2 + $0x54] sm:$0xf] }
 0x10a   : > { %v671_v41 = vsel %vm668_vm1, %v669_v44, %v670_v12  ;;  %v5966_v12 = vld [vmem:[#allocation2 + $0x44] ss:$0 sps:$4 sm:$0x11]   ;;  %v2537_v35 = vshrl.u32 %v5961_v30, 16 }
 0x10b   : > { %4422 = vmatpush3.bf16.msra.mxu0 %v5073_v8  ;;  %v5091_v8 = vld [vmem:[#allocation4 + $0x208] sm:$0xff]   ;;  %v2530_v44 = vor.u32 %v2529_v29, %v2525_v26  ;;  %v2541_v11 = vrot.slane %v2539_v39, 1  ;;  %v2544_v37 = vshll.u32 %v5966_v12, 16  ;;  %v5981_v62 = vld [vmem:[#allocation2 + $0x50] ss:$0 sps:$4 sm:$0x11]  }
 0x10c   : > { %4423 = vmatprep.subr.bf16.mxu0 %v5078_v21  ;;  %v5169_v21 = vld [vmem:[#allocation2 + $0x34] sm:$0xf]  ;;  %v2556_v36 = vshll.u32 %v5981_v62, 16  ;;  %v5995_v29 = vld [vmem:[#allocation2 + $0x64] sm:$0xf] }
 0x10d   : > { %2122 = vmatmul.mubr.bf16.gmra.mrb[76].mxu1 %v5890_v59  ;;  %v3788_v59 = vcombine.low %v254_v38, %v5168_v58  ;;  %v3789_v24 = vcombine.low %v255_v27, %v5169_v21  ;;  %v2535_v43 = vsel %vm411_vm0, %v2530_v44, %v2534_v16  ;;  %v2546_v38 = vrot.slane %v2544_v37, 1  ;;  %v5992_v27 = vld [vmem:[#allocation2 + $0x5c] ss:$0 sps:$4 sm:$0x11]   ;;  %v5116_v9 = vld [vmem:[#allocation4 + $0x230] sm:$0xff]   ;;  %v5121_v21 = vld [vmem:[#allocation4 + $0x238] sm:$0xff]  }
 0x10e   : > { %4576 = vmatmul.mubr.bf16.gmra.mrb[76].mxu0 %v5803_v48  ;;  %4611 = vmatprep.mubr.bf16.mxu1 %v671_v41  ;;  %v5166_v48 = vld [vmem:[#allocation2 + $0x14] ss:$0 sps:$4 sm:$0x11]   ;;  %v6002_v53 = vld [vmem:[#allocation2 + $0x68] ss:$0 sps:$4 sm:$0x11]  }
 0x10f   : > { %4424 = vmatpush3.bf16.msra.mxu0 %v5079_v49  ;;  %3045 = vmatprep.mubr.bf16.mxu0 %v2511_v34  ;;  %v673_v50 = vrot.slane %v5166_v48, 1  ;;  %v678_v23 = vrot.slane %v3788_v59, 1  ;;  %v5970_v49 = vld [vmem:[#allocation2 + $0x4c] sm:$0xf]  ;;  %v681_v45 = vrot.slane %v3789_v24, 1  ;;  %v5096_v34 = vld [vmem:[#allocation4 + $0x210] sm:$0xff]  }
 0x110   : > { %4425 = vmatprep.subr.bf16.mxu0 %v5080_v6  ;;  %v682_v6 = vrot.slane %v5171_v57, 1  ;;  %v5106_v48 = vld [vmem:[#allocation4 + $0x220] sm:$0xff]   ;;  %v2558_v59 = vrot.slane %v2556_v36, 1 }
 0x111   : > { %v674_v47 = vsel %vm668_vm1, %v672_v14, %v673_v50  ;;  %v5984_v14 = vld [vmem:[#allocation2 + $0x58] sm:$0xf]  ;;  %v6005_v44 = vld [vmem:[#allocation2 + $0x70] sm:$0xf] }
 0x112   : > { %v683_v51 = vsel %vm668_vm1, %v681_v45, %v682_v6  ;;  %v3902_v42 = vcombine.low %v2302_v60, %v5984_v14  ;;  %v6012_v57 = vld [vmem:[#allocation2 + $0x74] ss:$0 sps:$4 sm:$0x11]  }
 0x113   : > { %4426 = vmatpush3.bf16.msra.mxu0 %v5081_v0  ;;  %v2542_v0 = vor.u32 %v2541_v11, %v2537_v35  ;;  %v6015_v35 = vld [vmem:[#allocation2 + $0x7c] sm:$0xf] }
 0x114   : > { %v2563_v26 = vshll.u32 %v3902_v42, 16 }
 0x115   : > { %4612 = vmatmul.mubr.bf16.vlgmr.msra.gmra.mrb[80].mxu1 %v674_v47  ;;  %v2547_v50 = vsel %vm411_vm0, %v2542_v0, %v2546_v38  ;;  %v2561_v47 = vshrl.u32 %v3902_v42, 16  ;;  %v2310_v38 = vld [vmem:[#allocation2 + $0x84] sm:$0xf] }
 0x116   : > { %3046 = vmatmul.mubr.bf16.vlgmr.msra.gmra.mrb[80].mxu0 %v5907_v25  ;;  %4644 = vmatpush3.bf16.msra.mxu1 %v5805_v56  ;;  %v2300_v25 = vld [vmem:[#allocation2 + $0x48] sm:$0xf]  ;;  %v680_v56 = vsel %vm668_vm1, %v678_v23, %v679_v4  ;;  %v2306_v23 = vld [vmem:[#allocation2 + $0x6c] sm:$0xf] }
 0x117   : > { %3053 = vmatprep.mubr.bf16.mxu0 %v2523_v55  ;;  %4615 = vmatprep.mubr.bf16.mxu1 %v677_v19  ;;  %v5976_v41 = vcombine.low %v2300_v25, %v5970_v49  ;;  %v2304_v55 = vld [vmem:[#allocation2 + $0x60] sm:$0xf]  ;;  %v2565_v19 = vrot.slane %v2563_v26, 1  ;;  %v2580_v25 = vshll.u32 %v6002_v53, 16 }
 0x118   : > { %4645 = vmatprep.subr.bf16.mxu1 %v5091_v8  ;;  %v6040_v26 = vld [vmem:[#allocation2 + $0x8c] ss:$0 sps:$4 sm:$0x11]  }
 0x119   : > { %v2551_v15 = vshll.u32 %v5976_v41, 16  ;;  %v2582_v45 = vrot.slane %v2580_v25, 1 }
 0x11a   : > { %4646 = vmatpush3.bf16.msra.mxu1 %v5091_v8  ;;  %v2568_v8 = vshll.u32 %v5992_v27, 16 }
 0x11b   : > { %4647 = vmatprep.subr.bf16.mxu1 %v5096_v34  ;;  %v2553_v13 = vrot.slane %v2551_v15, 1  ;;  %v6027_v15 = vld [vmem:[#allocation2 + $0x88] sm:$0xf] }
 0x11c   : > { %v2570_v24 = vrot.slane %v2568_v8, 1  ;;  %v2342_v8 = vld [vmem:[#allocation2 + $0x30] sm:$0xe] }
 0x11d   : > { %4616 = vmatmul.mubr.bf16.gmra.mrb[84].mxu1 %v680_v56  ;;  %v2592_v56 = vshll.u32 %v6012_v57, 16 }
 0x11e   : > { %3054 = vmatmul.mubr.bf16.gmra.mrb[84].mxu0 %v5928_v31  ;;  %4619 = vmatprep.mubr.bf16.mxu1 %v683_v51  ;;  %v2549_v31 = vshrl.u32 %v5976_v41, 16 }
 0x11f   : > { %3061 = vmatprep.mubr.bf16.mxu0 %v2535_v43  ;;  %4648 = vmatpush3.bf16.msra.mxu1 %v5096_v34  ;;  %v2308_v34 = vld [vmem:[#allocation2 + $0x78] sm:$0xf]  ;;  %v2594_v51 = vrot.slane %v2592_v56, 1 }
 0x120   : > { %4649 = vmatprep.subr.bf16.mxu1 %v5101_v46  ;;  %v2554_v58 = vor.u32 %v2553_v13, %v2549_v31 }
 0x123   : > { %4650 = vmatpush3.bf16.msra.mxu1 %v5101_v46  ;;  %v6023_v46 = vld [vmem:[#allocation2 + $0x80] ss:$0 sps:$4 sm:$0x11]  }
 0x124   : > { %4651 = vmatprep.subr.bf16.mxu1 %v5106_v48 }
 0x125   : > { %4620 = vmatmul.mubr.bf16.gmra.mrb[88].mxu1 %v5841_v2  ;;  %v3903_v2 = vcombine.low %v2304_v55, %v5995_v29 }
 0x126   : > { %3062 = vmatmul.mubr.bf16.gmra.mrb[88].mxu0 %v5947_v33  ;;  %4623 = vmatprep.mubr.bf16.mxu1 %v5851_v52  ;;  %v2559_v33 = vsel %vm411_vm0, %v2554_v58, %v2558_v59  ;;  %v2566_v52 = vor.u32 %v2565_v19, %v2561_v47  ;;  %v6044_v47 = vld [vmem:[#allocation2 + $0x94] sm:$0xf] }
 0x127   : > { %3069 = vmatprep.mubr.bf16.mxu0 %v2547_v50  ;;  %4652 = vmatpush3.bf16.msra.mxu1 %v5106_v48  ;;  %v2575_v4 = vshll.u32 %v3903_v2, 16  ;;  %v2573_v16 = vshrl.u32 %v3903_v2, 16 }
 0x128   : > { %4653 = vmatprep.subr.bf16.mxu1 %v5111_v5 }
 0x129   : > { %v2577_v39 = vrot.slane %v2575_v4, 1 }
 0x12b   : > { %4654 = vmatpush3.bf16.msra.mxu1 %v5111_v5  ;;  %v6035_v5 = vcombine.low %v2310_v38, %v6027_v15 }
 0x12c   : > { %4655 = vmatprep.subr.bf16.mxu1 %v5116_v9 }
 0x12d   : > { %4624 = vmatmul.mubr.bf16.gmra.mrb[92].mxu1 %v5861_v28  ;;  %v3904_v28 = vcombine.low %v2306_v23, %v6005_v44  ;;  %v2611_v55 = vshll.u32 %v6035_v5, 16  ;;  %v2609_v19 = vshrl.u32 %v6035_v5, 16 }
 0x12e   : > { %3070 = vmatmul.mubr.bf16.gmra.mrb[92].mxu0 %v5961_v30  ;;  %4627 = vmatprep.mubr.bf16.mxu1 %v5869_v54  ;;  %v2571_v30 = vsel %vm411_vm0, %v2566_v52, %v2570_v24  ;;  %v2578_v54 = vor.u32 %v2577_v39, %v2573_v16  ;;  %v3931_v16 = vcombine.low %v2342_v8, %v5941_v10  ;;  %v2343_v10 = vld [vmem:[#allocation2 + $0x3c] sm:$0xe] }
 0x12f   : > { %3077 = vmatprep.mubr.bf16.mxu0 %v2559_v33  ;;  %4656 = vmatpush3.bf16.msra.mxu1 %v5116_v9  ;;  %v2587_v6 = vshll.u32 %v3904_v28, 16  ;;  %v2585_v43 = vshrl.u32 %v3904_v28, 16  ;;  %v2312_v9 = vld [vmem:[#allocation2 + $0x90] sm:$0xf]  ;;  %v2613_v52 = vrot.slane %v2611_v55, 1 }
 0x130   : > { %4657 = vmatprep.subr.bf16.mxu1 %v5121_v21  ;;  %v2583_v11 = vsel %vm411_vm0, %v2578_v54, %v2582_v45  ;;  %v6050_v24 = vcombine.low %v2312_v9, %v6044_v47  ;;  %v6058_v54 = vld [vmem:[#allocation2 + $0x98] ss:$0 sps:$4 sm:$0x11]   ;;  %v2769_v9 = vrot.slane %v5981_v62, 1 }
 0x131   : > { %v2589_v37 = vrot.slane %v2587_v6, 1  ;;  %v2614_v39 = vor.u32 %v2613_v52, %v2609_v19  ;;  %v2314_v6 = vld [vmem:[#allocation2 + $0x9c] sm:$0xf]  ;;  %v2346_v19 = vld [vmem:[#allocation2 + $0x60] sm:$0xe] }
 0x132   : > { %v2623_v45 = vshll.u32 %v6050_v24, 16 }
 0x133   : > { %4658 = vmatpush3.bf16.msra.mxu1 %v5121_v21 }
 0x134   : > { %v2625_v56 = vrot.slane %v2623_v45, 1 }
 0x135   : > { %4628 = vmatmul.mubr.bf16.gmra.mrb[0].mxu1 %v5878_v18  ;;  %v2590_v18 = vor.u32 %v2589_v37, %v2585_v43  ;;  %v2763_v43 = vrot.slane %v5952_v3, 1  ;;  %v2344_v37 = vld [vmem:[#allocation2 + $0x48] sm:$0xe] }
 0x136   : > { %3078 = vmatmul.mubr.bf16.gmra.mrb[96].mxu0 %v5976_v41  ;;  %4631 = vmatprep.mubr.bf16.mxu1 %v5887_v32  ;;  %v6020_v41 = vcombine.low %v2308_v34, %v6015_v35  ;;  %v6062_v34 = vld [vmem:[#allocation2 + $0xa0] sm:$0xf]  ;;  %v3933_v38 = vcombine.low %v2344_v37, %v5970_v49  ;;  %v2316_v49 = vld [vmem:[#allocation2 + $0xa8] sm:$0xf] }
 0x137   : > { %3085 = vmatprep.mubr.bf16.mxu0 %v2571_v30 }
 0x138   : > { %v2599_v32 = vshll.u32 %v6020_v41, 16  ;;  %v2597_v50 = vshrl.u32 %v6020_v41, 16  ;;  %v2768_v55 = vrot.slane %v3933_v38, 1 }
 0x13a   : > { %v2601_v36 = vrot.slane %v2599_v32, 1  ;;  %v2770_v62 = vsel %vm668_vm1, %v2768_v55, %v2769_v9  ;;  %v2778_v55 = vrot.slane %v6012_v57, 1  ;;  %v2320_v9 = vld [vmem:[#allocation2 + $0xc0] sm:$0xf] }
 0x13c   : > { %v2602_v58 = vor.u32 %v2601_v36, %v2597_v50  ;;  %v6077_v50 = vld [vmem:[#allocation2 + $0xa4] ss:$0 sps:$4 sm:$0x11]  }
 0x13d   : > { %4632 = vmatmul.mubr.bf16.gmra.mrb[4].mxu1 %v5895_v40  ;;  %v2595_v40 = vsel %vm411_vm0, %v2590_v18, %v2594_v51  ;;  %v2628_v18 = vshll.u32 %v6058_v54, 16  ;;  %v6069_v51 = vcombine.low %v2314_v6, %v6062_v34 }
 0x13e   : > { %3086 = vmatmul.mubr.bf16.gmra.mrb[100].mxu0 %v3902_v42  ;;  %4635 = vmatprep.mubr.bf16.mxu1 %v5902_v20  ;;  %v2604_v42 = vshll.u32 %v6023_v46, 16 }
 0x13f   : > { %3093 = vmatprep.mubr.bf16.mxu0 %v2583_v11  ;;  %v2621_v11 = vshrl.u32 %v6050_v24, 16  ;;  %v2630_v36 = vrot.slane %v2628_v18, 1 }
 0x140   : > { %v2606_v59 = vrot.slane %v2604_v42, 1 }
 0x145   : > { %4636 = vmatmul.mubr.bf16.gmra.mrb[8].mxu1 %v5910_v61  ;;  %v2616_v61 = vshll.u32 %v6040_v26, 16 }
 0x146   : > { %3094 = vmatmul.mubr.bf16.gmra.mrb[104].mxu0 %v3903_v2  ;;  %4639 = vmatprep.mubr.bf16.mxu1 %v5917_v7  ;;  %v2607_v2 = vsel %vm411_vm0, %v2602_v58, %v2606_v59  ;;  %v2766_v58 = vrot.slane %v5966_v12, 1  ;;  %v6084_v59 = vld [vmem:[#allocation2 + $0xac] sm:$0xf] }
 0x147   : > { %3101 = vmatprep.mubr.bf16.mxu0 %v2595_v40  ;;  %v2618_v25 = vrot.slane %v2616_v61, 1  ;;  %v2626_v40 = vor.u32 %v2625_v56, %v2621_v11  ;;  %v6091_v52 = vcombine.low %v2316_v49, %v6084_v59  ;;  %v2318_v11 = vld [vmem:[#allocation2 + $0xb4] sm:$0xf]  ;;  %v2775_v56 = vrot.slane %v6002_v53, 1 }
 0x148   : > { %v4155_v0 = vpop.f32.mrb[0].mxu0 }
 0x149   : > { %v4156_v60 = vpop.f32.mrb[1].mxu0  ;;  %v2631_v8 = vsel %vm411_vm0, %v2626_v40, %v2630_v36 }
 0x14a   : > { %v6029_v48 = vadd.f32 %v4156_v60, %v4155_v0  ;;  %v4158_v31 = vpop.f32.mrb[2].mxu0 }
 0x14b   : > { %v4159_v13 = vpop.f32.mrb[3].mxu0 }
 0x14c   : > { %v6037_v20 = vadd.f32 %v4159_v13, %v4158_v31 }
 0x14d   : > { %4640 = vmatmul.mubr.bf16.gmra.mrb[12].mxu1 %v5924_v63  ;;  %v2619_v63 = vsel %vm411_vm0, %v2614_v39, %v2618_v25  ;;  %v2772_v25 = vrot.slane %v5992_v27, 1 }
 0x14e   : > { %3102 = vmatmul.mubr.bf16.gmra.mrb[108].mxu0 %v3904_v28  ;;  %4659 = vmatprep.mubr.bf16.mxu1 %v5934_v22  ;;  %v2762_v28 = vrot.slane %v3931_v16, 1  ;;  %v3932_v22 = vcombine.low %v2343_v10, %v5955_v17  ;;  %v2635_v17 = vshll.u32 %v6069_v51, 16  ;;  %v6098_v16 = vld [vmem:[#allocation2 + $0xb0] ss:$0 sps:$4 sm:$0x11]  }
 0x14f   : > { %3109 = vmatprep.mubr.bf16.mxu0 %v2607_v2 }
 0x150   : > { %v4161_v33 = vpop.f32.mrb[4].mxu0  ;;  %v2764_v3 = vsel %vm668_vm1, %v2762_v28, %v2763_v43  ;;  %v2637_v2 = vrot.slane %v2635_v17, 1  ;;  %v2347_v28 = vld [vmem:[#allocation2 + $0x6c] sm:$0xe]  ;;  %v2647_v43 = vshll.u32 %v6091_v52, 16 }
 0x151   : > { %v4162_v21 = vpop.f32.mrb[5].mxu0  ;;  %v3936_v27 = vcombine.low %v2347_v28, %v6005_v44  ;;  %v6120_v44 = vld [vmem:[#allocation2 + $0xbc] ss:$0 sps:$4 sm:$0x11]  }
 0x152   : > { %v6052_v4 = vadd.f32 %v4162_v21, %v4161_v33  ;;  %v4164_v23 = vpop.f32.mrb[6].mxu0  ;;  %v2345_v33 = vld [vmem:[#allocation2 + $0x54] sm:$0xe]  ;;  %v2633_v21 = vshrl.u32 %v6069_v51, 16  ;;  %v2649_v38 = vrot.slane %v2647_v43, 1 }
 0x153   : > { %v4165_v7 = vpop.f32.mrb[7].mxu0  ;;  %v3934_v61 = vcombine.low %v2345_v33, %v5984_v14  ;;  %v2777_v36 = vrot.slane %v3936_v27, 1  ;;  %v6124_v33 = vld [vmem:[#allocation2 + $0xc4] sm:$0xf] }
 0x154   : > { %v6055_v30 = vadd.f32 %v4165_v7, %v4164_v23  ;;  %v3935_v23 = vcombine.low %v2346_v19, %v5995_v29  ;;  %v2638_v45 = vor.u32 %v2637_v2, %v2633_v21  ;;  %v6104_v29 = vld [vmem:[#allocation2 + $0xb8] sm:$0xf]  ;;  %v2349_v19 = vld [vmem:[#allocation2 + $0x84] sm:$0xe] }
 0x155   : > { %4660 = vmatmul.mubr.bf16.vlgmr.msra.gmra.mrb[80].mxu1 %v5937_v1  ;;  %v2640_v1 = vshll.u32 %v6077_v50, 16  ;;  %v2771_v10 = vrot.slane %v3934_v61, 1  ;;  %v2350_v61 = vld [vmem:[#allocation2 + $0x90] sm:$0xe]  ;;  %v2779_v28 = vsel %vm668_vm1, %v2777_v36, %v2778_v55  ;;  %v3938_v43 = vcombine.low %v2349_v19, %v6027_v15 }
 0x156   : > { %3110 = vmatmul.mubr.bf16.gmra.mrb[112].mxu0 %v6020_v41  ;;  %4663 = vmatprep.mubr.bf16.mxu1 %v2764_v3  ;;  %v2765_v41 = vrot.slane %v3932_v22, 1  ;;  %v2348_v22 = vld [vmem:[#allocation2 + $0x78] sm:$0xe]  ;;  %v2645_v3 = vshrl.u32 %v6091_v52, 16 }
 0x157   : > { %3117 = vmatprep.mubr.bf16.mxu0 %v2619_v63  ;;  %v2642_v6 = vrot.slane %v2640_v1, 1  ;;  %v2774_v63 = vrot.slane %v3935_v23, 1  ;;  %v3937_v40 = vcombine.low %v2348_v22, %v6015_v35  ;;  %v2781_v35 = vrot.slane %v6023_v46, 1 }
 0x158   : > { %v4167_v32 = vpop.f32.mrb[8].mxu0  ;;  %v2767_v12 = vsel %vm668_vm1, %v2765_v41, %v2766_v58  ;;  %v2650_v17 = vor.u32 %v2649_v38, %v2645_v3  ;;  %v6150_v3 = vld [vmem:[#allocation2 + $0xd0] sm:$0xf] }
 0x159   : > { %v4168_v0 = vpop.f32.mrb[9].mxu0  ;;  %v2776_v53 = vsel %vm668_vm1, %v2774_v63, %v2775_v56  ;;  %v2780_v1 = vrot.slane %v3937_v40, 1  ;;  %v6146_v63 = vld [vmem:[#allocation2 + $0xc8] ss:$0 sps:$4 sm:$0x11]   ;;  %v2784_v56 = vrot.slane %v6040_v26, 1 }
 0x15a   : > { %v6075_v60 = vadd.f32 %v4168_v0, %v4167_v32  ;;  %v4170_v31 = vpop.f32.mrb[10].mxu0  ;;  %v2652_v32 = vshll.u32 %v6098_v16, 16  ;;  %v2643_v0 = vsel %vm411_vm0, %v2638_v45, %v2642_v6  ;;  %v2676_v26 = vshll.u32 %v6146_v63, 16 }
 0x15b   : > { %v4171_v13 = vpop.f32.mrb[11].mxu0 }
 0x15c   : > { %v6081_v42 = vadd.f32 %v4171_v13, %v4170_v31  ;;  %v6114_v31 = vcombine.low %v2318_v11, %v6104_v29  ;;  %v2773_v13 = vsel %vm668_vm1, %v2771_v10, %v2772_v25  ;;  %v2654_v41 = vrot.slane %v2652_v32, 1 }
 0x15d   : > { %4664 = vmatmul.mubr.bf16.gmra.mrb[84].mxu1 %v2767_v12  ;;  %v2664_v12 = vshll.u32 %v6120_v44, 16  ;;  %v6133_v25 = vcombine.low %v2320_v9, %v6124_v33  ;;  %v2782_v10 = vsel %vm668_vm1, %v2780_v1, %v2781_v35  ;;  %v3939_v11 = vcombine.low %v2350_v61, %v6044_v47 }
 0x15e   : > { %3118 = vmatmul.mubr.bf16.gmra.mrb[116].mxu0 %v6035_v5  ;;  %4667 = vmatprep.mubr.bf16.mxu1 %v2770_v62  ;;  %v2659_v58 = vshll.u32 %v6114_v31, 16  ;;  %v2657_v57 = vshrl.u32 %v6114_v31, 16 }
 0x15f   : > { %3125 = vmatprep.mubr.bf16.mxu0 %v2631_v8  ;;  %v2666_v32 = vrot.slane %v2664_v12, 1  ;;  %v2671_v22 = vshll.u32 %v6133_v25, 16  ;;  %v2786_v47 = vrot.slane %v3939_v11, 1  ;;  %v2669_v9 = vshrl.u32 %v6133_v25, 16 }
 0x160   : > { %v4173_v7 = vpop.f32.mrb[12].mxu0 }
 0x161   : > { %v4174_v39 = vpop.f32.mrb[13].mxu0 }
 0x162   : > { %v6102_v14 = vadd.f32 %v4174_v39, %v4173_v7  ;;  %v4176_v5 = vpop.f32.mrb[14].mxu0  ;;  %v2655_v7 = vsel %vm411_vm0, %v2650_v17, %v2654_v41  ;;  %v2661_v39 = vrot.slane %v2659_v58, 1  ;;  %v2352_v41 = vld [vmem:[#allocation2 + $0xa8] sm:$0xe] }
 0x163   : > { %v4177_v37 = vpop.f32.mrb[15].mxu0 }
 0x164   : > { %v6107_v18 = vadd.f32 %v4177_v37, %v4176_v5  ;;  %v2662_v27 = vor.u32 %v2661_v39, %v2657_v57  ;;  %v2678_v57 = vrot.slane %v2676_v26, 1  ;;  %v6172_v39 = vld [vmem:[#allocation2 + $0xd4] ss:$0 sps:$4 sm:$0x11]  }
 0x165   : > { %4668 = vmatmul.mubr.bf16.gmra.mrb[88].mxu1 %v2773_v13  ;;  %v2787_v13 = vrot.slane %v6058_v54, 1 }
 0x166   : > { %3126 = vmatmul.mubr.bf16.gmra.mrb[120].mxu0 %v6050_v24  ;;  %4671 = vmatprep.mubr.bf16.mxu1 %v2776_v53  ;;  %v2351_v53 = vld [vmem:[#allocation2 + $0x9c] sm:$0xe]  ;;  %v2667_v55 = vsel %vm411_vm0, %v2662_v27, %v2666_v32  ;;  %v2354_v32 = vld [vmem:[#allocation2 + $0xc0] sm:$0xe] }
 0x167   : > { %3133 = vmatprep.mubr.bf16.mxu0 %v2643_v0  ;;  %v2783_v0 = vrot.slane %v3938_v43, 1  ;;  %v2788_v61 = vsel %vm668_vm1, %v2786_v47, %v2787_v13  ;;  %v2790_v43 = vrot.slane %v6077_v50, 1  ;;  %v2688_v47 = vshll.u32 %v6172_v39, 16 }
 0x168   : > { %v4291_v2 = vpop.f32.mrb[16].mxu1 }
 0x169   : > { %v4179_v49 = vpop.f32.mrb[16].mxu0  ;;  %v4292_v23 = vpop.f32.mrb[17].mxu1 }
 0x16a   : > { %v4180_v24 = vpop.f32.mrb[17].mxu0  ;;  %v6137_v46 = vadd.f32 %v4292_v23, %v4291_v2  ;;  %v4294_v6 = vpop.f32.mrb[18].mxu1  ;;  %v3940_v2 = vcombine.low %v2351_v53, %v6062_v34 }
 0x16b   : > { %v6127_v8 = vadd.f32 %v4180_v24, %v4179_v49  ;;  %v4182_v21 = vpop.f32.mrb[18].mxu0  ;;  %v4295_v5 = vpop.f32.mrb[19].mxu1  ;;  %v2673_v24 = vrot.slane %v2671_v22, 1 }
 0x16c   : > { %v4183_v62 = vpop.f32.mrb[19].mxu0  ;;  %v6144_v37 = vadd.f32 %v4295_v5, %v4294_v6  ;;  %v2789_v34 = vrot.slane %v3940_v2, 1  ;;  %v2799_v2 = vrot.slane %v6146_v63, 1 }
 0x16d   : > { %v6135_v45 = vadd.f32 %v4183_v62, %v4182_v21  ;;  %4672 = vmatmul.mubr.bf16.gmra.mrb[92].mxu1 %v2779_v28  ;;  %v2785_v21 = vsel %vm668_vm1, %v2783_v0, %v2784_v56  ;;  %v3941_v62 = vcombine.low %v2352_v41, %v6084_v59  ;;  %v2353_v59 = vld [vmem:[#allocation2 + $0xb4] sm:$0xe]  ;;  %v3943_v41 = vcombine.low %v2354_v32, %v6124_v33 }
 0x16e   : > { %3134 = vmatmul.mubr.bf16.gmra.mrb[124].mxu0 %v6069_v51  ;;  %4675 = vmatprep.mubr.bf16.mxu1 %v2782_v10  ;;  %v2322_v51 = vld [vmem:[#allocation2 + $0xcc] sm:$0xf]  ;;  %v2793_v10 = vrot.slane %v6098_v16, 1  ;;  %v2791_v53 = vsel %vm668_vm1, %v2789_v34, %v2790_v43 }
 0x16f   : > { %3141 = vmatprep.mubr.bf16.mxu0 %v2655_v7  ;;  %v6159_v1 = vcombine.low %v2322_v51, %v6150_v3  ;;  %v2674_v7 = vor.u32 %v2673_v24, %v2669_v9  ;;  %v2792_v5 = vrot.slane %v3941_v62, 1 }
 0x170   : > { %v4297_v17 = vpop.f32.mrb[20].mxu1 }
 0x171   : > { %v4185_v15 = vpop.f32.mrb[20].mxu0  ;;  %v4298_v49 = vpop.f32.mrb[21].mxu1  ;;  %v2683_v6 = vshll.u32 %v6159_v1, 16  ;;  %v2679_v0 = vsel %vm411_vm0, %v2674_v7, %v2678_v57  ;;  %v2681_v51 = vshrl.u32 %v6159_v1, 16  ;;  %v2794_v26 = vsel %vm668_vm1, %v2792_v5, %v2793_v10 }
 0x172   : > { %v4186_v38 = vpop.f32.mrb[21].mxu0  ;;  %v6163_v54 = vadd.f32 %v4298_v49, %v4297_v17  ;;  %v4300_v19 = vpop.f32.mrb[22].mxu1 }
 0x173   : > { %v6153_v40 = vadd.f32 %v4186_v38, %v4185_v15  ;;  %v4188_v36 = vpop.f32.mrb[22].mxu0  ;;  %v4301_v12 = vpop.f32.mrb[23].mxu1  ;;  %v2685_v38 = vrot.slane %v2683_v6, 1 }
 0x174   : > { %v4189_v58 = vpop.f32.mrb[23].mxu0  ;;  %v6170_v23 = vadd.f32 %v4301_v12, %v4300_v19  ;;  %v2796_v19 = vrot.slane %v6120_v44, 1 }
 0x175   : > { %v6161_v35 = vadd.f32 %v4189_v58, %v4188_v36  ;;  %4676 = vmatmul.mubr.bf16.gmra.mrb[0].mxu1 %v2785_v21  ;;  %v3942_v36 = vcombine.low %v2353_v59, %v6104_v29  ;;  %v2686_v49 = vor.u32 %v2685_v38, %v2681_v51  ;;  %v2798_v29 = vrot.slane %v3943_v41, 1 }
 0x176   : > { %3142 = vmatmul.mubr.bf16.gmra.mrb[128].mxu0 %v6091_v52  ;;  %4679 = vmatprep.mubr.bf16.mxu1 %v2788_v61 }
 0x177   : > { %3149 = vmatprep.mubr.bf16.mxu0 %v2667_v55  ;;  %v2690_v55 = vrot.slane %v2688_v47, 1  ;;  %v2795_v24 = vrot.slane %v3942_v36, 1  ;;  %v2800_v63 = vsel %vm668_vm1, %v2798_v29, %v2799_v2 }
 0x178   : > { %v4303_v27 = vpop.f32.mrb[24].mxu1 }
 0x179   : > { %v4191_v28 = vpop.f32.mrb[24].mxu0  ;;  %v4304_v15 = vpop.f32.mrb[25].mxu1  ;;  %v2691_v57 = vsel %vm411_vm0, %v2686_v49, %v2690_v55  ;;  %v2797_v44 = vsel %vm668_vm1, %v2795_v24, %v2796_v19 }
 0x17a   : > { %v4192_v52 = vpop.f32.mrb[25].mxu0  ;;  %v6184_v13 = vadd.f32 %v4304_v15, %v4303_v27  ;;  %v4306_v16 = vpop.f32.mrb[26].mxu1 }
 0x17b   : > { %v6177_v11 = vadd.f32 %v4192_v52, %v4191_v28  ;;  %v4194_v56 = vpop.f32.mrb[26].mxu0  ;;  %v4307_v17 = vpop.f32.mrb[27].mxu1 }
 0x17c   : > { %v4195_v22 = vpop.f32.mrb[27].mxu0  ;;  %v6191_v58 = vadd.f32 %v4307_v17, %v4306_v16 }
 0x17d   : > { %v6182_v50 = vadd.f32 %v4195_v22, %v4194_v56  ;;  %4680 = vmatmul.mubr.bf16.gmra.mrb[4].mxu1 %v2791_v53  ;;  %v2802_v56 = vrot.slane %v6172_v39, 1 }
 0x17e   : > { %3150 = vmatmul.mubr.bf16.gmra.mrb[132].mxu0 %v6114_v31  ;;  %4683 = vmatprep.mubr.bf16.mxu1 %v2794_v26  ;;  %v2355_v31 = vld [vmem:[#allocation2 + $0xcc] sm:$0xe] }
 0x17f   : > { %3157 = vmatprep.mubr.bf16.mxu0 %v2679_v0  ;;  %v3944_v43 = vcombine.low %v2355_v31, %v6150_v3 }
 0x180   : > { %v4309_v33 = vpop.f32.mrb[28].mxu1 }
 0x181   : > { %v4197_v9 = vpop.f32.mrb[28].mxu0  ;;  %v4310_v7 = vpop.f32.mrb[29].mxu1  ;;  %v2801_v59 = vrot.slane %v3944_v43, 1 }
 0x182   : > { %v4198_v21 = vpop.f32.mrb[29].mxu0  ;;  %v6200_v28 = vadd.f32 %v4310_v7, %v4309_v33  ;;  %v4312_v34 = vpop.f32.mrb[30].mxu1 }
 0x183   : > { %v6195_v12 = vadd.f32 %v4198_v21, %v4197_v9  ;;  %v4200_v61 = vpop.f32.mrb[30].mxu0  ;;  %v4313_v52 = vpop.f32.mrb[31].mxu1  ;;  %v2803_v47 = vsel %vm668_vm1, %v2801_v59, %v2802_v56 }
 0x184   : > { %v4201_v62 = vpop.f32.mrb[31].mxu0  ;;  %v6206_v5 = vadd.f32 %v4313_v52, %v4312_v34 }
 0x185   : > { %v6198_v6 = vadd.f32 %v4201_v62, %v4200_v61  ;;  %4684 = vmatmul.mubr.bf16.gmra.mrb[8].mxu1 %v2797_v44 }
 0x186   : > { %3158 = vmatmul.mubr.bf16.gmra.mrb[136].mxu0 %v6133_v25  ;;  %4687 = vmatprep.mubr.bf16.mxu1 %v2800_v63 }
 0x187   : > { %3165 = vmatprep.mubr.bf16.mxu0 %v2691_v57 }
 0x188   : > { %v4315_v15 = vpop.f32.mrb[32].mxu1 }
 0x189   : > { %v4203_v10 = vpop.f32.mrb[32].mxu0  ;;  %v4316_v3 = vpop.f32.mrb[33].mxu1 }
 0x18a   : > { %v4204_v27 = vpop.f32.mrb[33].mxu0  ;;  %v6209_v38 = vadd.f32 %v4316_v3, %v4315_v15  ;;  %v4318_v25 = vpop.f32.mrb[34].mxu1 }
 0x18b   : > { %v4205_v32 = vadd.f32 %v4204_v27, %v4203_v10  ;;  %v4206_v22 = vpop.f32.mrb[34].mxu0  ;;  %v4319_v16 = vpop.f32.mrb[35].mxu1 }
 0x18c   : > { %v4207_v0 = vpop.f32.mrb[35].mxu0  ;;  %v6213_v53 = vadd.f32 %v4319_v16, %v4318_v25 }
 0x18d   : > { %v4208_v51 = vadd.f32 %v4207_v0, %v4206_v22  ;;  %4688 = vmatmul.mubr.bf16.gmra.mrb[12].mxu1 %v2803_v47 }
 0x18e   : > { %3166 = vmatmul.mubr.bf16.gmra.mrb[140].mxu0 %v6159_v1 }
 0x190   : > { %v4321_v41 = vpop.f32.mrb[36].mxu1 }
 0x191   : > { %v4209_v36 = vpop.f32.mrb[36].mxu0  ;;  %v4322_v55 = vpop.f32.mrb[37].mxu1 }
 0x192   : > { %v4210_v39 = vpop.f32.mrb[37].mxu0  ;;  %v6215_v24 = vadd.f32 %v4322_v55, %v4321_v41  ;;  %v4324_v19 = vpop.f32.mrb[38].mxu1 }
 0x193   : > { %v4211_v17 = vadd.f32 %v4210_v39, %v4209_v36  ;;  %v4212_v26 = vpop.f32.mrb[38].mxu0  ;;  %v4325_v21 = vpop.f32.mrb[39].mxu1 }
 0x194   : > { %v4213_v49 = vpop.f32.mrb[39].mxu0  ;;  %v6217_v29 = vadd.f32 %v4325_v21, %v4324_v19 }
 0x195   : > { %v4214_v9 = vadd.f32 %v4213_v49, %v4212_v26 }
 0x198   : > { %v4327_v33 = vpop.f32.mrb[40].mxu1 }
 0x199   : > { %v4215_v2 = vpop.f32.mrb[40].mxu0  ;;  %v4328_v7 = vpop.f32.mrb[41].mxu1 }
 0x19a   : > { %v4216_v31 = vpop.f32.mrb[41].mxu0  ;;  %v6219_v34 = vadd.f32 %v4328_v7, %v4327_v33  ;;  %v4330_v44 = vpop.f32.mrb[42].mxu1 }
 0x19b   : > { %v4217_v1 = vadd.f32 %v4216_v31, %v4215_v2  ;;  %v4218_v61 = vpop.f32.mrb[42].mxu0  ;;  %v4331_v43 = vpop.f32.mrb[43].mxu1 }
 0x19c   : > { %v4219_v62 = vpop.f32.mrb[43].mxu0  ;;  %v6221_v52 = vadd.f32 %v4331_v43, %v4330_v44 }
 0x19d   : > { %v4220_v57 = vadd.f32 %v4219_v62, %v4218_v61 }
 0x1a0   : > { %v4333_v27 = vpop.f32.mrb[44].mxu1 }
 0x1a1   : > { %v4221_v63 = vpop.f32.mrb[44].mxu0  ;;  %v4334_v15 = vpop.f32.mrb[45].mxu1 }
 0x1a2   : > { %v4222_v10 = vpop.f32.mrb[45].mxu0  ;;  %v6225_v3 = vadd.f32 %v4334_v15, %v4333_v27  ;;  %v4336_v25 = vpop.f32.mrb[46].mxu1 }
 0x1a3   : > { %v6223_v59 = vadd.f32 %v4222_v10, %v4221_v63  ;;  %v4224_v56 = vpop.f32.mrb[46].mxu0  ;;  %v4337_v47 = vpop.f32.mrb[47].mxu1 }
 0x1a4   : > { %v4225_v22 = vpop.f32.mrb[47].mxu0  ;;  %v6227_v16 = vadd.f32 %v4337_v47, %v4336_v25 }
 0x1a5   : > { %v4226_v0 = vadd.f32 %v4225_v22, %v4224_v56 }
 0x1a8   : > { %v4339_v26 = vpop.f32.mrb[48].mxu1 }
 0x1a9   : > { %v4227_v36 = vpop.f32.mrb[48].mxu0  ;;  %v4340_v55 = vpop.f32.mrb[49].mxu1 }
 0x1aa   : > { %v4228_v39 = vpop.f32.mrb[49].mxu0  ;;  %v4341_v21 = vadd.f32 %v4340_v55, %v4339_v26  ;;  %v4342_v2 = vpop.f32.mrb[50].mxu1 }
 0x1ab   : > { %v6229_v41 = vadd.f32 %v4228_v39, %v4227_v36  ;;  %v4230_v49 = vpop.f32.mrb[50].mxu0  ;;  %v4343_v61 = vpop.f32.mrb[51].mxu1 }
 0x1ac   : > { %v4231_v19 = vpop.f32.mrb[51].mxu0  ;;  %v6233_v33 = vadd.f32 %v4341_v21, %v4205_v32  ;;  %v4344_v62 = vadd.f32 %v4343_v61, %v4342_v2 }
 0x1ad   : > { %v6231_v31 = vadd.f32 %v4231_v19, %v4230_v49 }
 0x1ae   : > { %v6235_v7 = vadd.f32 %v4344_v62, %v4208_v51 }
 0x1b0   : > { %v4345_v63 = vpop.f32.mrb[52].mxu1 }
 0x1b1   : > { %v4233_v44 = vpop.f32.mrb[52].mxu0  ;;  %v4346_v27 = vpop.f32.mrb[53].mxu1 }
 0x1b2   : > { %v4234_v43 = vpop.f32.mrb[53].mxu0  ;;  %v4347_v15 = vadd.f32 %v4346_v27, %v4345_v63  ;;  %v4348_v25 = vpop.f32.mrb[54].mxu1 }
 0x1b3   : > { %v6237_v10 = vadd.f32 %v4234_v43, %v4233_v44  ;;  %v4236_v56 = vpop.f32.mrb[54].mxu0  ;;  %v4349_v36 = vpop.f32.mrb[55].mxu1 }
 0x1b4   : > { %v4237_v22 = vpop.f32.mrb[55].mxu0  ;;  %v6241_v39 = vadd.f32 %v4347_v15, %v4211_v17  ;;  %v4350_v32 = vadd.f32 %v4349_v36, %v4348_v25 }
 0x1b5   : > { %v6239_v47 = vadd.f32 %v4237_v22, %v4236_v56 }
 0x1b6   : > { %v6243_v26 = vadd.f32 %v4350_v32, %v4214_v9 }
 0x1b8   : > { %6605 = vst [vmem:[#allocation15_spill] sm:$0xff] %v6243_v26  ;;  %v4351_v55 = vpop.f32.mrb[56].mxu1 }
 0x1b9   : > { %v4239_v51 = vpop.f32.mrb[56].mxu0  ;;  %v4352_v2 = vpop.f32.mrb[57].mxu1 }
 0x1ba   : > { %v4240_v49 = vpop.f32.mrb[57].mxu0  ;;  %v4353_v62 = vadd.f32 %v4352_v2, %v4351_v55  ;;  %v4354_v44 = vpop.f32.mrb[58].mxu1 }
 0x1bb   : > { %v6245_v19 = vadd.f32 %v4240_v49, %v4239_v51  ;;  %v4242_v21 = vpop.f32.mrb[58].mxu0  ;;  %v4355_v63 = vpop.f32.mrb[59].mxu1 }
 0x1bc   : > { %v4243_v61 = vpop.f32.mrb[59].mxu0  ;;  %v6249_v56 = vadd.f32 %v4353_v62, %v4217_v1  ;;  %v4356_v17 = vadd.f32 %v4355_v63, %v4354_v44 }
 0x1bd   : > { %v6247_v43 = vadd.f32 %v4243_v61, %v4242_v21 }
 0x1be   : > { %v6251_v27 = vadd.f32 %v4356_v17, %v4220_v57 }
 0x1c0   : > { %v4357_v15 = vpop.f32.mrb[60].mxu1 }
 0x1c1   : > { %v4245_v9 = vpop.f32.mrb[60].mxu0  ;;  %v4358_v32 = vpop.f32.mrb[61].mxu1 }
 0x1c2   : > { %v4246_v22 = vpop.f32.mrb[61].mxu0  ;;  %v4359_v49 = vadd.f32 %v4358_v32, %v4357_v15  ;;  %v4360_v26 = vpop.f32.mrb[62].mxu1 }
 0x1c3   : > { %v6253_v25 = vadd.f32 %v4246_v22, %v4245_v9  ;;  %v4248_v36 = vpop.f32.mrb[62].mxu0  ;;  %v4361_v21 = vpop.f32.mrb[63].mxu1 }
 0x1c4   : > { %v4249_v51 = vpop.f32.mrb[63].mxu0  ;;  %v6258_v2 = vadd.f32 %v4359_v49, %v6223_v59  ;;  %v4362_v1 = vadd.f32 %v4361_v21, %v4360_v26 }
 0x1c5   : > { %v6255_v55 = vadd.f32 %v4249_v51, %v4248_v36 }
 0x1c6   : > { %v6260_v61 = vadd.f32 %v4362_v1, %v4226_v0 }
 0x1c8   : > { %v4363_v63 = vpop.f32.mrb[64].mxu1 }
 0x1c9   : > { %v4565_v57 = vpop.f32.mrb[64].mxu0  ;;  %v4364_v15 = vpop.f32.mrb[65].mxu1 }
 0x1ca   : > { %v1707_v62 = vadd.f32 %v4565_v57, %v6052_v4  ;;  %v1698_v44 = vpop.f32.mrb[65].mxu0  ;;  %v4365_v0 = vadd.f32 %v4364_v15, %v4363_v63  ;;  %v4366_v26 = vpop.f32.mrb[66].mxu1 }
 0x1cb   : > { %v1699_v17 = vadd.f32 %v6029_v48, %v1698_v44  ;;  %v4566_v9 = vpop.f32.mrb[66].mxu0  ;;  %v4367_v49 = vpop.f32.mrb[67].mxu1 }
 0x1cc   : > { %v6265_v22 = vadd.f32 %v6163_v54, %v1707_v62  ;;  %v1710_v36 = vadd.f32 %v4566_v9, %v6055_v30  ;;  %v1701_v32 = vpop.f32.mrb[67].mxu0  ;;  %v6276_v48 = vadd.f32 %v4365_v0, %v6229_v41  ;;  %v4368_v21 = vadd.f32 %v4367_v49, %v4366_v26 }
 0x1cd   : > { %v6269_v59 = vadd.f32 %v6137_v46, %v1699_v17  ;;  %v1702_v51 = vadd.f32 %v6037_v20, %v1701_v32 }
 0x1ce   : > { %v6273_v4 = vadd.f32 %v6170_v23, %v1710_v36  ;;  %v6282_v30 = vadd.f32 %v4368_v21, %v6231_v31 }
 0x1cf   : > { %v6279_v54 = vadd.f32 %v6144_v37, %v1702_v51 }
 0x1d0   : > { %v4369_v62 = vpop.f32.mrb[68].mxu1 }
 0x1d1   : > { %v4569_v46 = vpop.f32.mrb[68].mxu0  ;;  %v4370_v41 = vpop.f32.mrb[69].mxu1 }
 0x1d2   : > { %v1723_v1 = vadd.f32 %v4569_v46, %v6102_v14  ;;  %v1714_v57 = vpop.f32.mrb[69].mxu0  ;;  %v4371_v31 = vadd.f32 %v4370_v41, %v4369_v62  ;;  %v4372_v9 = vpop.f32.mrb[70].mxu1 }
 0x1d3   : > { %v1715_v20 = vadd.f32 %v6075_v60, %v1714_v57  ;;  %v4570_v23 = vpop.f32.mrb[70].mxu0  ;;  %v4373_v36 = vpop.f32.mrb[71].mxu1 }
 0x1d4   : > { %v6287_v44 = vadd.f32 %v6200_v28, %v1723_v1  ;;  %v1726_v63 = vadd.f32 %v4570_v23, %v6107_v18  ;;  %v1717_v37 = vpop.f32.mrb[71].mxu0  ;;  %v6298_v60 = vadd.f32 %v4371_v31, %v6237_v10  ;;  %v4374_v32 = vadd.f32 %v4373_v36, %v4372_v9 }
 0x1d5   : > { %v6291_v17 = vadd.f32 %v6184_v13, %v1715_v20  ;;  %v1718_v15 = vadd.f32 %v6081_v42, %v1717_v37 }
 0x1d6   : > { %v6295_v14 = vadd.f32 %v6206_v5, %v1726_v63  ;;  %v6304_v18 = vadd.f32 %v4374_v32, %v6239_v47 }
 0x1d7   : > { %v6301_v28 = vadd.f32 %v6191_v58, %v1718_v15 }
 0x1d8   : > { %v4375_v51 = vpop.f32.mrb[72].mxu1 }
 0x1d9   : > { %v4573_v13 = vpop.f32.mrb[72].mxu0  ;;  %v4376_v10 = vpop.f32.mrb[73].mxu1 }
 0x1da   : > { %v1739_v0 = vadd.f32 %v4573_v13, %v6153_v40  ;;  %v1730_v26 = vpop.f32.mrb[73].mxu0  ;;  %v4377_v47 = vadd.f32 %v4376_v10, %v4375_v51  ;;  %v4378_v1 = vpop.f32.mrb[74].mxu1 }
 0x1db   : > { %v1731_v42 = vadd.f32 %v6127_v8, %v1730_v26  ;;  %v4574_v5 = vpop.f32.mrb[74].mxu0  ;;  %v4379_v62 = vpop.f32.mrb[75].mxu1 }
 0x1dc   : > { %v6309_v49 = vadd.f32 %v6215_v24, %v1739_v0  ;;  %v1742_v21 = vadd.f32 %v4574_v5, %v6161_v35  ;;  %v1733_v58 = vpop.f32.mrb[75].mxu0  ;;  %v6320_v8 = vadd.f32 %v4377_v47, %v6245_v19  ;;  %v4380_v20 = vadd.f32 %v4379_v62, %v4378_v1 }
 0x1dd   : > { %v6313_v46 = vadd.f32 %v6209_v38, %v1731_v42  ;;  %v1734_v57 = vadd.f32 %v6135_v45, %v1733_v58 }
 0x1de   : > { %v6317_v40 = vadd.f32 %v6217_v29, %v1742_v21  ;;  %v6324_v35 = vadd.f32 %v4380_v20, %v6247_v43 }
 0x1df   : > { %v2039_v24 = vadd.f32 %v6213_v53, %v1734_v57 }
 0x1e0   : > { %v4381_v63 = vpop.f32.mrb[76].mxu1 }
 0x1e1   : > { %v4577_v23 = vpop.f32.mrb[76].mxu0  ;;  %v4382_v31 = vpop.f32.mrb[77].mxu1 }
 0x1e2   : > { %v1755_v38 = vadd.f32 %v4577_v23, %v6195_v12  ;;  %v1746_v41 = vpop.f32.mrb[77].mxu0  ;;  %v4383_v43 = vadd.f32 %v4382_v31, %v4381_v63  ;;  %v4384_v15 = vpop.f32.mrb[78].mxu1 }
 0x1e3   : > { %v1747_v45 = vadd.f32 %v6177_v11, %v1746_v41  ;;  %v4578_v37 = vpop.f32.mrb[78].mxu0  ;;  %v4385_v32 = vpop.f32.mrb[79].mxu1 }
 0x1e4   : > { %v6329_v29 = vadd.f32 %v6225_v3, %v1755_v38  ;;  %v1758_v19 = vadd.f32 %v4578_v37, %v6198_v6  ;;  %v1749_v9 = vpop.f32.mrb[79].mxu0  ;;  %v6340_v11 = vadd.f32 %v4383_v43, %v6253_v25  ;;  %v4386_v13 = vadd.f32 %v4385_v32, %v4384_v15 }
 0x1e5   : > { %v6333_v53 = vadd.f32 %v6219_v34, %v1747_v45  ;;  %v1750_v36 = vadd.f32 %v6182_v50, %v1749_v9 }
 0x1e6   : > { %v6337_v12 = vadd.f32 %v6227_v16, %v1758_v19  ;;  %v6344_v6 = vadd.f32 %v4386_v13, %v6255_v55 }
 0x1e7   : > { %v2055_v3 = vadd.f32 %v6221_v52, %v1750_v36 }
 0x1e9   : > { %v4427_v0 = vpop.f32.mrb[80].mxu0 }
 0x1ea   : > { %v4428_v34 = vpop.f32.mrb[81].mxu0 }
 0x1eb   : > { %v4429_v26 = vadd.f32 %v4428_v34, %v4427_v0  ;;  %v4430_v51 = vpop.f32.mrb[82].mxu0 }
 0x1ec   : > { %v4431_v42 = vpop.f32.mrb[83].mxu0 }
 0x1ed   : > { %v4432_v5 = vadd.f32 %v4431_v42, %v4430_v51  ;;  %v6347_v50 = vadd.f32 %v4429_v26, %v6269_v59 }
 0x1ef   : > { %v6350_v16 = vadd.f32 %v4432_v5, %v6279_v54 }
 0x1f1   : > { %v4433_v25 = vpop.f32.mrb[84].mxu0 }
 0x1f2   : > { %v4434_v10 = vpop.f32.mrb[85].mxu0 }
 0x1f3   : > { %v4435_v21 = vadd.f32 %v4434_v10, %v4433_v25  ;;  %v4436_v52 = vpop.f32.mrb[86].mxu0 }
 0x1f4   : > { %v4437_v58 = vpop.f32.mrb[87].mxu0 }
 0x1f5   : > { %v4438_v47 = vadd.f32 %v4437_v58, %v4436_v52  ;;  %v4709_v55 = vadd.f32 %v4435_v21, %v6265_v22 }
 0x1f7   : > { %v6354_v1 = vadd.f32 %v4438_v47, %v6273_v4 }
 0x1f9   : > { %v4439_v57 = vpop.f32.mrb[88].mxu0 }
 0x1fa   : > { %v4440_v62 = vpop.f32.mrb[89].mxu0 }
 0x1fb   : > { %v4441_v20 = vadd.f32 %v4440_v62, %v4439_v57  ;;  %v4442_v23 = vpop.f32.mrb[90].mxu0 }
 0x1fc   : > { %v4443_v59 = vpop.f32.mrb[91].mxu0 }
 0x1fd   : > { %v4444_v38 = vadd.f32 %v4443_v59, %v4442_v23  ;;  %v6357_v54 = vadd.f32 %v4441_v20, %v6291_v17 }
 0x1ff   : > { %v6360_v41 = vadd.f32 %v4444_v38, %v6301_v28 }
 0x201   : > { %v4445_v63 = vpop.f32.mrb[92].mxu0 }
 0x202   : > { %v4446_v45 = vpop.f32.mrb[93].mxu0 }
 0x203   : > { %v4447_v37 = vadd.f32 %v4446_v45, %v4445_v63  ;;  %v4448_v31 = vpop.f32.mrb[94].mxu0 }
 0x204   : > { %v4449_v22 = vpop.f32.mrb[95].mxu0 }
 0x205   : > { %v4450_v19 = vadd.f32 %v4449_v22, %v4448_v31  ;;  %v6363_v4 = vadd.f32 %v4447_v37, %v6287_v44 }
 0x207   : > { %v6366_v9 = vadd.f32 %v4450_v19, %v6295_v14 }
 0x209   : > { %v4451_v43 = vpop.f32.mrb[96].mxu0 }
 0x20a   : > { %v4452_v15 = vpop.f32.mrb[97].mxu0 }
 0x20b   : > { %v4453_v36 = vadd.f32 %v4452_v15, %v4451_v43  ;;  %v4454_v17 = vpop.f32.mrb[98].mxu0 }
 0x20c   : > { %v4455_v32 = vpop.f32.mrb[99].mxu0 }
 0x20d   : > { %v4456_v13 = vadd.f32 %v4455_v32, %v4454_v17  ;;  %v6369_v28 = vadd.f32 %v4453_v36, %v6313_v46 }
 0x20f   : > { %v6371_v0 = vadd.f32 %v4456_v13, %v2039_v24 }
 0x211   : > { %v4457_v34 = vpop.f32.mrb[100].mxu0 }
 0x212   : > { %v4458_v26 = vpop.f32.mrb[101].mxu0 }
 0x213   : > { %v4459_v51 = vadd.f32 %v4458_v26, %v4457_v34  ;;  %v4460_v42 = vpop.f32.mrb[102].mxu0 }
 0x214   : > { %v4461_v44 = vpop.f32.mrb[103].mxu0 }
 0x215   : > { %v4462_v5 = vadd.f32 %v4461_v44, %v4460_v42  ;;  %v6374_v14 = vadd.f32 %v4459_v51, %v6309_v49 }
 0x217   : > { %v6377_v25 = vadd.f32 %v4462_v5, %v6317_v40 }
 0x219   : > { %v4463_v10 = vpop.f32.mrb[104].mxu0 }
 0x21a   : > { %v4464_v21 = vpop.f32.mrb[105].mxu0 }
 0x21b   : > { %v4465_v52 = vadd.f32 %v4464_v21, %v4463_v10  ;;  %v4466_v58 = vpop.f32.mrb[106].mxu0 }
 0x21c   : > { %v4467_v46 = vpop.f32.mrb[107].mxu0 }
 0x21d   : > { %v4468_v47 = vadd.f32 %v4467_v46, %v4466_v58  ;;  %v6380_v24 = vadd.f32 %v4465_v52, %v6333_v53  ;;  %v6393_v53 = vld [vmem:[%s6591_s2] ss:$0 sm:$0xff] }
 0x21f   : > { %v6382_v57 = vadd.f32 %v4468_v47, %v2055_v3 }
 0x221   : > { %v4469_v62 = vpop.f32.mrb[108].mxu0 }
 0x222   : > { %v4470_v20 = vpop.f32.mrb[109].mxu0 }
 0x223   : > { %v4471_v23 = vadd.f32 %v4470_v20, %v4469_v62  ;;  %v4472_v59 = vpop.f32.mrb[110].mxu0 }
 0x224   : > { %v4473_v49 = vpop.f32.mrb[111].mxu0 }
 0x225   : > { %v4474_v38 = vadd.f32 %v4473_v49, %v4472_v59  ;;  %v6385_v40 = vadd.f32 %v4471_v23, %v6329_v29  ;;  %v6398_v29 = vld [vmem:[%s6592_s3] ss:$0 sm:$0xff] }
 0x227   : > { %v6388_v63 = vadd.f32 %v4474_v38, %v6337_v12 }
 0x228   : > { %v4661_v31 = vpop.f32.mrb[80].mxu1 }
 0x229   : > { %v4475_v45 = vpop.f32.mrb[112].mxu0  ;;  %v4710_v19 = vadd.f32 %v4709_v55, %v4661_v31  ;;  %v3208_v43 = vpop.f32.mrb[81].mxu1 }
 0x22a   : > { %v4476_v37 = vpop.f32.mrb[113].mxu0  ;;  %v4714_v12 = vadd.f32 %v6347_v50, %v3208_v43  ;;  %v4662_v36 = vpop.f32.mrb[82].mxu1 }
 0x22b   : > { %v4477_v3 = vadd.f32 %v4476_v37, %v4475_v45  ;;  %v4478_v22 = vpop.f32.mrb[114].mxu0  ;;  %v3376_v13 = vmul.f32 %v4710_v19, %v6393_v53  ;;  %v4718_v34 = vadd.f32 %v6354_v1, %v4662_v36  ;;  %v3211_v26 = vpop.f32.mrb[83].mxu1  ;;  %v6606_v36 = vld [vmem:[#allocation15_spill] sm:$0xff] }
 0x22c   : > { %v4479_v15 = vpop.f32.mrb[115].mxu0  ;;  %v3374_v55 = vmul.f32 %v4714_v12, %v6393_v53  ;;  %v4722_v51 = vadd.f32 %v6350_v16, %v3211_v26 }
 0x22d   : > { %v4480_v17 = vadd.f32 %v4479_v15, %v4478_v22  ;;  %v6402_v32 = vadd.f32 %v6233_v33, %v4477_v3  ;;  %v3415_v44 = vadd.f32 %v6398_v29, %v3376_v13  ;;  %v3377_v50 = vmul.f32 %v4718_v34, %v6393_v53 }
 0x22e   : > { %v3413_v5 = vadd.f32 %v6398_v29, %v3374_v55  ;;  %v3375_v33 = vmul.f32 %v4722_v51, %v6393_v53 }
 0x22f   : > { %v6409_v42 = vadd.f32 %v6235_v7, %v4480_v17  ;;  %v3416_v21 = vadd.f32 %v6398_v29, %v3377_v50  ;;  %v3447_v47 = vmax.f32 %v3415_v44, 0.0 }
 0x230   : > { %v3414_v52 = vadd.f32 %v6398_v29, %v3375_v33  ;;  %v4665_v58 = vpop.f32.mrb[84].mxu1  ;;  %v3445_v7 = vmax.f32 %v3413_v5, 0.0 }
 0x231   : > { %v4481_v10 = vpop.f32.mrb[116].mxu0  ;;  %v3448_v62 = vmax.f32 %v3416_v21, 0.0  ;;  %v4726_v20 = vadd.f32 %v6363_v4, %v4665_v58  ;;  %v3224_v23 = vpop.f32.mrb[85].mxu1 }
 0x232   : > { %v4482_v1 = vpop.f32.mrb[117].mxu0  ;;  %v3446_v49 = vmax.f32 %v3414_v52, 0.0  ;;  %v4730_v38 = vadd.f32 %v6357_v54, %v3224_v23  ;;  %v4666_v45 = vpop.f32.mrb[86].mxu1 }
 0x233   : > { %v4483_v46 = vadd.f32 %v4482_v1, %v4481_v10  ;;  %v4484_v16 = vpop.f32.mrb[118].mxu0  ;;  %v4052_v3 = vpack.c.bf16 %v3448_v62, %v3447_v47  ;;  %v3380_v22 = vmul.f32 %v4726_v20, %v6393_v53  ;;  %v4734_v19 = vadd.f32 %v6366_v9, %v4666_v45  ;;  %v3227_v43 = vpop.f32.mrb[87].mxu1 }
 0x234   : > { %v4485_v59 = vpop.f32.mrb[119].mxu0  ;;  %v4047_v15 = vpack.c.bf16 %v3446_v49, %v3445_v7  ;;  %v3378_v4 = vmul.f32 %v4730_v38, %v6393_v53  ;;  %v4738_v12 = vadd.f32 %v6360_v41, %v3227_v43 }
 0x235   : > { %v4486_v37 = vadd.f32 %v4485_v59, %v4484_v16  ;;  %v6420_v31 = vadd.f32 %v6241_v39, %v4483_v46  ;;  %4124 = vst [vmem:[%s5448_s9 + $0x8] sm:$0xff] %v4052_v3   ;;  %v3419_v54 = vadd.f32 %v6398_v29, %v3380_v22  ;;  %v3381_v39 = vmul.f32 %v4734_v19, %v6393_v53 }
 0x236   : > { %4048 = vst [vmem:[%s5448_s9] sm:$0xff] %v4047_v15   ;;  %v3417_v13 = vadd.f32 %v6398_v29, %v3378_v4  ;;  %v3379_v34 = vmul.f32 %v4738_v12, %v6393_v53 }
 0x237   : > { %v6427_v17 = vadd.f32 %v6606_v36, %v4486_v37  ;;  %v3420_v26 = vadd.f32 %v6398_v29, %v3381_v39  ;;  %v3451_v5 = vmax.f32 %v3419_v54, 0.0 }
 0x238   : > { %v3418_v51 = vadd.f32 %v6398_v29, %v3379_v34  ;;  %v4669_v41 = vpop.f32.mrb[88].mxu1  ;;  %v3449_v33 = vmax.f32 %v3417_v13, 0.0 }
 0x239   : > { %v4487_v9 = vpop.f32.mrb[120].mxu0  ;;  %v3452_v10 = vmax.f32 %v3420_v26, 0.0  ;;  %v4742_v21 = vadd.f32 %v6374_v14, %v4669_v41  ;;  %v3240_v1 = vpop.f32.mrb[89].mxu1 }
 0x23a   : > { %v4488_v55 = vpop.f32.mrb[121].mxu0  ;;  %v3450_v58 = vmax.f32 %v3418_v51, 0.0  ;;  %v4746_v46 = vadd.f32 %v6369_v28, %v3240_v1  ;;  %v4670_v16 = vpop.f32.mrb[90].mxu1 }
 0x23b   : > { %v4489_v44 = vadd.f32 %v4488_v55, %v4487_v9  ;;  %v4490_v50 = vpop.f32.mrb[122].mxu0  ;;  %v4062_v62 = vpack.c.bf16 %v3452_v10, %v3451_v5  ;;  %v3384_v20 = vmul.f32 %v4742_v21, %v6393_v53  ;;  %v4750_v23 = vadd.f32 %v6377_v25, %v4670_v16  ;;  %v3243_v59 = vpop.f32.mrb[91].mxu1 }
 0x23c   : > { %v4491_v52 = vpop.f32.mrb[123].mxu0  ;;  %v4057_v49 = vpack.c.bf16 %v3450_v58, %v3449_v33  ;;  %v3382_v14 = vmul.f32 %v4746_v46, %v6393_v53  ;;  %v4754_v38 = vadd.f32 %v6371_v0, %v3243_v59 }
 0x23d   : > { %v4492_v47 = vadd.f32 %v4491_v52, %v4490_v50  ;;  %v6440_v7 = vadd.f32 %v6249_v56, %v4489_v44  ;;  %4126 = vst [vmem:[%s5448_s9 + $0x18] sm:$0xff] %v4062_v62   ;;  %v3423_v28 = vadd.f32 %v6398_v29, %v3384_v20  ;;  %v3385_v56 = vmul.f32 %v4750_v23, %v6393_v53 }
 0x23e   : > { %4125 = vst [vmem:[%s5448_s9 + $0x10] sm:$0xff] %v4057_v49   ;;  %v3421_v37 = vadd.f32 %v6398_v29, %v3382_v14  ;;  %v3383_v3 = vmul.f32 %v4754_v38, %v6393_v53 }
 0x23f   : > { %v6447_v45 = vadd.f32 %v6251_v27, %v4492_v47  ;;  %v3424_v22 = vadd.f32 %v6398_v29, %v3385_v56  ;;  %v3455_v4 = vmax.f32 %v3423_v28, 0.0 }
 0x240   : > { %v3422_v43 = vadd.f32 %v6398_v29, %v3383_v3  ;;  %v4673_v0 = vpop.f32.mrb[92].mxu1  ;;  %v3453_v12 = vmax.f32 %v3421_v37, 0.0 }
 0x241   : > { %v4493_v25 = vpop.f32.mrb[124].mxu0  ;;  %v3456_v36 = vmax.f32 %v3424_v22, 0.0  ;;  %v4758_v54 = vadd.f32 %v6385_v40, %v4673_v0  ;;  %v3256_v39 = vpop.f32.mrb[93].mxu1 }
 0x242   : > { %v4494_v19 = vpop.f32.mrb[125].mxu0  ;;  %v3454_v34 = vmax.f32 %v3422_v43, 0.0  ;;  %v4762_v9 = vadd.f32 %v6380_v24, %v3256_v39  ;;  %v4674_v26 = vpop.f32.mrb[94].mxu1 }
 0x243   : > { %v4495_v15 = vadd.f32 %v4494_v19, %v4493_v25  ;;  %v4496_v27 = vpop.f32.mrb[126].mxu0  ;;  %v4072_v41 = vpack.c.bf16 %v3456_v36, %v3455_v4  ;;  %v3388_v44 = vmul.f32 %v4758_v54, %v6393_v53  ;;  %v4766_v50 = vadd.f32 %v6388_v63, %v4674_v26  ;;  %v3259_v5 = vpop.f32.mrb[95].mxu1 }
 0x244   : > { %v4497_v13 = vpop.f32.mrb[127].mxu0  ;;  %v4067_v33 = vpack.c.bf16 %v3454_v34, %v3453_v12  ;;  %v3386_v40 = vmul.f32 %v4762_v9, %v6393_v53  ;;  %v4770_v10 = vadd.f32 %v6382_v57, %v3259_v5 }
 0x245   : > { %v4498_v55 = vadd.f32 %v4497_v13, %v4496_v27  ;;  %v4784_v51 = vadd.f32 %v6258_v2, %v4495_v15  ;;  %4128 = vst [vmem:[%s5448_s9 + $0x28] sm:$0xff] %v4072_v41   ;;  %v3427_v24 = vadd.f32 %v6398_v29, %v3388_v44  ;;  %v3389_v1 = vmul.f32 %v4766_v50, %v6393_v53 }
 0x246   : > { %4127 = vst [vmem:[%s5448_s9 + $0x20] sm:$0xff] %v4067_v33   ;;  %v3425_v2 = vadd.f32 %v6398_v29, %v3386_v40  ;;  %v3387_v52 = vmul.f32 %v4770_v10, %v6393_v53 }
 0x247   : > { %v4790_v21 = vadd.f32 %v6260_v61, %v4498_v55  ;;  %v3428_v63 = vadd.f32 %v6398_v29, %v3389_v1  ;;  %v3459_v61 = vmax.f32 %v3427_v24, 0.0 }
 0x248   : > { %v3426_v16 = vadd.f32 %v6398_v29, %v3387_v52  ;;  %v4677_v47 = vpop.f32.mrb[0].mxu1  ;;  %v3457_v20 = vmax.f32 %v3425_v2, 0.0 }
 0x249   : > { %v4499_v58 = vpop.f32.mrb[128].mxu0  ;;  %v3460_v23 = vmax.f32 %v3428_v63, 0.0  ;;  %v4773_v59 = vadd.f32 %v6420_v31, %v4677_v47  ;;  %v3272_v49 = vpop.f32.mrb[1].mxu1 }
 0x24a   : > { %v4500_v46 = vpop.f32.mrb[129].mxu0  ;;  %v3458_v38 = vmax.f32 %v3426_v16, 0.0  ;;  %v4776_v28 = vadd.f32 %v6402_v32, %v3272_v49  ;;  %v4678_v56 = vpop.f32.mrb[2].mxu1 }
 0x24b   : > { %v4501_v57 = vadd.f32 %v4500_v46, %v4499_v58  ;;  %v4502_v62 = vpop.f32.mrb[130].mxu0  ;;  %v4082_v25 = vpack.c.bf16 %v3460_v23, %v3459_v61  ;;  %v3392_v22 = vmul.f32 %v4773_v59, %v6393_v53  ;;  %v4779_v19 = vadd.f32 %v6427_v17, %v4678_v56  ;;  %v3275_v43 = vpop.f32.mrb[3].mxu1 }
 0x24c   : > { %v4503_v14 = vpop.f32.mrb[131].mxu0  ;;  %v4077_v0 = vpack.c.bf16 %v3458_v38, %v3457_v20  ;;  %v3390_v31 = vmul.f32 %v4776_v28, %v6393_v53  ;;  %v4782_v15 = vadd.f32 %v6409_v42, %v3275_v43 }
 0x24d   : > { %v4504_v37 = vadd.f32 %v4503_v14, %v4502_v62  ;;  %v4799_v3 = vadd.f32 %v6276_v48, %v4501_v57  ;;  %4130 = vst [vmem:[%s5448_s9 + $0x38] sm:$0xff] %v4082_v25   ;;  %v3431_v32 = vadd.f32 %v6398_v29, %v3392_v22  ;;  %v3393_v4 = vmul.f32 %v4779_v19, %v6393_v53 }
 0x24e   : > { %4129 = vst [vmem:[%s5448_s9 + $0x30] sm:$0xff] %v4077_v0   ;;  %v3429_v48 = vadd.f32 %v6398_v29, %v3390_v31  ;;  %v3391_v12 = vmul.f32 %v4782_v15, %v6393_v53 }
 0x24f   : > { %v6481_v27 = vadd.f32 %v6282_v30, %v4504_v37  ;;  %v3432_v36 = vadd.f32 %v6398_v29, %v3393_v4  ;;  %v3463_v34 = vmax.f32 %v3431_v32, 0.0 }
 0x250   : > { %v3430_v39 = vadd.f32 %v6398_v29, %v3391_v12  ;;  %v4681_v42 = vpop.f32.mrb[4].mxu1  ;;  %v3461_v9 = vmax.f32 %v3429_v48, 0.0 }
 0x251   : > { %v4505_v17 = vpop.f32.mrb[132].mxu0  ;;  %v3464_v26 = vmax.f32 %v3432_v36, 0.0  ;;  %v4785_v55 = vadd.f32 %v4784_v51, %v4681_v42  ;;  %v3288_v41 = vpop.f32.mrb[5].mxu1 }
 0x252   : > { %v4506_v54 = vpop.f32.mrb[133].mxu0  ;;  %v3462_v50 = vmax.f32 %v3430_v39, 0.0  ;;  %v4788_v5 = vadd.f32 %v6440_v7, %v3288_v41  ;;  %v4682_v33 = vpop.f32.mrb[6].mxu1 }
 0x253   : > { %v4507_v13 = vadd.f32 %v4506_v54, %v4505_v17  ;;  %v4508_v30 = vpop.f32.mrb[134].mxu0  ;;  %v4092_v24 = vpack.c.bf16 %v3464_v26, %v3463_v34  ;;  %v3396_v1 = vmul.f32 %v4785_v55, %v6393_v53  ;;  %v4791_v2 = vadd.f32 %v4790_v21, %v4682_v33  ;;  %v3291_v52 = vpop.f32.mrb[7].mxu1 }
 0x254   : > { %v4509_v44 = vpop.f32.mrb[135].mxu0  ;;  %v4087_v58 = vpack.c.bf16 %v3462_v50, %v3461_v9  ;;  %v3394_v63 = vmul.f32 %v4788_v5, %v6393_v53  ;;  %v4794_v51 = vadd.f32 %v6447_v45, %v3291_v52 }
 0x255   : > { %v4510_v40 = vadd.f32 %v4509_v44, %v4508_v30  ;;  %v4796_v10 = vadd.f32 %v6298_v60, %v4507_v13  ;;  %4132 = vst [vmem:[%s5448_s9 + $0x48] sm:$0xff] %v4092_v24   ;;  %v3435_v16 = vadd.f32 %v6398_v29, %v3396_v1  ;;  %v3397_v7 = vmul.f32 %v4791_v2, %v6393_v53 }
 0x256   : > { %4131 = vst [vmem:[%s5448_s9 + $0x40] sm:$0xff] %v4087_v58   ;;  %v3433_v60 = vadd.f32 %v6398_v29, %v3394_v63  ;;  %v3395_v47 = vmul.f32 %v4794_v51, %v6393_v53 }
 0x257   : > { %v4802_v46 = vadd.f32 %v6304_v18, %v4510_v40  ;;  %v3436_v21 = vadd.f32 %v6398_v29, %v3397_v7  ;;  %v3467_v18 = vmax.f32 %v3435_v16, 0.0 }
 0x258   : > { %v3434_v61 = vadd.f32 %v6398_v29, %v3395_v47  ;;  %v4685_v20 = vpop.f32.mrb[8].mxu1  ;;  %v3465_v59 = vmax.f32 %v3433_v60, 0.0 }
 0x259   : > { %v4511_v57 = vpop.f32.mrb[136].mxu0  ;;  %v3468_v49 = vmax.f32 %v3436_v21, 0.0  ;;  %v4797_v14 = vadd.f32 %v4796_v10, %v4685_v20  ;;  %v3304_v38 = vpop.f32.mrb[9].mxu1 }
 0x25a   : > { %v4512_v62 = vpop.f32.mrb[137].mxu0  ;;  %v3466_v56 = vmax.f32 %v3434_v61, 0.0  ;;  %v4800_v37 = vadd.f32 %v4799_v3, %v3304_v38  ;;  %v4686_v25 = vpop.f32.mrb[10].mxu1 }
 0x25b   : > { %v4513_v45 = vadd.f32 %v4512_v62, %v4511_v57  ;;  %v4514_v23 = vpop.f32.mrb[138].mxu0  ;;  %v4102_v43 = vpack.c.bf16 %v3468_v49, %v3467_v18  ;;  %v3400_v0 = vmul.f32 %v4797_v14, %v6393_v53  ;;  %v4803_v31 = vadd.f32 %v4802_v46, %v4686_v25  ;;  %v3307_v15 = vpop.f32.mrb[11].mxu1 }
 0x25c   : > { %v4515_v28 = vpop.f32.mrb[139].mxu0  ;;  %v4097_v32 = vpack.c.bf16 %v3466_v56, %v3465_v59  ;;  %v3398_v4 = vmul.f32 %v4800_v37, %v6393_v53  ;;  %v4806_v48 = vadd.f32 %v6481_v27, %v3307_v15 }
 0x25d   : > { %v4516_v22 = vadd.f32 %v4515_v28, %v4514_v23  ;;  %v4811_v19 = vadd.f32 %v6320_v8, %v4513_v45  ;;  %4134 = vst [vmem:[%s5448_s9 + $0x58] sm:$0xff] %v4102_v43   ;;  %v3439_v17 = vadd.f32 %v6398_v29, %v3400_v0  ;;  %v3401_v3 = vmul.f32 %v4803_v31, %v6393_v53 }
 0x25e   : > { %4133 = vst [vmem:[%s5448_s9 + $0x50] sm:$0xff] %v4097_v32   ;;  %v3437_v8 = vadd.f32 %v6398_v29, %v3398_v4  ;;  %v3399_v36 = vmul.f32 %v4806_v48, %v6393_v53 }
 0x25f   : > { %v4817_v12 = vadd.f32 %v6324_v35, %v4516_v22  ;;  %v3440_v39 = vadd.f32 %v6398_v29, %v3401_v3  ;;  %v3471_v35 = vmax.f32 %v3439_v17, 0.0 }
 0x260   : > { %v3438_v13 = vadd.f32 %v6398_v29, %v3399_v36  ;;  %v4689_v30 = vpop.f32.mrb[12].mxu1  ;;  %v3469_v9 = vmax.f32 %v3437_v8, 0.0 }
 0x261   : > { %v4517_v54 = vpop.f32.mrb[140].mxu0  ;;  %v3472_v26 = vmax.f32 %v3440_v39, 0.0  ;;  %v3320_v55 = vpop.f32.mrb[13].mxu1 }
 0x262   : > { %v4518_v42 = vpop.f32.mrb[141].mxu0  ;;  %v3470_v44 = vmax.f32 %v3438_v13, 0.0  ;;  %v4812_v5 = vadd.f32 %v4811_v19, %v3320_v55  ;;  %v4690_v33 = vpop.f32.mrb[14].mxu1 }
 0x263   : > { %v4519_v27 = vadd.f32 %v4518_v42, %v4517_v54  ;;  %v4520_v34 = vpop.f32.mrb[142].mxu0  ;;  %v4112_v10 = vpack.c.bf16 %v3472_v26, %v3471_v35  ;;  %v3323_v24 = vpop.f32.mrb[15].mxu1 }
 0x264   : > { %v4521_v41 = vpop.f32.mrb[143].mxu0  ;;  %v4107_v1 = vpack.c.bf16 %v3470_v44, %v3469_v9  ;;  %v3402_v52 = vmul.f32 %v4812_v5, %v6393_v53  ;;  %v4818_v63 = vadd.f32 %v4817_v12, %v3323_v24 }
 0x265   : > { %v4808_v50 = vadd.f32 %v6340_v11, %v4519_v27  ;;  %v4522_v40 = vadd.f32 %v4521_v41, %v4520_v34  ;;  %4136 = vst [vmem:[%s5448_s9 + $0x68] sm:$0xff] %v4112_v10  }
 0x266   : > { %4135 = vst [vmem:[%s5448_s9 + $0x60] sm:$0xff] %v4107_v1   ;;  %v3441_v11 = vadd.f32 %v6398_v29, %v3402_v52  ;;  %v3403_v16 = vmul.f32 %v4818_v63, %v6393_v53 }
 0x267   : > { %v4809_v2 = vadd.f32 %v4808_v50, %v4689_v30  ;;  %v4814_v58 = vadd.f32 %v6344_v6, %v4522_v40 }
 0x268   : > { %v3442_v47 = vadd.f32 %v6398_v29, %v3403_v16  ;;  %v3473_v57 = vmax.f32 %v3441_v11, 0.0 }
 0x269   : > { %v3404_v51 = vmul.f32 %v4809_v2, %v6393_v53  ;;  %v4815_v46 = vadd.f32 %v4814_v58, %v4690_v33 }
 0x26a   : > { %v3474_v21 = vmax.f32 %v3442_v47, 0.0 }
 0x26b   : > { %v3443_v7 = vadd.f32 %v6398_v29, %v3404_v51  ;;  %v3405_v60 = vmul.f32 %v4815_v46, %v6393_v53 }
 0x26c   : > { %v4117_v20 = vpack.c.bf16 %v3474_v21, %v3473_v57 }
 0x26d   : > { %v3444_v6 = vadd.f32 %v6398_v29, %v3405_v60  ;;  %v3475_v62 = vmax.f32 %v3443_v7, 0.0 }
 0x26e   : > { %4137 = vst [vmem:[%s5448_s9 + $0x70] sm:$0xff] %v4117_v20  }
 0x26f   : > { %v3476_v61 = vmax.f32 %v3444_v6, 0.0 }
 0x271   : > { %v4122_v53 = vpack.c.bf16 %v3476_v61, %v3475_v62 }
 0x273   : > { %4138 = vst [vmem:[%s5448_s9 + $0x78] sm:$0xff] %v4122_v53  }
 0x274   : > { %5237 = shalt.err (!%p5234_p1)
}
 0x275   : > { %s5238_s8 = scalar_lea.hbm %s6535_s21, 2048  ;;  %s5242_s7 = scalar_lea.hbm %s6593_s4, 4096 }
 0x276   : > { %p5239_p3 = scmp.ne.s32.totalorder %s6535_s21, %s5238_s8  ;;  %p5243_p7 = scmp.lt.u32.totalorder %s6535_s21, %s6593_s4 }
 0x277   : > { %p5244_p9 = scmp.lt.u32.totalorder %s5242_s7, %s5238_s8  ;;  %p5246_p0 = scmp.lt.u32.totalorder %s5238_s8, %s6535_s21 }
 0x278   : > { %p5240_p5 = pnand %p5239_p3, %p6607_p2 }
 0x279   : > { %p5245_p12 = por %p5244_p9, %p5243_p7 }
 0x27a   : > { %p5241_p6 = pneg %p5240_p5 }
 0x27b   : > { %p5247_p4 = por %p5246_p0, %p5245_p12 }
 0x27d   : > { %p5248_p8 = pnand %p5247_p4, %p5241_p6 }
 0x27f   : > { %5251 = shalt.err (!%p5248_p8)
}
 0x280   : > { %s5315_s6 = smov 64   ;;  %s5316_s12 = smov 4  }
 0x281   : > { %4871 = dma.vmem_to_hbm [thread:$0]  (%p6607_p2), %s6537_s29, 2048, %s6535_s21, %s6543_s18, %s5315_s6, %s5315_s6, %s5316_s12  }
 0x282 PF: > { %p4883_p10 = scmp.ge.s32.totalorder %s5308_s20, 2  ;;  %s3669_s13 = sand.u32 1, %s5288_s15  }
 0x283   : > { %p6608_p11 = scmp.ne.s32.totalorder %s6599_s27, 0  ;;  %s3670_s14 = scalar_lea.sflag [#allocation6], %s3669_s13 }
 0x285   : > { %p4878_p13 = pnand %p4883_p10, %p6608_p11 }
 0x287   : > { %5283 = dma.done.wait (!%p4878_p13), %s3670_s14, 2048  }
 0x288   : > { %5285 = vsyncadd (!%p4878_p13), %s3670_s14, 4294965248  ;;  %s18_s20 = sadd.s32 1, %s5308_s20   ;;  %s6609_s15 = smov %s5292_s16 }
 0x289   : > { %p15_p1 = scmp.ge.s32.totalorder %s18_s20, 4   ;;  %s6610_s16 = smov %s5296_s17 }
 0x28a   : > { %s6611_s17 = smov %s5395_s28  ;;  %s6612_s18 = smov %s5304_s19 }
 0x28b   : > { %s6613_s19 = smov %s6615_s23  ;;  %17 = sbr.rel (!%p15_p1) target bundleno = 5 (0x5), region = 79 }
 0x292   :  { %3675 = vsyncpa [#allocation5], 1 }
 0x293   :  { %3677 = vsyncpa [#allocation5 + $0x1], 1 }
 0x294   :  { %3678 = vsyncpa [#allocation6], 1 }
 0x295   :  { %3680 = vsyncpa [#allocation6 + $0x1], 1 }
 0x296   :  { %3681 = vsyncmov [#allocation3] }
 0x299   :  { %s3682_s25 = vpop.sfrf %3681 }
 0x29a   :  { %p4008_p2 = scmp.ne.s32.totalorder %s3682_s25, 0 }
 0x29c   :  { %3686 = shalt.err (%p4008_p2)  }
 0x29d   :  { %3688 = vsyncmov [#allocation3 + $0x1] }
 0x2a0   :  { %s3689_s27 = vpop.sfrf %3688 }
 0x2a1   :  { %p4009_p3 = scmp.ne.s32.totalorder %s3689_s27, 0 }
 0x2a3   :  { %3693 = shalt.err (%p4009_p3)  }

</bundles_post_ra>
